<compile_context>
chip_gen: v7x
topology: tpu7x:2x2x1
jax: 0.10.0
libtpu: 0.0.40
codegen_flags: <defaults>
</compile_context>

<pallas_src>
import functools

import numpy as np
import jax
import jax.numpy as jnp
from jax.experimental import pallas as pl
from jax.experimental.pallas import tpu as pltpu


def _round_up(x, m):
    return (x + m - 1) // m * m


def _cdiv(a, b):
    return (a + b - 1) // b


# ----------------------------------------------------------------------------
# Fused bottleneck kernel
# ----------------------------------------------------------------------------
def _bottleneck_kernel(*refs, tm, winp, halo, wp, has_ds):
    if has_ds:
        x_ref, w1_ref, w2_ref, w3_ref, wd_ref, o_ref = refs
    else:
        x_ref, w1_ref, w2_ref, w3_ref, o_ref = refs
        wd_ref = None

    r = pl.program_id(1)
    row0 = pl.multiple_of(r * tm, 8)

    # conv1 (1x1) + ReLU over this tile plus its +/-halo rows.  x is bf16;
    # the MXU runs bf16 x bf16 -> f32; h1 is cast to bf16 exactly once.
    xwin = x_ref[pl.ds(row0, winp), :]                           # (winp, Cp) bf16
    h1 = jnp.dot(xwin, w1_ref[...], preferred_element_type=jnp.float32)
    h1 = jnp.maximum(h1, 0.0).astype(jnp.bfloat16)               # (winp, Pp)

    # conv2 (3x3, pad=1): in the flattened padded layout each tap (di, dj) is
    # a constant row shift of h1.  Concatenate the nine shifted slices along K
    # (in-VMEM im2col) and run ONE deep matmul against the pre-packed
    # (9*Pp, Pp) weight.
    taps = []
    for di in range(3):
        for dj in range(3):
            off = halo + (di - 1) * wp + (dj - 1)                # static, >= 0
            taps.append(h1[off:off + tm, :])                     # (tm, Pp) bf16
    im2col = jnp.concatenate(taps, axis=1)                       # (tm, 9*Pp)
    h2 = jnp.dot(im2col, w2_ref[...], preferred_element_type=jnp.float32)
    h2 = jnp.maximum(h2, 0.0).astype(jnp.bfloat16)               # (tm, Pp)

    # conv3 (1x1).
    out = jnp.dot(h2, w3_ref[...], preferred_element_type=jnp.float32)  # (tm,Ep)

    # Residual branch, read straight from the ref at an 8-aligned offset.
    rrow = pl.multiple_of(row0 + halo, 8)
    xc = x_ref[pl.ds(rrow, tm), :]                               # (tm, Cp) bf16
    if has_ds:
        res = jnp.dot(xc, wd_ref[...], preferred_element_type=jnp.float32)
    else:
        res = xc.astype(jnp.float32)                             # Cp == Ep
    o_ref[...] = jnp.maximum(out + res, 0.0).astype(o_ref.dtype)


@functools.lru_cache(maxsize=None)
def _build_bottleneck_call(batch, mstore, cp, pp, ep, tm, mtiles, winp, halo,
                           wp, has_ds, vmem_limit):
    kernel = functools.partial(_bottleneck_kernel, tm=tm, winp=winp, halo=halo,
                               wp=wp, has_ds=has_ds)
    in_specs = [
        # Whole (flattened + margin) bf16 image per batch element; the block
        # index is constant across the inner tile axis, so it stays resident.
        pl.BlockSpec((None, mstore, cp), lambda b, r: (b, 0, 0)),
        pl.BlockSpec((cp, pp), lambda b, r: (0, 0)),          # conv1 weight
        pl.BlockSpec((9 * pp, pp), lambda b, r: (0, 0)),      # conv2, K-stacked taps
        pl.BlockSpec((pp, ep), lambda b, r: (0, 0)),          # conv3 weight
    ]
    if has_ds:
        in_specs.append(pl.BlockSpec((cp, ep), lambda b, r: (0, 0)))

    return pl.pallas_call(
        kernel,
        out_shape=jax.ShapeDtypeStruct((batch, mtiles * tm, ep), jnp.bfloat16),
        grid_spec=pltpu.PrefetchScalarGridSpec(
            num_scalar_prefetch=0,
            grid=(batch, mtiles),
            in_specs=in_specs,
            out_specs=pl.BlockSpec((None, tm, ep), lambda b, r: (b, r, 0)),
            scratch_shapes=[],
        ),
        compiler_params=pltpu.CompilerParams(
            # batch is the megacore-sharded axis; the tile axis stays serial so
            # two cores never both DMA the same resident image block.
            dimension_semantics=("parallel", "arbitrary"),
            vmem_limit_bytes=vmem_limit,
        ),
    )


# ----------------------------------------------------------------------------
# Parameters (deterministic synthetic init) + one-time weight packing
# ----------------------------------------------------------------------------
def init_bottleneck_params(key, inplanes, planes, stride=1, downsample=False):
    expansion = 4
    outplanes = planes * expansion
    if not downsample:
        assert stride == 1 and inplanes == outplanes, \
            "identity residual requires stride=1 and inplanes == 4*planes"

    k1, k2, k3, k4 = jax.random.split(key, 4)

    def conv_w(k, cout, cin, kh, kw):
        fan_in = cin * kh * kw
        return (jax.random.normal(k, (cout, cin, kh, kw), jnp.float32)
                / np.sqrt(fan_in))

    w1 = conv_w(k1, planes, inplanes, 1, 1)          # OIHW, bias-free (spec)
    w2 = conv_w(k2, planes, planes, 3, 3)
    w3 = conv_w(k3, outplanes, planes, 1, 1)
    wd = conv_w(k4, outplanes, inplanes, 1, 1) if downsample else None

    cp = _round_up(inplanes, 128)
    pp = _round_up(planes, 128)
    ep = _round_up(outplanes, 128)

    def pack_1x1(w, k_pad, n_pad):
        cout, cin = w.shape[0], w.shape[1]
        m = jnp.transpose(w[:, :, 0, 0], (1, 0))                 # (K, N)
        m = jnp.pad(m, ((0, k_pad - cin), (0, n_pad - cout)))
        return m.astype(jnp.bfloat16)

    # 3x3 weight: (O, I, 3, 3) -> (9*I_pad, O_pad), taps stacked along K in
    # (di, dj) row-major order to match the in-kernel im2col concat.
    w2t = jnp.transpose(w2, (2, 3, 1, 0)).reshape(9, planes, planes)
    w2p = jnp.pad(w2t, ((0, 0), (0, pp - planes), (0, pp - planes)))
    w2p = w2p.reshape(9 * pp, pp).astype(jnp.bfloat16)

    return dict(
        # f32 OIHW copies kept only for the pure-JAX reference check.
        w1=w1, w2=w2, w3=w3, wd=wd,
        # pre-packed / padded / bf16 kernel weights.
        w1p=pack_1x1(w1, cp, pp),
        w2p=w2p,
        w3p=pack_1x1(w3, pp, ep),
        wdp=pack_1x1(wd, cp, ep) if downsample else None,
    )


# ----------------------------------------------------------------------------
# Forward pass (public API mirrors PyTorch: NCHW in, NCHW out; output is bf16)
# ----------------------------------------------------------------------------
def bottleneck_forward(params, x_nchw, *, inplanes, planes, stride=1,
                       downsample=False):
    expansion = 4
    outplanes = planes * expansion
    b, cin, h, w = x_nchw.shape
    assert cin == inplanes
    if not downsample:
        assert stride == 1 and inplanes == outplanes

    cp = _round_up(inplanes, 128)
    pp = _round_up(planes, 128)
    ep = _round_up(outplanes, 128)

    hp, wp = h + 2, w + 2                    # spatial zero padding baked in
    mimg = hp * wp                           # flattened padded positions
    halo = _round_up(wp + 1, 8)              # 8-aligned halo margin

    # Tiling: largest tile within a per-tile VMEM budget, preferring a single
    # tile per image (megacore parallelism comes from the batch axis).
    row_bytes = 2 * cp + 26 * pp + 14 * ep   # rough per-output-row VMEM bill
    max_rows = max(256, (24 * 1024 * 1024) // row_bytes)
    mtiles = max(1, _cdiv(mimg, max_rows))
    tm = _round_up(_cdiv(mimg, mtiles), 8)
    winp = tm + 2 * halo                     # multiple of 8 by construction
    mstore = (mtiles - 1) * tm + winp

    # NCHW -> NHWC (bf16), spatial zero pad, channel pad, flatten, halo margin.
    x = jnp.transpose(x_nchw, (0, 2, 3, 1)).astype(jnp.bfloat16)
    x = jnp.pad(x, ((0, 0), (1, 1), (1, 1), (0, cp - cin)))
    x = x.reshape(b, mimg, cp)
    x = jnp.pad(x, ((0, 0), (halo, mstore - halo - mimg), (0, 0)))

    # VMEM limit from the actual footprint (v7x has only 64 MiB per core).
    w_bytes = 2 * (cp * pp + 9 * pp * pp + pp * ep
                   + (cp * ep if downsample else 0))
    need = (2 * mstore * cp * 2            # resident x block, double buffered
            + 2 * tm * ep * 2              # output block, double buffered
            + 2 * w_bytes                  # weights (double buffered)
            + winp * (2 * cp + 6 * pp)     # xwin + h1 (f32 + bf16)
            + tm * (18 * pp + 6 * pp + 8 * ep))   # im2col + h2 + out/res f32
    vmem_limit = int(max(16 << 20, min(int(need * 1.3) + (4 << 20), 48 << 20)))

    call = _build_bottleneck_call(b, mstore, cp, pp, ep, tm, mtiles, winp,
                                  halo, wp, bool(downsample), vmem_limit)
    args = [x, params["w1p"], params["w2p"], params["w3p"]]
    if downsample:
        args.append(params["wdp"])
    out = call(*args)                                # (b, mtiles*tm, ep) bf16

    # Drop junk rows / padded channels, recover NHWC, take the valid interior
    # (and the stride subsample for stride > 1), back to NCHW.  Stays bf16.
    # TODO(synk): in a full network keep this flattened padded bf16 layout
    # between consecutive blocks instead of re-doing these XLA passes.
    out = out[:, :mimg, :outplanes].reshape(b, hp, wp, outplanes)
    out = out[:, 1:h + 1:stride, 1:w + 1:stride, :]
    return jnp.transpose(out, (0, 3, 1, 2))


# ----------------------------------------------------------------------------
# Pure-JAX reference (f32) for correctness checking
# ----------------------------------------------------------------------------
def _conv_ref(x_nhwc, w_oihw, stride=1, padding=0):
    return jax.lax.conv_general_dilated(
        x_nhwc, jnp.transpose(w_oihw, (2, 3, 1, 0)),
        window_strides=(stride, stride),
        padding=[(padding, padding), (padding, padding)],
        dimension_numbers=("NHWC", "HWIO", "NHWC"),
        precision=jax.lax.Precision.HIGHEST)


def bottleneck_reference(params, x_nchw, *, stride=1, downsample=False):
    x = jnp.transpose(x_nchw, (0, 2, 3, 1)).astype(jnp.float32)
    out = jax.nn.relu(_conv_ref(x, params["w1"]))
    out = jax.nn.relu(_conv_ref(out, params["w2"], stride=stride, padding=1))
    out = _conv_ref(out, params["w3"])
    res = _conv_ref(x, params["wd"], stride=stride) if downsample else x
    out = jax.nn.relu(out + res)
    return jnp.transpose(out, (0, 3, 1, 2))


# ----------------------------------------------------------------------------
if __name__ == "__main__":
    key = jax.random.PRNGKey(0)
    kp1, kp2, kx1, kx2 = jax.random.split(key, 4)

    configs = [
        # identity residual block (stride=1, inplanes == 4*planes)
        dict(inplanes=256, planes=64, stride=1, downsample=False, hw=16,
             keys=(kp1, kx1)),
        # downsample block (1x1 stride-2 projection on the residual path)
        dict(inplanes=128, planes=64, stride=2, downsample=True, hw=16,
             keys=(kp2, kx2)),
    ]

    for cfg in configs:
        kp, kx = cfg["keys"]
        params = init_bottleneck_params(kp, cfg["inplanes"], cfg["planes"],
                                        cfg["stride"], cfg["downsample"])
        x = jax.random.normal(kx, (2, cfg["inplanes"], cfg["hw"], cfg["hw"]),
                              jnp.float32)

        fwd = jax.jit(functools.partial(
            bottleneck_forward, inplanes=cfg["inplanes"], planes=cfg["planes"],
            stride=cfg["stride"], downsample=cfg["downsample"]))
        out = jax.block_until_ready(fwd(params, x))

        ref = jax.block_until_ready(bottleneck_reference(
            params, x, stride=cfg["stride"], downsample=cfg["downsample"]))

        oh = (cfg["hw"] - 1) // cfg["stride"] + 1
        assert out.shape == (2, cfg["planes"] * 4, oh, oh), out.shape
        assert ref.shape == out.shape, (ref.shape, out.shape)

        out_np = np.array(out.astype(jnp.float32))
        ref_np = np.array(ref)
        assert np.isfinite(out_np).all()
        err = float(np.max(np.abs(out_np - ref_np)))
        scale = float(np.max(np.abs(ref_np))) + 1e-6
        # bf16 activations + bf16 MXU operands with f32 accumulation vs. f32
        # reference.
        assert err <= 0.05 * scale + 1e-3, (err, scale)

    print("KERNEL_OK")
</pallas_src>

<mosaic_0001>
module attributes {stable_mosaic.version = 11 : i64} {
  func.func @_bottleneck_kernel(%arg0: i32, %arg1: i32, %arg2: memref<1x376x256xbf16, #tpu.memory_space<vmem>>, %arg3: memref<256x128xbf16, #tpu.memory_space<vmem>>, %arg4: memref<1152x128xbf16, #tpu.memory_space<vmem>>, %arg5: memref<128x256xbf16, #tpu.memory_space<vmem>>, %arg6: memref<1x328x256xbf16, #tpu.memory_space<vmem>>) attributes {dimension_semantics = [#tpu.dimension_semantics<parallel>, #tpu.dimension_semantics<arbitrary>], iteration_bounds = array<i64: 2, 1>, scalar_prefetch = 0 : i64, scratch_operands = 0 : i64, tpu.core_type = #tpu.core_type<tc>, window_params = [{transform_indices = @transform_0, window_bounds = array<i64: 1, 376, 256>}, {pipeline_mode = #tpu.pipeline_mode<synchronous>, transform_indices = @transform_1, window_bounds = array<i64: 256, 128>}, {pipeline_mode = #tpu.pipeline_mode<synchronous>, transform_indices = @transform_2, window_bounds = array<i64: 1152, 128>}, {pipeline_mode = #tpu.pipeline_mode<synchronous>, transform_indices = @transform_3, window_bounds = array<i64: 128, 256>}, {transform_indices = @transform_4, window_bounds = array<i64: 1, 328, 256>}]} {
    %c328_i32 = arith.constant 328 : i32
    %0 = arith.muli %arg1, %c328_i32 : i32
    %1 = tpu.assume_multiple %0, 8 : i32
    %c0 = arith.constant 0 : index
    %2 = arith.index_cast %1 : i32 to index
    %c0_0 = arith.constant 0 : index
    %3 = vector.load %arg2[%c0, %2, %c0_0] : memref<1x376x256xbf16, #tpu.memory_space<vmem>>, vector<1x376x256xbf16>
    %4 = vector.shape_cast %3 : vector<1x376x256xbf16> to vector<376x256xbf16>
    %c0_1 = arith.constant 0 : index
    %c0_2 = arith.constant 0 : index
    %5 = vector.load %arg3[%c0_1, %c0_2] : memref<256x128xbf16, #tpu.memory_space<vmem>>, vector<256x128xbf16>
    %cst = arith.constant dense<0.000000e+00> : vector<376x128xf32>
    %6 = tpu.matmul %4, %5, %cst {dimension_numbers = #tpu.dot_dimension_numbers<[1], [0], [0], [1], [0, 0, 1, 1], [], []>} : vector<376x256xbf16>, vector<256x128xbf16>, vector<376x128xf32> -> vector<376x128xf32>
    %cst_3 = arith.constant 0.000000e+00 : f32
    %7 = vector.broadcast %cst_3 : f32 to vector<376x128xf32>
    %8 = arith.maximumf %6, %7 : vector<376x128xf32>
    %9 = arith.truncf %8 : vector<376x128xf32> to vector<376x128xbf16>
    %10 = vector.extract_strided_slice %9 {offsets = [5, 0], sizes = [328, 128], strides = [1, 1]} : vector<376x128xbf16> to vector<328x128xbf16>
    %11 = vector.extract_strided_slice %9 {offsets = [6, 0], sizes = [328, 128], strides = [1, 1]} : vector<376x128xbf16> to vector<328x128xbf16>
    %12 = vector.extract_strided_slice %9 {offsets = [7, 0], sizes = [328, 128], strides = [1, 1]} : vector<376x128xbf16> to vector<328x128xbf16>
    %13 = vector.extract_strided_slice %9 {offsets = [23, 0], sizes = [328, 128], strides = [1, 1]} : vector<376x128xbf16> to vector<328x128xbf16>
    %14 = vector.extract_strided_slice %9 {offsets = [24, 0], sizes = [328, 128], strides = [1, 1]} : vector<376x128xbf16> to vector<328x128xbf16>
    %15 = vector.extract_strided_slice %9 {offsets = [25, 0], sizes = [328, 128], strides = [1, 1]} : vector<376x128xbf16> to vector<328x128xbf16>
    %16 = vector.extract_strided_slice %9 {offsets = [41, 0], sizes = [328, 128], strides = [1, 1]} : vector<376x128xbf16> to vector<328x128xbf16>
    %17 = vector.extract_strided_slice %9 {offsets = [42, 0], sizes = [328, 128], strides = [1, 1]} : vector<376x128xbf16> to vector<328x128xbf16>
    %18 = vector.extract_strided_slice %9 {offsets = [43, 0], sizes = [328, 128], strides = [1, 1]} : vector<376x128xbf16> to vector<328x128xbf16>
    %19 = tpu.concatenate %10, %11, %12, %13, %14, %15, %16, %17, %18 in 1 : vector<328x128xbf16>, vector<328x128xbf16>, vector<328x128xbf16>, vector<328x128xbf16>, vector<328x128xbf16>, vector<328x128xbf16>, vector<328x128xbf16>, vector<328x128xbf16>, vector<328x128xbf16> -> vector<328x1152xbf16>
    %c0_4 = arith.constant 0 : index
    %c0_5 = arith.constant 0 : index
    %20 = vector.load %arg4[%c0_4, %c0_5] : memref<1152x128xbf16, #tpu.memory_space<vmem>>, vector<1152x128xbf16>
    %cst_6 = arith.constant dense<0.000000e+00> : vector<328x128xf32>
    %21 = tpu.matmul %19, %20, %cst_6 {dimension_numbers = #tpu.dot_dimension_numbers<[1], [0], [0], [1], [0, 0, 1, 1], [], []>} : vector<328x1152xbf16>, vector<1152x128xbf16>, vector<328x128xf32> -> vector<328x128xf32>
    %cst_7 = arith.constant 0.000000e+00 : f32
    %22 = vector.broadcast %cst_7 : f32 to vector<328x128xf32>
    %23 = arith.maximumf %21, %22 : vector<328x128xf32>
    %24 = arith.truncf %23 : vector<328x128xf32> to vector<328x128xbf16>
    %c0_8 = arith.constant 0 : index
    %c0_9 = arith.constant 0 : index
    %25 = vector.load %arg5[%c0_8, %c0_9] : memref<128x256xbf16, #tpu.memory_space<vmem>>, vector<128x256xbf16>
    %cst_10 = arith.constant dense<0.000000e+00> : vector<328x256xf32>
    %26 = tpu.matmul %24, %25, %cst_10 {dimension_numbers = #tpu.dot_dimension_numbers<[1], [0], [0], [1], [0, 0, 1, 1], [], []>} : vector<328x128xbf16>, vector<128x256xbf16>, vector<328x256xf32> -> vector<328x256xf32>
    %c24_i32 = arith.constant 24 : i32
    %27 = arith.addi %1, %c24_i32 : i32
    %28 = tpu.assume_multiple %27, 8 : i32
    %c0_11 = arith.constant 0 : index
    %29 = arith.index_cast %28 : i32 to index
    %c0_12 = arith.constant 0 : index
    %30 = vector.load %arg2[%c0_11, %29, %c0_12] : memref<1x376x256xbf16, #tpu.memory_space<vmem>>, vector<1x328x256xbf16>
    %31 = vector.shape_cast %30 : vector<1x328x256xbf16> to vector<328x256xbf16>
    %32 = arith.extf %31 : vector<328x256xbf16> to vector<328x256xf32>
    %33 = arith.addf %26, %32 : vector<328x256xf32>
    %cst_13 = arith.constant 0.000000e+00 : f32
    %34 = vector.broadcast %cst_13 : f32 to vector<328x256xf32>
    %35 = arith.maximumf %33, %34 : vector<328x256xf32>
    %36 = arith.truncf %35 : vector<328x256xf32> to vector<328x256xbf16>
    %c0_14 = arith.constant 0 : index
    %c0_15 = arith.constant 0 : index
    %c0_16 = arith.constant 0 : index
    %37 = vector.load %arg6[%c0_14, %c0_15, %c0_16] : memref<1x328x256xbf16, #tpu.memory_space<vmem>>, vector<1x328x256xbf16>
    %38 = vector.shape_cast %37 : vector<1x328x256xbf16> to vector<328x256xbf16>
    %39 = vector.shape_cast %36 : vector<328x256xbf16> to vector<1x328x256xbf16>
    tpu.vector_store %arg6[%c0_14, %c0_15, %c0_16], %39 {strides = array<i32>} : memref<1x328x256xbf16, #tpu.memory_space<vmem>>, vector<1x328x256xbf16>,
    return
  }
  func.func @transform_0(%arg0: i32, %arg1: i32) -> (i32, i32, i32) {
    %c0_i32 = arith.constant 0 : i32
    %c0_i32_0 = arith.constant 0 : i32
    %c0_i32_1 = arith.constant 0 : i32
    return %arg0, %c0_i32, %c0_i32_0 : i32, i32, i32
  }
  func.func @transform_1(%arg0: i32, %arg1: i32) -> (i32, i32) {
    %c0_i32 = arith.constant 0 : i32
    %c0_i32_0 = arith.constant 0 : i32
    %c0_i32_1 = arith.constant 0 : i32
    return %c0_i32, %c0_i32_0 : i32, i32
  }
  func.func @transform_2(%arg0: i32, %arg1: i32) -> (i32, i32) {
    %c0_i32 = arith.constant 0 : i32
    %c0_i32_0 = arith.constant 0 : i32
    %c0_i32_1 = arith.constant 0 : i32
    return %c0_i32, %c0_i32_0 : i32, i32
  }
  func.func @transform_3(%arg0: i32, %arg1: i32) -> (i32, i32) {
    %c0_i32 = arith.constant 0 : i32
    %c0_i32_0 = arith.constant 0 : i32
    %c0_i32_1 = arith.constant 0 : i32
    return %c0_i32, %c0_i32_0 : i32, i32
  }
  func.func @transform_4(%arg0: i32, %arg1: i32) -> (i32, i32, i32) {
    %c0_i32 = arith.constant 0 : i32
    %c0_i32_0 = arith.constant 0 : i32
    return %arg0, %arg1, %c0_i32 : i32, i32, i32
  }
}

</mosaic_0001>

<bundles_post_ra>
// kernel: bottleneck_forward.1
= control target key start
LH: loop header
LB: loop body
LE: loop exit
PB: predicated region body
PF: predicated region fallthrough
CT: control target
= control target key end

     0   :  { %s6333_s15 = smov 0   ;;  %s6335_s16 = smov 0   ;;  %s8490_s0 = inlined_call_operand.vmem [shape: bf16[2,376,256], index: 0, kind: input, shape index: {}]   ;;  %s8491_s1 = inlined_call_operand.vmem [shape: bf16[256,128], index: 1, kind: input, shape index: {}]   ;;  %s8492_s2 = inlined_call_operand.vmem [shape: bf16[1152,128], index: 2, kind: input, shape index: {}]   ;;  %s8493_s3 = inlined_call_operand.vmem [shape: bf16[128,256], index: 3, kind: input, shape index: {}]   ;;  %s8494_s4 = inlined_call_operand.vmem [shape: bf16[2,328,256], index: 4, kind: output, shape index: {}]  }
   0x1   :  { %s6337_s17 = smov 0  }
   0x2 LB: > { %s26_s18 = sadd.s32 1, %s6299_s16  ;;  %p5335_p0 = scmp.ge.s32.totalorder %s6303_s17, 1  ;;  %s6303_s17 = sphi %s6337_s17, %s14_s17   ;;  %s6299_s16 = sphi %s6335_s16, %s8817_s16   ;;  %s6295_s15 = sphi %s6333_s15, %s8816_s15  }
   0x3   : > { %p28_p1 = scmp.ge.s32.totalorder %s26_s18, 2  ;;  %p176_p2 = scmp.lt.s32.totalorder %s6303_s17, 3 }
   0x5   : > { %s8819_s18 = smov (%p28_p1, %s26_s18), 0  ;;  %p177_p3 = pnand %p5335_p0, %p176_p2 }
   0x7   : > { %180 = sbr.rel (%p177_p3) target bundleno = 1436 (0x59c), region = 36 }
   0xe   : > { %v6098_v0 = vld [vmem:[%s8491_s1] sm:$0xff]   ;;  %v8496_v1 = vmov 0   ;;  %v6099_v2 = vld [vmem:[%s8491_s1 + $0x8] sm:$0xff]   ;;  %p207_p4 = scmp.lt.s32.totalorder %s6295_s15, 1  ;;  %v6100_v3 = vld [vmem:[%s8491_s1 + $0x10] sm:$0xff]   ;;  %vm1126_vm0 = vcmask 1046528  }
   0xf   : > { %642 = vmatprep.subr.bf16.mxu0 %v8496_v1  ;;  %5744 = vmatprep.subr.bf16.mxu1 %v8496_v1  ;;  %v6101_v4 = vld [vmem:[%s8491_s1 + $0x18] sm:$0xff]   ;;  %v6102_v5 = vld [vmem:[%s8491_s1 + $0x20] sm:$0xff]   ;;  %v6103_v7 = vld [vmem:[%s8491_s1 + $0x28] sm:$0xff]   ;;  %vm937_vm1 = vsmask.f32 7424  ;;  %vm1261_vm3 = vcmask 1045504  }
  0x10   : > { %643 = vmatpush1.bf16.msra.mxu0 %v6098_v0  ;;  %s8821_s15 = smov (!%p207_p4, %s6295_s15), 1  ;;  %v6104_v8 = vld [vmem:[%s8491_s1 + $0x30] sm:$0xff]   ;;  %v6105_v9 = vld [vmem:[%s8491_s1 + $0x38] sm:$0xff]   ;;  %v6106_v10 = vld [vmem:[%s8491_s1 + $0x40] sm:$0xff]   ;;  %vm1308_vm2 = vsmask.f32 5376 }
  0x11   : > { %644 = vmatprep.subr.bf16.mxu0 %v8496_v1  ;;  %s6069_s27 = smul.u32 376, %s8821_s15  ;;  %v6107_v11 = vld [vmem:[%s8491_s1 + $0x48] sm:$0xff]   ;;  %v6108_v12 = vld [vmem:[%s8491_s1 + $0x50] sm:$0xff]   ;;  %v6109_v13 = vld [vmem:[%s8491_s1 + $0x58] sm:$0xff]   ;;  %vm1171_vm4 = vsmask.f32 6400 }
  0x12   : > { %v6110_v14 = vld [vmem:[%s8491_s1 + $0x60] sm:$0xff]   ;;  %v6111_v15 = vld [vmem:[%s8491_s1 + $0x68] sm:$0xff]   ;;  %v6112_v16 = vld [vmem:[%s8491_s1 + $0x70] sm:$0xff]   ;;  %vm1406_vm5 = vcmask 1044480   ;;  %vm6307_vm6 = vmmov 0   ;;  %s6070_s20 = smul.u32 328, %s8821_s15 }
  0x13   : > { %s6377_s6 = scalar_lea.vmem %s8490_s0, %s6069_s27  ;;  %v6113_v17 = vld [vmem:[%s8491_s1 + $0x78] sm:$0xff]   ;;  %v6185_v34 = vld [vmem:[%s8492_s2] sm:$0xff]   ;;  %v6186_v35 = vld [vmem:[%s8492_s2 + $0x8] sm:$0xff]  }
  0x14   : > { %645 = vmatpush1.bf16.msra.mxu0 %v6099_v2  ;;  %v6116_v6 = vld [vmem:[%s6377_s6 + $0x4] ss:$8 sps:$4 sm:$0xff]   ;;  %v6114_v18 = vld [vmem:[%s6377_s6] ss:$8 sps:$4 sm:$0xff]   ;;  %v6117_v19 = vld [vmem:[%s6377_s6 + $0x14] ss:$8 sps:$4 sm:$0xff]   ;;  %s8401_s23 = scalar_lea.vmem %s8494_s4, %s6070_s20 }
  0x15   : > { %646 = vmatprep.subr.bf16.mxu0 %v8496_v1  ;;  %674 = vmatprep.mubr.bf16.mxu0 %v6116_v6  ;;  %v6119_v20 = vld [vmem:[%s6377_s6 + $0x10] ss:$8 sps:$4 sm:$0xff]   ;;  %v6120_v21 = vld [vmem:[%s6377_s6 + $0x24] ss:$8 sps:$4 sm:$0xff]   ;;  %v6122_v22 = vld [vmem:[%s6377_s6 + $0x20] ss:$8 sps:$4 sm:$0xff]  }
  0x16   : > { %v6123_v23 = vld [vmem:[%s6377_s6 + $0x34] ss:$8 sps:$4 sm:$0xff]   ;;  %v6125_v24 = vld [vmem:[%s6377_s6 + $0x30] ss:$8 sps:$4 sm:$0xff]   ;;  %v6126_v25 = vld [vmem:[%s6377_s6 + $0x44] ss:$8 sps:$4 sm:$0xff]  }
  0x17   : > { %v6128_v26 = vld [vmem:[%s6377_s6 + $0x40] ss:$8 sps:$4 sm:$0xff]   ;;  %v6129_v27 = vld [vmem:[%s6377_s6 + $0x54] ss:$8 sps:$4 sm:$0xff]   ;;  %v6131_v28 = vld [vmem:[%s6377_s6 + $0x50] ss:$8 sps:$4 sm:$0xff]  }
  0x18   : > { %647 = vmatpush1.bf16.msra.mxu0 %v6100_v3  ;;  %v6132_v29 = vld [vmem:[%s6377_s6 + $0x64] ss:$8 sps:$4 sm:$0xff]   ;;  %v6134_v30 = vld [vmem:[%s6377_s6 + $0x60] ss:$8 sps:$4 sm:$0xff]   ;;  %v6135_v31 = vld [vmem:[%s6377_s6 + $0x74] ss:$8 sps:$4 sm:$0xff]  }
  0x19   : > { %648 = vmatprep.subr.bf16.mxu0 %v8496_v1  ;;  %v6137_v32 = vld [vmem:[%s6377_s6 + $0x70] ss:$8 sps:$4 sm:$0xff]   ;;  %v6138_v33 = vld [vmem:[%s6377_s6 + $0x84] ss:$8 sps:$4 sm:$0xff]   ;;  %v6140_v36 = vld [vmem:[%s6377_s6 + $0x80] ss:$8 sps:$4 sm:$0xff]  }
  0x1a   : > { %v6141_v37 = vld [vmem:[%s6377_s6 + $0x94] ss:$8 sps:$4 sm:$0xff]   ;;  %v6143_v40 = vld [vmem:[%s6377_s6 + $0x90] ss:$8 sps:$4 sm:$0xff]   ;;  %v6144_v41 = vld [vmem:[%s6377_s6 + $0xa4] ss:$8 sps:$4 sm:$0xff]  }
  0x1b   : > { %v6187_v38 = vld [vmem:[%s8492_s2 + $0x10] sm:$0xff]   ;;  %v6188_v39 = vld [vmem:[%s8492_s2 + $0x18] sm:$0xff]   ;;  %v6189_v42 = vld [vmem:[%s8492_s2 + $0x20] sm:$0xff]  }
  0x1c   : > { %649 = vmatpush1.bf16.msra.mxu0 %v6101_v4  ;;  %v6190_v43 = vld [vmem:[%s8492_s2 + $0x28] sm:$0xff]   ;;  %v6147_v45 = vld [vmem:[%s6377_s6 + $0xb4] ss:$8 sps:$4 sm:$0xff]   ;;  %v6149_v48 = vld [vmem:[%s6377_s6 + $0xb0] ss:$8 sps:$4 sm:$0xff]  }
  0x1d   : > { %650 = vmatprep.subr.bf16.mxu0 %v8496_v1  ;;  %v6146_v44 = vld [vmem:[%s6377_s6 + $0xa0] ss:$8 sps:$4 sm:$0xff]   ;;  %v6191_v46 = vld [vmem:[%s8492_s2 + $0x30] sm:$0xff]   ;;  %v6192_v47 = vld [vmem:[%s8492_s2 + $0x38] sm:$0xff]  }
  0x1e   : > { %v6150_v49 = vld [vmem:[%s6377_s6 + $0xc4] ss:$8 sps:$4 sm:$0xff]   ;;  %v6152_v52 = vld [vmem:[%s6377_s6 + $0xc0] ss:$8 sps:$4 sm:$0xff]   ;;  %v6153_v53 = vld [vmem:[%s6377_s6 + $0xd4] ss:$8 sps:$4 sm:$0xff]  }
  0x1f   : > { %v6193_v50 = vld [vmem:[%s8492_s2 + $0x40] sm:$0xff]   ;;  %v6194_v51 = vld [vmem:[%s8492_s2 + $0x48] sm:$0xff]   ;;  %v6195_v54 = vld [vmem:[%s8492_s2 + $0x50] sm:$0xff]  }
  0x20   : > { %651 = vmatpush1.bf16.msra.mxu0 %v6102_v5  ;;  %v6196_v55 = vld [vmem:[%s8492_s2 + $0x58] sm:$0xff]   ;;  %v6156_v57 = vld [vmem:[%s6377_s6 + $0xe4] ss:$8 sps:$4 sm:$0xff]   ;;  %v6158_v60 = vld [vmem:[%s6377_s6 + $0xe0] ss:$8 sps:$4 sm:$0xff]  }
  0x21   : > { %652 = vmatprep.subr.bf16.mxu0 %v8496_v1  ;;  %v6155_v56 = vld [vmem:[%s6377_s6 + $0xd0] ss:$8 sps:$4 sm:$0xff]   ;;  %v6197_v58 = vld [vmem:[%s8492_s2 + $0x60] sm:$0xff]   ;;  %v6198_v59 = vld [vmem:[%s8492_s2 + $0x68] sm:$0xff]  }
  0x22   : > { %v6159_v61 = vld [vmem:[%s6377_s6 + $0xf4] ss:$8 sps:$4 sm:$0xff]   ;;  %v6161_v0 = vld [vmem:[%s6377_s6 + $0xf0] ss:$8 sps:$4 sm:$0xff]   ;;  %v6162_v2 = vld [vmem:[%s6377_s6 + $0x104] ss:$8 sps:$4 sm:$0xff]  }
  0x23   : > { %v6199_v62 = vld [vmem:[%s8492_s2 + $0x70] sm:$0xff]   ;;  %v6200_v63 = vld [vmem:[%s8492_s2 + $0x78] sm:$0xff]   ;;  %v6164_v3 = vld [vmem:[%s6377_s6 + $0x100] ss:$8 sps:$4 sm:$0xff]  }
  0x24   : > { %653 = vmatpush1.bf16.msra.mxu0 %v6103_v7  ;;  %v6165_v4 = vld [vmem:[%s6377_s6 + $0x114] ss:$8 sps:$4 sm:$0xff]   ;;  %v6167_v5 = vld [vmem:[%s6377_s6 + $0x110] ss:$8 sps:$4 sm:$0xff]   ;;  %v6168_v6 = vld [vmem:[%s6377_s6 + $0x124] ss:$8 sps:$4 sm:$0xff]  }
  0x25   : > { %654 = vmatprep.subr.bf16.mxu0 %v8496_v1  ;;  %v6529_v7 = vld [vmem:[%s8492_s2 + $0x80] sm:$0xff]  }
  0x26   : > { %5760 = vmatpush1.bf16.msra.mxu1 %v6529_v7 }
  0x27   : > { %5745 = vmatprep.subr.bf16.mxu1 %v8496_v1 }
  0x28   : > { %655 = vmatpush1.bf16.msra.mxu0 %v6104_v8  ;;  %v6536_v8 = vld [vmem:[%s8492_s2 + $0x88] sm:$0xff]  }
  0x29   : > { %656 = vmatprep.subr.bf16.mxu0 %v8496_v1 }
  0x2a   : > { %5761 = vmatpush1.bf16.msra.mxu1 %v6536_v8 }
  0x2b   : > { %5746 = vmatprep.subr.bf16.mxu1 %v8496_v1 }
  0x2c   : > { %657 = vmatpush1.bf16.msra.mxu0 %v6105_v9  ;;  %v6170_v9 = vld [vmem:[%s6377_s6 + $0x120] ss:$8 sps:$4 sm:$0xff]  }
  0x2d   : > { %658 = vmatprep.subr.bf16.mxu0 %v8496_v1 }
  0x30   : > { %659 = vmatpush1.bf16.msra.mxu0 %v6106_v10  ;;  %v6171_v10 = vld [vmem:[%s6377_s6 + $0x134] ss:$8 sps:$4 sm:$0xff]  }
  0x31   : > { %660 = vmatprep.subr.bf16.mxu0 %v8496_v1 }
  0x34   : > { %661 = vmatpush1.bf16.msra.mxu0 %v6107_v11  ;;  %v6545_v11 = vld [vmem:[%s8492_s2 + $0x90] sm:$0xff]  }
  0x35   : > { %662 = vmatprep.subr.bf16.mxu0 %v8496_v1  ;;  %5762 = vmatpush1.bf16.msra.mxu1 %v6545_v11 }
  0x36   : > { %5747 = vmatprep.subr.bf16.mxu1 %v8496_v1 }
  0x38   : > { %663 = vmatpush1.bf16.msra.mxu0 %v6108_v12  ;;  %v6552_v12 = vld [vmem:[%s8492_s2 + $0x98] sm:$0xff]  }
  0x39   : > { %664 = vmatprep.subr.bf16.mxu0 %v8496_v1  ;;  %5763 = vmatpush1.bf16.msra.mxu1 %v6552_v12 }
  0x3a   : > { %5748 = vmatprep.subr.bf16.mxu1 %v8496_v1 }
  0x3c   : > { %665 = vmatpush1.bf16.msra.mxu0 %v6109_v13  ;;  %v6173_v13 = vld [vmem:[%s6377_s6 + $0x130] ss:$8 sps:$4 sm:$0xff]  }
  0x3d   : > { %666 = vmatprep.subr.bf16.mxu0 %v8496_v1 }
  0x40   : > { %667 = vmatpush1.bf16.msra.mxu0 %v6110_v14  ;;  %v6174_v14 = vld [vmem:[%s6377_s6 + $0x144] ss:$8 sps:$4 sm:$0xff]  }
  0x41   : > { %668 = vmatprep.subr.bf16.mxu0 %v8496_v1 }
  0x44   : > { %669 = vmatpush1.bf16.msra.mxu0 %v6111_v15  ;;  %v6561_v15 = vld [vmem:[%s8492_s2 + $0xa0] sm:$0xff]  }
  0x45   : > { %670 = vmatprep.subr.bf16.mxu0 %v8496_v1  ;;  %5764 = vmatpush1.bf16.msra.mxu1 %v6561_v15 }
  0x46   : > { %5749 = vmatprep.subr.bf16.mxu1 %v8496_v1 }
  0x48   : > { %671 = vmatpush1.bf16.msra.mxu0 %v6112_v16  ;;  %v6568_v16 = vld [vmem:[%s8492_s2 + $0xa8] sm:$0xff]  }
  0x49   : > { %672 = vmatprep.subr.bf16.mxu0 %v8496_v1  ;;  %5765 = vmatpush1.bf16.msra.mxu1 %v6568_v16 }
  0x4a   : > { %5750 = vmatprep.subr.bf16.mxu1 %v8496_v1 }
  0x4c   : > { %673 = vmatpush1.bf16.msra.mxu0 %v6113_v17  ;;  %v6176_v17 = vld [vmem:[%s6377_s6 + $0x140] ss:$8 sps:$4 sm:$0xff]  }
  0x4d   : > { %3341 = vmatprep.subr.bf16.mxu0 %v8496_v1 }
  0x4f   : > { %675 = vmatmul.mubr.bf16.vlgmr.msra.gmra.mrb[0].mxu0 %v6114_v18  ;;  %v6177_v18 = vld [vmem:[%s6377_s6 + $0x154] ss:$8 sps:$4 sm:$0xff]  }
  0x50   : > { %682 = vmatprep.mubr.bf16.mxu0 %v6117_v19  ;;  %3342 = vmatpush1.bf16.msra.mxu0 %v6185_v34  ;;  %v6577_v19 = vld [vmem:[%s8492_s2 + $0xb0] sm:$0xff]   ;;  %v6644_v34 = vld [vmem:[%s8492_s2 + $0xf8] sm:$0xff]  }
  0x51   : > { %3343 = vmatprep.subr.bf16.mxu0 %v8496_v1  ;;  %5766 = vmatpush1.bf16.msra.mxu1 %v6577_v19 }
  0x52   : > { %5751 = vmatprep.subr.bf16.mxu1 %v8496_v1 }
  0x54   : > { %3344 = vmatpush1.bf16.msra.mxu0 %v6186_v35 }
  0x55   : > { %3345 = vmatprep.subr.bf16.mxu0 %v8496_v1 }
  0x57   : > { %683 = vmatmul.mubr.bf16.gmra.mrb[4].mxu0 %v6119_v20  ;;  %v6584_v20 = vld [vmem:[%s8492_s2 + $0xb8] sm:$0xff]  }
  0x58   : > { %690 = vmatprep.mubr.bf16.mxu0 %v6120_v21  ;;  %3346 = vmatpush1.bf16.msra.mxu0 %v6187_v38  ;;  %v6179_v21 = vld [vmem:[%s6377_s6 + $0x150] ss:$8 sps:$4 sm:$0xff]  }
  0x59   : > { %3347 = vmatprep.subr.bf16.mxu0 %v8496_v1  ;;  %5767 = vmatpush1.bf16.msra.mxu1 %v6584_v20 }
  0x5a   : > { %5752 = vmatprep.subr.bf16.mxu1 %v8496_v1 }
  0x5c   : > { %3348 = vmatpush1.bf16.msra.mxu0 %v6188_v39 }
  0x5d   : > { %3349 = vmatprep.subr.bf16.mxu0 %v8496_v1 }
  0x5f   : > { %691 = vmatmul.mubr.bf16.gmra.mrb[8].mxu0 %v6122_v22  ;;  %v6180_v22 = vld [vmem:[%s6377_s6 + $0x164] ss:$8 sps:$4 sm:$0xff]  }
  0x60   : > { %698 = vmatprep.mubr.bf16.mxu0 %v6123_v23  ;;  %3350 = vmatpush1.bf16.msra.mxu0 %v6189_v42  ;;  %v6593_v23 = vld [vmem:[%s8492_s2 + $0xc0] sm:$0xff]  }
  0x61   : > { %3351 = vmatprep.subr.bf16.mxu0 %v8496_v1  ;;  %5768 = vmatpush1.bf16.msra.mxu1 %v6593_v23 }
  0x62   : > { %5753 = vmatprep.subr.bf16.mxu1 %v8496_v1 }
  0x64   : > { %3352 = vmatpush1.bf16.msra.mxu0 %v6190_v43 }
  0x65   : > { %3353 = vmatprep.subr.bf16.mxu0 %v8496_v1 }
  0x67   : > { %699 = vmatmul.mubr.bf16.gmra.mrb[12].mxu0 %v6125_v24  ;;  %v276_v24 = vld [vmem:[%s6377_s6 + $0x170] sm:$0xff] }
  0x68   : > { %706 = vmatprep.mubr.bf16.mxu0 %v6126_v25  ;;  %3354 = vmatpush1.bf16.msra.mxu0 %v6191_v46  ;;  %v6601_v25 = vld [vmem:[%s8492_s2 + $0xc8] sm:$0xff]  }
  0x69   : > { %3355 = vmatprep.subr.bf16.mxu0 %v8496_v1  ;;  %5769 = vmatpush1.bf16.msra.mxu1 %v6601_v25 }
  0x6a   : > { %5754 = vmatprep.subr.bf16.mxu1 %v8496_v1 }
  0x6c   : > { %3356 = vmatpush1.bf16.msra.mxu0 %v6192_v47 }
  0x6d   : > { %3357 = vmatprep.subr.bf16.mxu0 %v8496_v1 }
  0x6f   : > { %707 = vmatmul.mubr.bf16.gmra.mrb[16].mxu0 %v6128_v26  ;;  %v6182_v26 = vld [vmem:[%s6377_s6 + $0x160] ss:$8 sps:$4 sm:$0xff]  }
  0x70   : > { %714 = vmatprep.mubr.bf16.mxu0 %v6129_v27  ;;  %3358 = vmatpush1.bf16.msra.mxu0 %v6193_v50  ;;  %v5385_v27 = vcombine.high %v276_v24, %v276_v24 }
  0x71   : > { %3359 = vmatprep.subr.bf16.mxu0 %v8496_v1 }
  0x74   : > { %3360 = vmatpush1.bf16.msra.mxu0 %v6194_v51 }
  0x75   : > { %3361 = vmatprep.subr.bf16.mxu0 %v8496_v1 }
  0x77   : > { %715 = vmatmul.mubr.bf16.gmra.mrb[20].mxu0 %v6131_v28  ;;  %v6609_v28 = vld [vmem:[%s8492_s2 + $0xd0] sm:$0xff]  }
  0x78   : > { %722 = vmatprep.mubr.bf16.mxu0 %v6132_v29  ;;  %3362 = vmatpush1.bf16.msra.mxu0 %v6195_v54  ;;  %v6616_v29 = vld [vmem:[%s8492_s2 + $0xd8] sm:$0xff]  }
  0x79   : > { %3363 = vmatprep.subr.bf16.mxu0 %v8496_v1  ;;  %5770 = vmatpush1.bf16.msra.mxu1 %v6609_v28 }
  0x7a   : > { %5755 = vmatprep.subr.bf16.mxu1 %v8496_v1 }
  0x7c   : > { %3364 = vmatpush1.bf16.msra.mxu0 %v6196_v55 }
  0x7d   : > { %3365 = vmatprep.subr.bf16.mxu0 %v8496_v1  ;;  %5771 = vmatpush1.bf16.msra.mxu1 %v6616_v29 }
  0x7e   : > { %5756 = vmatprep.subr.bf16.mxu1 %v8496_v1 }
  0x7f   : > { %723 = vmatmul.mubr.bf16.gmra.mrb[24].mxu0 %v6134_v30  ;;  %v5384_v30 = vcombine.low %v276_v24, %v276_v24 }
  0x80   : > { %730 = vmatprep.mubr.bf16.mxu0 %v6135_v31  ;;  %3366 = vmatpush1.bf16.msra.mxu0 %v6197_v58  ;;  %v6623_v31 = vld [vmem:[%s8492_s2 + $0xe0] sm:$0xff]  }
  0x81   : > { %3367 = vmatprep.subr.bf16.mxu0 %v8496_v1  ;;  %5772 = vmatpush1.bf16.msra.mxu1 %v6623_v31 }
  0x82   : > { %5757 = vmatprep.subr.bf16.mxu1 %v8496_v1 }
  0x84   : > { %3368 = vmatpush1.bf16.msra.mxu0 %v6198_v59 }
  0x85   : > { %3369 = vmatprep.subr.bf16.mxu0 %v8496_v1 }
  0x87   : > { %731 = vmatmul.mubr.bf16.gmra.mrb[28].mxu0 %v6137_v32  ;;  %v6630_v32 = vld [vmem:[%s8492_s2 + $0xe8] sm:$0xff]  }
  0x88   : > { %738 = vmatprep.mubr.bf16.mxu0 %v6138_v33  ;;  %3370 = vmatpush1.bf16.msra.mxu0 %v6199_v62  ;;  %v6637_v33 = vld [vmem:[%s8492_s2 + $0xf0] sm:$0xff]  }
  0x89   : > { %3371 = vmatprep.subr.bf16.mxu0 %v8496_v1  ;;  %5773 = vmatpush1.bf16.msra.mxu1 %v6630_v32 }
  0x8a   : > { %5758 = vmatprep.subr.bf16.mxu1 %v8496_v1 }
  0x8c   : > { %3372 = vmatpush1.bf16.msra.mxu0 %v6200_v63 }
  0x8d   : > { %3541 = vmatprep.subr.bf16.mxu0 %v8496_v1  ;;  %5774 = vmatpush1.bf16.msra.mxu1 %v6637_v33 }
  0x8e   : > { %5759 = vmatprep.subr.bf16.mxu1 %v8496_v1 }
  0x8f   : > { %739 = vmatmul.mubr.bf16.gmra.mrb[32].mxu0 %v6140_v36 }
  0x90   : > { %746 = vmatprep.mubr.bf16.mxu0 %v6141_v37 }
  0x91   : > { %5775 = vmatpush1.bf16.msra.mxu1 %v6644_v34 }
  0x92   : > { %3741 = vmatprep.subr.bf16.mxu1 %v8496_v1 }
  0x97   : > { %747 = vmatmul.mubr.bf16.gmra.mrb[36].mxu0 %v6143_v40 }
  0x98   : > { %754 = vmatprep.mubr.bf16.mxu0 %v6144_v41 }
  0x9f   : > { %755 = vmatmul.mubr.bf16.gmra.mrb[40].mxu0 %v6146_v44 }
  0xa0   : > { %762 = vmatprep.mubr.bf16.mxu0 %v6147_v45 }
  0xa7   : > { %763 = vmatmul.mubr.bf16.gmra.mrb[44].mxu0 %v6149_v48 }
  0xa8   : > { %770 = vmatprep.mubr.bf16.mxu0 %v6150_v49 }
  0xaf   : > { %771 = vmatmul.mubr.bf16.gmra.mrb[48].mxu0 %v6152_v52 }
  0xb0   : > { %778 = vmatprep.mubr.bf16.mxu0 %v6153_v53 }
  0xb7   : > { %779 = vmatmul.mubr.bf16.gmra.mrb[52].mxu0 %v6155_v56 }
  0xb8   : > { %786 = vmatprep.mubr.bf16.mxu0 %v6156_v57 }
  0xbf   : > { %787 = vmatmul.mubr.bf16.gmra.mrb[56].mxu0 %v6158_v60 }
  0xc0   : > { %794 = vmatprep.mubr.bf16.mxu0 %v6159_v61 }
  0xc7   : > { %795 = vmatmul.mubr.bf16.gmra.mrb[60].mxu0 %v6161_v0 }
  0xc8   : > { %802 = vmatprep.mubr.bf16.mxu0 %v6162_v2 }
  0xcf   : > { %803 = vmatmul.mubr.bf16.gmra.mrb[64].mxu0 %v6164_v3 }
  0xd0   : > { %810 = vmatprep.mubr.bf16.mxu0 %v6165_v4 }
  0xd7   : > { %811 = vmatmul.mubr.bf16.gmra.mrb[68].mxu0 %v6167_v5 }
  0xd8   : > { %818 = vmatprep.mubr.bf16.mxu0 %v6168_v6 }
  0xdf   : > { %819 = vmatmul.mubr.bf16.gmra.mrb[72].mxu0 %v6170_v9 }
  0xe0   : > { %826 = vmatprep.mubr.bf16.mxu0 %v6171_v10 }
  0xe7   : > { %827 = vmatmul.mubr.bf16.gmra.mrb[76].mxu0 %v6173_v13 }
  0xe8   : > { %834 = vmatprep.mubr.bf16.mxu0 %v6174_v14 }
  0xef   : > { %835 = vmatmul.mubr.bf16.gmra.mrb[80].mxu0 %v6176_v17 }
  0xf0   : > { %842 = vmatprep.mubr.bf16.mxu0 %v6177_v18 }
  0xf7   : > { %843 = vmatmul.mubr.bf16.gmra.mrb[84].mxu0 %v6179_v21 }
  0xf8   : > { %850 = vmatprep.mubr.bf16.mxu0 %v6180_v22 }
  0xff   : > { %851 = vmatmul.mubr.bf16.gmra.mrb[88].mxu0 %v6182_v26 }
 0x100   : > { %858 = vmatprep.mubr.bf16.mxu0 %v5385_v27 }
 0x107   : > { %859 = vmatmul.mubr.bf16.gmra.mrb[92].mxu0 %v5384_v30 }
 0x122   : > { %v676_v35 = vpop.f32.mrb[0].mxu0 }
 0x123   : > { %v678_v36 = vpop.f32.mrb[1].mxu0  ;;  %v866_v38 = vmax.f32 %v676_v35, 0.0 }
 0x124   : > { %v679_v37 = vpop.f32.mrb[2].mxu0 }
 0x125   : > { %v867_v39 = vmax.f32 %v679_v37, 0.0  ;;  %v681_v40 = vpop.f32.mrb[3].mxu0 }
 0x127   : > { %v913_v41 = vpack.c.bf16 %v867_v39, %v866_v38 }
 0x129   : > { %v941_v43 = vshll.u32 %v913_v41, 16  ;;  %v939_v49 = vshrl.u32 %v913_v41, 16  ;;  %v1127_v55 = vrot.slane %v913_v41, 1 }
 0x12a   : > { %v684_v42 = vpop.f32.mrb[4].mxu0 }
 0x12b   : > { %v686_v44 = vpop.f32.mrb[5].mxu0  ;;  %v868_v46 = vmax.f32 %v684_v42, 0.0  ;;  %v943_v50 = vrot.slane %v941_v43, 1  ;;  %v1594_v56 = vrot.slane %v939_v49, 2  ;;  %v1595_v57 = vrot.slane %v941_v43, 3 }
 0x12c   : > { %v687_v45 = vpop.f32.mrb[6].mxu0 }
 0x12d   : > { %v869_v47 = vmax.f32 %v687_v45, 0.0  ;;  %v689_v48 = vpop.f32.mrb[7].mxu0  ;;  %v944_v59 = vor.u32 %v943_v50, %v939_v49  ;;  %v1596_v13 = vor.u32 %v1595_v57, %v1594_v56 }
 0x12f   : > { %v914_v51 = vpack.c.bf16 %v869_v47, %v868_v46 }
 0x131   : > { %v946_v52 = vshll.u32 %v914_v51, 16  ;;  %v950_v53 = vshrl.u32 %v914_v51, 16  ;;  %v1128_v54 = vrot.slane %v914_v51, 1  ;;  %v1262_v35 = vrot.slane %v914_v51, 2 }
 0x132   : > { %v692_v58 = vpop.f32.mrb[8].mxu0 }
 0x133   : > { %v1172_v60 = vrot.slane %v950_v53, 1  ;;  %v1173_v61 = vrot.slane %v946_v52, 2  ;;  %v694_v62 = vpop.f32.mrb[9].mxu0  ;;  %v948_v63 = vrot.slane %v946_v52, 1  ;;  %v1597_v2 = vrot.slane %v950_v53, 2 }
 0x134   : > { %v695_v0 = vpop.f32.mrb[10].mxu0  ;;  %v1598_v3 = vrot.slane %v946_v52, 3  ;;  %v1129_v4 = vsel %vm1126_vm0, %v1127_v55, %v1128_v54  ;;  %v870_v5 = vmax.f32 %v692_v58, 0.0 }
 0x135   : > { %v871_v6 = vmax.f32 %v695_v0, 0.0  ;;  %v697_v9 = vpop.f32.mrb[11].mxu0  ;;  %v949_v10 = vsel %vm937_vm1, %v944_v59, %v948_v63  ;;  %v6652_v21 = vor.u32 %v1173_v61, %v1172_v60  ;;  %v952_v37 = vor.u32 %v950_v53, %v948_v63 }
 0x136   : > { %v1599_v14 = vor.u32 %v1598_v3, %v1597_v2  ;;  %v1602_v18 = vshrl.u32 %v949_v10, 16  ;;  %v1605_v27 = vshll.u32 %v949_v10, 16  ;;  %v1619_v42 = vshrl.u32 %v1129_v4, 16 }
 0x137   : > { %v6650_v17 = vpack.c.bf16 %v871_v6, %v870_v5  ;;  %v1622_v43 = vshll.u32 %v1129_v4, 16 }
 0x138   : > { %v1600_v22 = vsel %vm1308_vm2, %v1596_v13, %v1599_v14  ;;  %v1604_v41 = vrot.slane %v1602_v18, 2  ;;  %v1607_v53 = vrot.slane %v1605_v27, 3  ;;  %v6676_v63 = vrot.slane %v1619_v42, 2 }
 0x139   : > { %8600 = vst [vmem:[#allocation2_spill] sm:$0xff] %v6650_v17  ;;  %v6656_v24 = vshll.u32 %v6650_v17, 16  ;;  %v6659_v26 = vshrl.u32 %v6650_v17, 16  ;;  %v1130_v30 = vrot.slane %v6650_v17, 1  ;;  %v1263_v38 = vrot.slane %v6650_v17, 2 }
 0x13a   : > { %v700_v36 = vpop.f32.mrb[12].mxu0  ;;  %v6685_v4 = vrot.slane %v1622_v43, 3  ;;  %v1608_v6 = vor.u32 %v1607_v53, %v1604_v41 }
 0x13b   : > { %v702_v39 = vpop.f32.mrb[13].mxu0  ;;  %v956_v40 = vrot.slane %v6656_v24, 1  ;;  %v1309_v45 = vrot.slane %v6659_v26, 2  ;;  %v1310_v46 = vrot.slane %v6656_v24, 3  ;;  %v1131_v47 = vsel %vm1126_vm0, %v1128_v54, %v1130_v30 }
 0x13c   : > { %v703_v44 = vpop.f32.mrb[14].mxu0  ;;  %v6668_v48 = vsel %vm1261_vm3, %v1262_v35, %v1263_v38  ;;  %v872_v49 = vmax.f32 %v700_v36, 0.0  ;;  %v1627_v58 = vshrl.u32 %v1131_v47, 16  ;;  %v1630_v60 = vshll.u32 %v1131_v47, 16 }
 0x13d   : > { %v873_v50 = vmax.f32 %v703_v44, 0.0  ;;  %v705_v51 = vpop.f32.mrb[15].mxu0  ;;  %v957_v52 = vsel %vm937_vm1, %v952_v37, %v956_v40  ;;  %v1311_v57 = vor.u32 %v1310_v46, %v1309_v45  ;;  %v960_v10 = vor.u32 %v6659_v26, %v956_v40 }
 0x13e   : > { %v1610_v55 = vshrl.u32 %v957_v52, 16  ;;  %v1613_v56 = vshll.u32 %v957_v52, 16  ;;  %v1629_v13 = vrot.slane %v1627_v58, 2  ;;  %v1632_v27 = vrot.slane %v1630_v60, 3 }
 0x13f   : > { %v6671_v59 = vpack.c.bf16 %v873_v50, %v872_v49  ;;  %v6674_v54 = vsel %vm1308_vm2, %v1599_v14, %v1311_v57  ;;  %v1662_v36 = vshrl.u32 %v6668_v48, 16 }
 0x140   : > { %v1612_v61 = vrot.slane %v1610_v55, 2  ;;  %v1615_v62 = vrot.slane %v1613_v56, 3  ;;  %v1665_v56 = vshll.u32 %v6668_v48, 16  ;;  %v1176_v48 = vrot.slane %v6656_v24, 2 }
 0x141   : > { %8601 = vst [vmem:[#allocation3_spill] sm:$0xff] %v6671_v59  ;;  %v6679_v0 = vshll.u32 %v6671_v59, 16  ;;  %v6682_v2 = vshrl.u32 %v6671_v59, 16  ;;  %v1132_v3 = vrot.slane %v6671_v59, 1  ;;  %v1265_v35 = vrot.slane %v6671_v59, 2 }
 0x142   : > { %v708_v5 = vpop.f32.mrb[16].mxu0  ;;  %v1616_v9 = vor.u32 %v1615_v62, %v1612_v61  ;;  %v1175_v62 = vrot.slane %v6659_v26, 1 }
 0x143   : > { %v710_v14 = vpop.f32.mrb[17].mxu0  ;;  %v964_v18 = vrot.slane %v6679_v0, 1  ;;  %v1312_v42 = vrot.slane %v6682_v2, 2  ;;  %v1313_v43 = vrot.slane %v6679_v0, 3  ;;  %v1133_v40 = vsel %vm1126_vm0, %v1130_v30, %v1132_v3 }
 0x144   : > { %v711_v37 = vpop.f32.mrb[18].mxu0  ;;  %v1617_v39 = vsel %vm1308_vm2, %v1608_v6, %v1616_v9  ;;  %v874_v41 = vmax.f32 %v708_v5, 0.0  ;;  %v1636_v47 = vshrl.u32 %v1133_v40, 16  ;;  %v1639_v52 = vshll.u32 %v1133_v40, 16 }
 0x145   : > { %v875_v44 = vmax.f32 %v711_v37, 0.0  ;;  %v713_v45 = vpop.f32.mrb[19].mxu0  ;;  %3373 = vmatprep.mubr.bf16.mxu0 %v1617_v39  ;;  %v965_v46 = vsel %vm937_vm1, %v960_v10, %v964_v18  ;;  %v1314_v51 = vor.u32 %v1313_v43, %v1312_v42  ;;  %v1266_v30 = vsel %vm1261_vm3, %v1263_v38, %v1265_v35 }
 0x146   : > { %3374 = vmatmul.mubr.bf16.vlgmr.msra.gmra.mrb[96].mxu0 %v1600_v22  ;;  %v1723_v49 = vshrl.u32 %v965_v46, 16  ;;  %v1726_v50 = vshll.u32 %v965_v46, 16  ;;  %v1638_v55 = vrot.slane %v1636_v47, 2  ;;  %v1641_v22 = vrot.slane %v1639_v52, 3 }
 0x147   : > { %v6698_v53 = vpack.c.bf16 %v875_v44, %v874_v41  ;;  %3542 = vmatpush1.bf16.msra.mxu0 %v6529_v7  ;;  %v6706_v61 = vsel %vm1308_vm2, %v1311_v57, %v1314_v51  ;;  %v1625_v38 = vor.u32 %v6685_v4, %v6676_v63  ;;  %v1633_v57 = vor.u32 %v1632_v27, %v1629_v13 }
 0x148   : > { %v1725_v58 = vrot.slane %v1723_v49, 2  ;;  %v1728_v60 = vrot.slane %v1726_v50, 3  ;;  %3543 = vmatprep.subr.bf16.mxu0 %v8496_v1  ;;  %v6719_v14 = vor.u32 %v1641_v22, %v1638_v55  ;;  %v968_v39 = vor.u32 %v6682_v2, %v964_v18 }
 0x149   : > { %8602 = vst [vmem:[#allocation4_spill] sm:$0xff] %v6698_v53  ;;  %v6711_v5 = vshll.u32 %v6698_v53, 16  ;;  %v6714_v7 = vshrl.u32 %v6698_v53, 16  ;;  %v1664_v43 = vrot.slane %v1662_v36, 2  ;;  %v1667_v13 = vrot.slane %v1665_v56, 3 }
 0x14a   : > { %v716_v6 = vpop.f32.mrb[20].mxu0  ;;  %v1729_v10 = vor.u32 %v1728_v60, %v1725_v58  ;;  %v6730_v4 = vsel %vm1308_vm2, %v1633_v57, %v6719_v14  ;;  %v1673_v46 = vshll.u32 %v1266_v30, 16  ;;  %v6740_v50 = vsel %vm1308_vm2, %v1625_v38, %v1633_v57 }
 0x14b   : > { %v718_v37 = vpop.f32.mrb[21].mxu0  ;;  %v972_v26 = vrot.slane %v6711_v5, 1  ;;  %v1316_v42 = vrot.slane %v6714_v7, 2  ;;  %3544 = vmatpush1.bf16.msra.mxu0 %v6536_v8  ;;  %v1317_v24 = vrot.slane %v6711_v5, 3  ;;  %v876_v18 = vmax.f32 %v716_v6, 0.0 }
 0x14c   : > { %v719_v40 = vpop.f32.mrb[22].mxu0  ;;  %v1730_v63 = vsel %vm1308_vm2, %v1616_v9, %v1729_v10  ;;  %3545 = vmatprep.subr.bf16.mxu0 %v8496_v1  ;;  %v1670_v8 = vshrl.u32 %v1266_v30, 16  ;;  %v1134_v52 = vrot.slane %v6698_v53, 1  ;;  %v1675_v58 = vrot.slane %v1673_v46, 3 }
 0x14d   : > { %v877_v27 = vmax.f32 %v719_v40, 0.0  ;;  %v721_v41 = vpop.f32.mrb[23].mxu0  ;;  %3381 = vmatprep.mubr.bf16.mxu0 %v1730_v63  ;;  %v973_v44 = vsel %vm937_vm1, %v968_v39, %v972_v26  ;;  %v6734_v45 = vor.u32 %v1317_v24, %v1316_v42  ;;  %v1668_v60 = vor.u32 %v1667_v13, %v1664_v43 }
 0x14e   : > { %3382 = vmatmul.mubr.bf16.gmra.mrb[100].mxu0 %v6674_v54  ;;  %v1777_v36 = vshrl.u32 %v973_v44, 16  ;;  %v1780_v9 = vshll.u32 %v973_v44, 16  ;;  %v1672_v49 = vrot.slane %v1670_v8, 2  ;;  %v1135_v38 = vsel %vm1126_vm0, %v1132_v3, %v1134_v52 }
 0x14f   : > { %v6736_v47 = vpack.c.bf16 %v877_v27, %v876_v18  ;;  %3546 = vmatpush1.bf16.msra.mxu0 %v6545_v11  ;;  %v6745_v54 = vsel %vm1308_vm2, %v1314_v51, %v6734_v45  ;;  %v1177_v57 = vor.u32 %v1176_v48, %v1175_v62  ;;  %v1179_v51 = vrot.slane %v6682_v2, 1 }
 0x150   : > { %v1779_v55 = vrot.slane %v1777_v36, 2  ;;  %v1782_v56 = vrot.slane %v1780_v9, 3  ;;  %3547 = vmatprep.subr.bf16.mxu0 %v8496_v1  ;;  %v6751_v6 = vor.u32 %v1675_v58, %v1672_v49  ;;  %v1180_v37 = vrot.slane %v6679_v0, 2 }
 0x151   : > { %8603 = vst [vmem:[#allocation5_spill] sm:$0xff] %v6736_v47  ;;  %v6749_v30 = vshll.u32 %v6736_v47, 16  ;;  %v976_v42 = vor.u32 %v6714_v7, %v972_v26  ;;  %v6764_v40 = vshrl.u32 %v6736_v47, 16  ;;  %v1735_v18 = vshll.u32 %v1135_v38, 16 }
 0x152   : > { %v724_v11 = vpop.f32.mrb[24].mxu0  ;;  %v1783_v22 = vor.u32 %v1782_v56, %v1779_v55  ;;  %v6770_v2 = vsel %vm1308_vm2, %v1668_v60, %v6751_v6  ;;  %v1178_v41 = vsel %vm1171_vm4, %v6652_v21, %v1177_v57  ;;  %v6779_v44 = vor.u32 %v1180_v37, %v1179_v51 }
 0x153   : > { %v726_v39 = vpop.f32.mrb[25].mxu0  ;;  %v980_v43 = vrot.slane %v6749_v30, 1  ;;  %3548 = vmatpush1.bf16.msra.mxu0 %v6552_v12  ;;  %v878_v0 = vmax.f32 %v724_v11, 0.0  ;;  %v1732_v12 = vshrl.u32 %v1135_v38, 16  ;;  %v1737_v9 = vrot.slane %v1735_v18, 3 }
 0x154   : > { %v727_v63 = vpop.f32.mrb[26].mxu0  ;;  %v1784_v24 = vsel %vm1308_vm2, %v1729_v10, %v1783_v22  ;;  %3549 = vmatprep.subr.bf16.mxu0 %v8496_v1  ;;  %v1320_v49 = vrot.slane %v6764_v40, 2  ;;  %v1182_v21 = vsel %vm1171_vm4, %v1177_v57, %v6779_v44 }
 0x155   : > { %v879_v3 = vmax.f32 %v727_v63, 0.0  ;;  %v729_v62 = vpop.f32.mrb[27].mxu0  ;;  %3389 = vmatprep.mubr.bf16.mxu0 %v1784_v24  ;;  %v981_v48 = vsel %vm937_vm1, %v976_v42, %v980_v43  ;;  %v1734_v27 = vrot.slane %v1732_v12, 2  ;;  %v984_v11 = vor.u32 %v6764_v40, %v980_v43 }
 0x156   : > { %3390 = vmatmul.mubr.bf16.gmra.mrb[104].mxu0 %v6706_v61  ;;  %v1831_v26 = vshrl.u32 %v981_v48, 16  ;;  %v1834_v13 = vshll.u32 %v981_v48, 16  ;;  %v1645_v42 = vshrl.u32 %v1178_v41, 16  ;;  %v1656_v12 = vshll.u32 %v1182_v21, 16 }
 0x157   : > { %v6774_v10 = vpack.c.bf16 %v879_v3, %v878_v0  ;;  %3550 = vmatpush1.bf16.msra.mxu0 %v6561_v15  ;;  %v1321_v15 = vrot.slane %v6749_v30, 3  ;;  %v6787_v58 = vor.u32 %v1737_v9, %v1734_v27 }
 0x158   : > { %v1833_v8 = vrot.slane %v1831_v26, 2  ;;  %v1836_v36 = vrot.slane %v1834_v13, 3  ;;  %3551 = vmatprep.subr.bf16.mxu0 %v8496_v1  ;;  %v1647_v18 = vrot.slane %v1645_v42, 2 }
 0x159   : > { %8604 = vst [vmem:[#allocation6_spill] sm:$0xff] %v6774_v10  ;;  %v6783_v46 = vshll.u32 %v6774_v10, 16  ;;  %v6799_v39 = vsel %vm1308_vm2, %v6719_v14, %v6787_v58  ;;  %v6803_v3 = vor.u32 %v1321_v15, %v1320_v49  ;;  %v6806_v62 = vshrl.u32 %v6774_v10, 16 }
 0x15a   : > { %v732_v55 = vpop.f32.mrb[28].mxu0  ;;  %v1837_v56 = vor.u32 %v1836_v36, %v1833_v8  ;;  %v1653_v14 = vshrl.u32 %v1182_v21, 16 }
 0x15b   : > { %v734_v60 = vpop.f32.mrb[29].mxu0  ;;  %v988_v38 = vrot.slane %v6783_v46, 1  ;;  %3552 = vmatpush1.bf16.msra.mxu0 %v6568_v16  ;;  %v880_v63 = vmax.f32 %v732_v55, 0.0  ;;  %v1658_v55 = vrot.slane %v1656_v12, 3  ;;  %v1325_v42 = vrot.slane %v6783_v46, 3 }
 0x15c   : > { %v735_v51 = vpop.f32.mrb[30].mxu0  ;;  %v1838_v37 = vsel %vm1308_vm2, %v1783_v22, %v1837_v56  ;;  %3553 = vmatprep.subr.bf16.mxu0 %v8496_v1  ;;  %v1648_v22 = vshll.u32 %v1178_v41, 16  ;;  %v1267_v41 = vrot.slane %v6698_v53, 2  ;;  %v1655_v49 = vrot.slane %v1653_v14, 2 }
 0x15d   : > { %v881_v57 = vmax.f32 %v735_v51, 0.0  ;;  %v737_v24 = vpop.f32.mrb[31].mxu0  ;;  %3397 = vmatprep.mubr.bf16.mxu0 %v1838_v37  ;;  %v989_v43 = vsel %vm937_vm1, %v984_v11, %v988_v38  ;;  %v992_v21 = vor.u32 %v6806_v62, %v988_v38  ;;  %v1324_v11 = vrot.slane %v6806_v62, 2 }
 0x15e   : > { %3398 = vmatmul.mubr.bf16.gmra.mrb[108].mxu0 %v6745_v54  ;;  %v1885_v16 = vshrl.u32 %v989_v43, 16  ;;  %v1888_v0 = vshll.u32 %v989_v43, 16  ;;  %v1650_v27 = vrot.slane %v1648_v22, 3 }
 0x15f   : > { %v6808_v48 = vpack.c.bf16 %v881_v57, %v880_v63  ;;  %3554 = vmatpush1.bf16.msra.mxu0 %v6577_v19  ;;  %v6819_v19 = vsel %vm1308_vm2, %v6734_v45, %v6803_v3  ;;  %v6828_v57 = vor.u32 %v1658_v55, %v1655_v49 }
 0x160   : > { %v1887_v26 = vrot.slane %v1885_v16, 2  ;;  %v1890_v13 = vrot.slane %v1888_v0, 3  ;;  %3555 = vmatprep.subr.bf16.mxu0 %v8496_v1  ;;  %v1651_v63 = vor.u32 %v1650_v27, %v1647_v18  ;;  %v1326_v27 = vor.u32 %v1325_v42, %v1324_v11 }
 0x161   : > { %8605 = vst [vmem:[#allocation7_spill] sm:$0xff] %v6808_v48  ;;  %v6813_v8 = vshll.u32 %v6808_v48, 16 }
 0x162   : > { %v740_v36 = vpop.f32.mrb[32].mxu0  ;;  %v1891_v9 = vor.u32 %v1890_v13, %v1887_v26  ;;  %v6842_v22 = vsel %vm1308_vm2, %v1651_v63, %v6828_v57  ;;  %v8495_v13 = vrot.slane %v6736_v47, 1 }
 0x163   : > { %8606 = vst [vmem:[#allocation8_spill] sm:$0xff] %v6813_v8  ;;  %v742_v15 = vpop.f32.mrb[33].mxu0  ;;  %v996_v60 = vrot.slane %v6813_v8, 1  ;;  %3556 = vmatpush1.bf16.msra.mxu0 %v6584_v20  ;;  %v882_v45 = vmax.f32 %v740_v36, 0.0  ;;  %v1268_v20 = vsel %vm1261_vm3, %v1265_v35, %v1267_v41  ;;  %v1329_v63 = vrot.slane %v6813_v8, 3 }
 0x164   : > { %v743_v51 = vpop.f32.mrb[34].mxu0  ;;  %v1892_v37 = vsel %vm1308_vm2, %v1837_v56, %v1891_v9  ;;  %3557 = vmatprep.subr.bf16.mxu0 %v8496_v1  ;;  %v6837_v56 = vshrl.u32 %v6808_v48, 16  ;;  %v1679_v12 = vshrl.u32 %v1268_v20, 16  ;;  %v1682_v26 = vshll.u32 %v1268_v20, 16 }
 0x165   : > { %v883_v24 = vmax.f32 %v743_v51, 0.0  ;;  %v745_v43 = vpop.f32.mrb[35].mxu0  ;;  %3405 = vmatprep.mubr.bf16.mxu0 %v1892_v37  ;;  %v997_v38 = vsel %vm937_vm1, %v992_v21, %v996_v60 }
 0x166   : > { %3406 = vmatmul.mubr.bf16.gmra.mrb[112].mxu0 %v6819_v19  ;;  %v1939_v16 = vshrl.u32 %v997_v38, 16  ;;  %v1942_v0 = vshll.u32 %v997_v38, 16  ;;  %v1681_v15 = vrot.slane %v1679_v12, 2  ;;  %v1684_v21 = vrot.slane %v1682_v26, 3 }
 0x167   : > { %v6844_v14 = vpack.c.bf16 %v883_v24, %v882_v45  ;;  %3558 = vmatpush1.bf16.msra.mxu0 %v6593_v23  ;;  %v1137_v23 = vsel %vm1126_vm0, %v1134_v52, %v8495_v13  ;;  %v1000_v37 = vor.u32 %v6837_v56, %v996_v60  ;;  %v1328_v42 = vrot.slane %v6837_v56, 2 }
 0x168   : > { %v1941_v35 = vrot.slane %v1939_v16, 2  ;;  %v1944_v18 = vrot.slane %v1942_v0, 3  ;;  %3559 = vmatprep.subr.bf16.mxu0 %v8496_v1  ;;  %v6865_v43 = vsel %vm1308_vm2, %v6803_v3, %v1326_v27  ;;  %v6868_v52 = vor.u32 %v1684_v21, %v1681_v15 }
 0x169   : > { %8607 = vst [vmem:[#allocation9_spill] sm:$0xff] %v6844_v14  ;;  %v6850_v36 = vshll.u32 %v6844_v14, 16  ;;  %v1786_v0 = vshrl.u32 %v1137_v23, 16  ;;  %v6883_v15 = vshrl.u32 %v6844_v14, 16 }
 0x16a   : > { %v748_v49 = vpop.f32.mrb[36].mxu0  ;;  %v1945_v55 = vor.u32 %v1944_v18, %v1941_v35  ;;  %v6875_v3 = vsel %vm1308_vm2, %v6751_v6, %v6868_v52  ;;  %v1330_v35 = vor.u32 %v1329_v63, %v1328_v42  ;;  %v1789_v18 = vshll.u32 %v1137_v23, 16 }
 0x16b   : > { %8608 = vst [vmem:[#allocation10_spill] sm:$0xff] %v6850_v36  ;;  %v750_v51 = vpop.f32.mrb[37].mxu0  ;;  %v1004_v11 = vrot.slane %v6850_v36, 1  ;;  %3560 = vmatpush1.bf16.msra.mxu0 %v6601_v25  ;;  %v884_v60 = vmax.f32 %v748_v49, 0.0  ;;  %8609 = vst [vmem:[#allocation11_spill] sm:$0xff] %v6875_v3  ;;  %v1184_v49 = vrot.slane %v6711_v5, 2 }
 0x16c   : > { %v751_v45 = vpop.f32.mrb[38].mxu0  ;;  %v1946_v24 = vsel %vm1308_vm2, %v1891_v9, %v1945_v55  ;;  %3561 = vmatprep.subr.bf16.mxu0 %v8496_v1  ;;  %v1183_v9 = vrot.slane %v6714_v7, 1  ;;  %8611 = vst [vmem:[#allocation13_spill] sm:$0xff] %v6883_v15  ;;  %v6892_v23 = vsel %vm1308_vm2, %v1326_v27, %v1330_v35 }
 0x16d   : > { %v885_v38 = vmax.f32 %v751_v45, 0.0  ;;  %v753_v20 = vpop.f32.mrb[39].mxu0  ;;  %3413 = vmatprep.mubr.bf16.mxu0 %v1946_v24  ;;  %v1005_v16 = vsel %vm937_vm1, %v1000_v37, %v1004_v11  ;;  %v1788_v37 = vrot.slane %v1786_v0, 2  ;;  %v1791_v24 = vrot.slane %v1789_v18, 3 }
 0x16e   : > { %3414 = vmatmul.mubr.bf16.gmra.mrb[116].mxu0 %v6865_v43  ;;  %v1993_v25 = vshrl.u32 %v1005_v16, 16  ;;  %v1996_v12 = vshll.u32 %v1005_v16, 16  ;;  %v6889_v42 = vor.u32 %v1184_v49, %v1183_v9  ;;  %v1008_v5 = vor.u32 %v6883_v15, %v1004_v11 }
 0x16f   : > { %v6878_v26 = vpack.c.bf16 %v885_v38, %v884_v60  ;;  %3562 = vmatpush1.bf16.msra.mxu0 %v6609_v28  ;;  %v1332_v20 = vrot.slane %v6883_v15, 2  ;;  %v1333_v16 = vrot.slane %v6850_v36, 3  ;;  %v6901_v0 = vor.u32 %v1791_v24, %v1788_v37 }
 0x170   : > { %v1995_v21 = vrot.slane %v1993_v25, 2  ;;  %v1998_v51 = vrot.slane %v1996_v12, 3  ;;  %3563 = vmatprep.subr.bf16.mxu0 %v8496_v1 }
 0x171   : > { %8610 = vst [vmem:[#allocation12_spill] sm:$0xff] %v6878_v26  ;;  %v6887_v6 = vshll.u32 %v6878_v26, 16  ;;  %8613 = vst [vmem:[#allocation15_spill] sm:$0xff] %v6901_v0  ;;  %v6914_v49 = vsel %vm1308_vm2, %v6787_v58, %v6901_v0  ;;  %v1334_v24 = vor.u32 %v1333_v16, %v1332_v20  ;;  %v8498_v13 = vrot.slane %v6878_v26, 1 }
 0x172   : > { %v756_v7 = vpop.f32.mrb[40].mxu0  ;;  %v1999_v45 = vor.u32 %v1998_v51, %v1995_v21 }
 0x173   : > { %8612 = vst [vmem:[#allocation14_spill] sm:$0xff] %v6887_v6  ;;  %v758_v28 = vpop.f32.mrb[41].mxu0  ;;  %v1012_v63 = vrot.slane %v6887_v6, 1  ;;  %3564 = vmatpush1.bf16.msra.mxu0 %v6616_v29  ;;  %v886_v25 = vmax.f32 %v756_v7, 0.0  ;;  %v1186_v29 = vsel %vm1171_vm4, %v6779_v44, %v6889_v42  ;;  %v1337_v58 = vrot.slane %v6887_v6, 3 }
 0x174   : > { %v759_v60 = vpop.f32.mrb[42].mxu0  ;;  %v2000_v38 = vsel %vm1308_vm2, %v1945_v55, %v1999_v45  ;;  %3565 = vmatprep.subr.bf16.mxu0 %v8496_v1  ;;  %v6908_v55 = vshrl.u32 %v6878_v26, 16  ;;  %v1741_v51 = vshrl.u32 %v1186_v29, 16  ;;  %v1744_v37 = vshll.u32 %v1186_v29, 16 }
 0x175   : > { %v887_v27 = vmax.f32 %v759_v60, 0.0  ;;  %v761_v12 = vpop.f32.mrb[43].mxu0  ;;  %3421 = vmatprep.mubr.bf16.mxu0 %v2000_v38  ;;  %v1013_v11 = vsel %vm937_vm1, %v1008_v5, %v1012_v63 }
 0x176   : > { %8614 = vst [vmem:[#allocation16_spill] sm:$0xff] %v6908_v55  ;;  %3422 = vmatmul.mubr.bf16.gmra.mrb[120].mxu0 %v6892_v23  ;;  %v2047_v9 = vshrl.u32 %v1013_v11, 16  ;;  %v2050_v18 = vshll.u32 %v1013_v11, 16  ;;  %v1336_v38 = vrot.slane %v6908_v55, 2  ;;  %v1743_v20 = vrot.slane %v1741_v51, 2 }
 0x177   : > { %v6916_v21 = vpack.c.bf16 %v887_v27, %v886_v25  ;;  %3566 = vmatpush1.bf16.msra.mxu0 %v6623_v31  ;;  %v8499_v25 = vrot.slane %v6736_v47, 2  ;;  %v1016_v31 = vor.u32 %v6908_v55, %v1012_v63  ;;  %v1746_v16 = vrot.slane %v1744_v37, 3 }
 0x178   : > { %v2049_v7 = vrot.slane %v2047_v9, 2  ;;  %v2052_v44 = vrot.slane %v2050_v18, 3  ;;  %3567 = vmatprep.subr.bf16.mxu0 %v8496_v1  ;;  %v6934_v18 = vsel %vm1308_vm2, %v1330_v35, %v1334_v24  ;;  %v1338_v35 = vor.u32 %v1337_v58, %v1336_v38 }
 0x179   : > { %8615 = vst [vmem:[#allocation17_spill] sm:$0xff] %v6916_v21  ;;  %v6921_v28 = vshll.u32 %v6916_v21, 16  ;;  %v6930_v11 = vshrl.u32 %v6916_v21, 16 }
 0x17a   : > { %v764_v5 = vpop.f32.mrb[44].mxu0  ;;  %v2053_v60 = vor.u32 %v2052_v44, %v2049_v7 }
 0x17b   : > { %8616 = vst [vmem:[#allocation18_spill] sm:$0xff] %v6921_v28  ;;  %v766_v27 = vpop.f32.mrb[45].mxu0  ;;  %v1020_v12 = vrot.slane %v6921_v28, 1  ;;  %3568 = vmatpush1.bf16.msra.mxu0 %v6630_v32  ;;  %8617 = vst [vmem:[#allocation19_spill] sm:$0xff] %v6930_v11  ;;  %v888_v7 = vmax.f32 %v764_v5, 0.0  ;;  %v1146_v32 = vrot.slane %v6916_v21, 1  ;;  %v1270_v5 = vsel %vm1261_vm3, %v1267_v41, %v8499_v25 }
 0x17c   : > { %v767_v29 = vpop.f32.mrb[46].mxu0  ;;  %v2054_v9 = vsel %vm1308_vm2, %v1999_v45, %v2053_v60  ;;  %3569 = vmatprep.subr.bf16.mxu0 %v8496_v1  ;;  %v6944_v1 = vor.u32 %v1746_v16, %v1743_v20 }
 0x17d   : > { %v889_v44 = vmax.f32 %v767_v29, 0.0  ;;  %v769_v63 = vpop.f32.mrb[47].mxu0  ;;  %3429 = vmatprep.mubr.bf16.mxu0 %v2054_v9  ;;  %v1021_v27 = vsel %vm937_vm1, %v1016_v31, %v1020_v12  ;;  %v1340_v9 = vrot.slane %v6930_v11, 2 }
 0x17e   : > { %3430 = vmatmul.mubr.bf16.gmra.mrb[124].mxu0 %v6934_v18  ;;  %v2101_v51 = vshrl.u32 %v1021_v27, 16  ;;  %v2104_v37 = vshll.u32 %v1021_v27, 16  ;;  %v1341_v63 = vrot.slane %v6921_v28, 3  ;;  %v8619_v27 = vmov 0  }
 0x17f   : > { %v6941_v45 = vpack.c.bf16 %v889_v44, %v888_v7  ;;  %3570 = vmatpush1.bf16.msra.mxu0 %v6637_v33  ;;  %v1147_v33 = vsel %vm1126_vm0, %v8498_v13, %v1146_v32  ;;  %v6964_v41 = vsel %vm1308_vm2, %v6828_v57, %v6944_v1  ;;  %v6967_v44 = vsel %vm1308_vm2, %v1334_v24, %v1338_v35 }
 0x180   : > { %v2103_v31 = vrot.slane %v2101_v51, 2  ;;  %v2106_v29 = vrot.slane %v2104_v37, 3  ;;  %3571 = vmatprep.subr.bf16.mxu0 %v8619_v27  ;;  %8621 = vst [vmem:[#allocation22_spill] sm:$0xff] %v6964_v41  ;;  %v1024_v51 = vor.u32 %v6930_v11, %v1020_v12  ;;  %v1750_v13 = vshrl.u32 %v1270_v5, 16 }
 0x181   : > { %8618 = vst [vmem:[#allocation20_spill] sm:$0xff] %v6941_v45  ;;  %v6955_v38 = vshll.u32 %v6941_v45, 16  ;;  %v1148_v16 = vrot.slane %v6941_v45, 1  ;;  %v2056_v57 = vshrl.u32 %v1147_v33, 16  ;;  %v2059_v12 = vshll.u32 %v1147_v33, 16 }
 0x182   : > { %v772_v58 = vpop.f32.mrb[48].mxu0  ;;  %v2107_v20 = vor.u32 %v2106_v29, %v2103_v31  ;;  %v6973_v29 = vor.u32 %v1341_v63, %v1340_v9  ;;  %v6978_v11 = vshrl.u32 %v6941_v45, 16 }
 0x183   : > { %8620 = vst [vmem:[#allocation21_spill] sm:$0xff] %v6955_v38  ;;  %v774_v7 = vpop.f32.mrb[49].mxu0  ;;  %v1028_v37 = vrot.slane %v6955_v38, 1  ;;  %3572 = vmatpush1.bf16.msra.mxu0 %v6644_v34  ;;  %v1149_v28 = vsel %vm1126_vm0, %v1146_v32, %v1148_v16  ;;  %v890_v21 = vmax.f32 %v772_v58, 0.0  ;;  %v1753_v32 = vshll.u32 %v1270_v5, 16 }
 0x184   : > { %v775_v25 = vpop.f32.mrb[50].mxu0  ;;  %v2108_v31 = vsel %vm1308_vm2, %v2053_v60, %v2107_v20  ;;  %8622 = vst [vmem:[#allocation23_spill] sm:$0xff] %v6978_v11  ;;  %v2110_v60 = vshrl.u32 %v1149_v28, 16  ;;  %v2113_v63 = vshll.u32 %v1149_v28, 16  ;;  %v6988_v33 = vsel %vm1308_vm2, %v1338_v35, %v6973_v29 }
 0x185   : > { %v891_v7 = vmax.f32 %v775_v25, 0.0  ;;  %v777_v6 = vpop.f32.mrb[51].mxu0  ;;  %3437 = vmatprep.mubr.bf16.mxu0 %v2108_v31  ;;  %v1029_v24 = vsel %vm937_vm1, %v1024_v51, %v1028_v37  ;;  %v2058_v25 = vrot.slane %v2056_v57, 2  ;;  %v2061_v45 = vrot.slane %v2059_v12, 3 }
 0x186   : > { %3438 = vmatmul.mubr.bf16.gmra.mrb[128].mxu0 %v6967_v44  ;;  %v2155_v34 = vshrl.u32 %v1029_v24, 16  ;;  %v2158_v55 = vshll.u32 %v1029_v24, 16  ;;  %v1752_v6 = vrot.slane %v1750_v13, 2  ;;  %v1032_v28 = vor.u32 %v6978_v11, %v1028_v37 }
 0x187   : > { %v6981_v9 = vpack.c.bf16 %v891_v7, %v890_v21  ;;  %v2112_v21 = vrot.slane %v2110_v60, 2  ;;  %v1344_v5 = vrot.slane %v6978_v11, 2  ;;  %v2115_v57 = vrot.slane %v2113_v63, 3  ;;  %v8674_v53 = vld [vmem:[#allocation22_spill] sm:$0xff] }
 0x188   : > { %v2157_v36 = vrot.slane %v2155_v34, 2  ;;  %v2160_v58 = vrot.slane %v2158_v55, 3  ;;  %v1755_v34 = vrot.slane %v1753_v32, 3  ;;  %v1345_v12 = vrot.slane %v6955_v38, 3 }
 0x189   : > { %8623 = vst [vmem:[#allocation24_spill] sm:$0xff] %v6981_v9  ;;  %v6984_v31 = vshll.u32 %v6981_v9, 16  ;;  %v1150_v51 = vrot.slane %v6981_v9, 1  ;;  %v7004_v8 = vor.u32 %v2061_v45, %v2058_v25 }
 0x18a   : > { %v780_v24 = vpop.f32.mrb[52].mxu0  ;;  %v2161_v15 = vor.u32 %v2160_v58, %v2157_v36  ;;  %v6998_v36 = vshrl.u32 %v6981_v9, 16  ;;  %v7006_v38 = vor.u32 %v1755_v34, %v1752_v6 }
 0x18b   : > { %8624 = vst [vmem:[#allocation25_spill] sm:$0xff] %v6984_v31  ;;  %v782_v55 = vpop.f32.mrb[53].mxu0  ;;  %v1151_v13 = vsel %vm1126_vm0, %v1148_v16, %v1150_v51  ;;  %v1036_v7 = vrot.slane %v6984_v31, 1  ;;  %v892_v37 = vmax.f32 %v780_v24, 0.0  ;;  %8627 = vst [vmem:[#allocation28_spill] sm:$0xff] %v7004_v8  ;;  %v1349_v45 = vrot.slane %v6984_v31, 3 }
 0x18c   : > { %v783_v26 = vpop.f32.mrb[54].mxu0  ;;  %v2162_v35 = vsel %vm1308_vm2, %v2107_v20, %v2161_v15  ;;  %v2164_v41 = vshrl.u32 %v1151_v13, 16  ;;  %v2167_v0 = vshll.u32 %v1151_v13, 16  ;;  %8625 = vst [vmem:[#allocation26_spill] sm:$0xff] %v6998_v36  ;;  %v2116_v13 = vor.u32 %v2115_v57, %v2112_v21  ;;  %8628 = vst [vmem:[#allocation29_spill] sm:$0xff] %v7006_v38 }
 0x18d   : > { %v893_v60 = vmax.f32 %v783_v26, 0.0  ;;  %v785_v58 = vpop.f32.mrb[55].mxu0  ;;  %3445 = vmatprep.mubr.bf16.mxu0 %v2162_v35  ;;  %v1037_v16 = vsel %vm937_vm1, %v1032_v28, %v1036_v7  ;;  %v1348_v28 = vrot.slane %v6998_v36, 2 }
 0x18e   : > { %3446 = vmatmul.mubr.bf16.gmra.mrb[132].mxu0 %v6988_v33  ;;  %v2166_v63 = vrot.slane %v2164_v41, 2  ;;  %v2169_v32 = vrot.slane %v2167_v0, 3  ;;  %v2209_v55 = vshrl.u32 %v1037_v16, 16  ;;  %v2212_v11 = vshll.u32 %v1037_v16, 16  ;;  %v6217_v0 = vld [vmem:[%s8492_s2 + $0x100] sm:$0xff]  }
 0x18f   : > { %v7002_v20 = vpack.c.bf16 %v893_v60, %v892_v37  ;;  %v1346_v58 = vor.u32 %v1345_v12, %v1344_v5  ;;  %v7025_v57 = vsel %vm1308_vm2, %v7004_v8, %v2116_v13  ;;  %v1040_v12 = vor.u32 %v6998_v36, %v1036_v7 }
 0x190   : > { %v2170_v9 = vor.u32 %v2169_v32, %v2166_v63  ;;  %v2211_v24 = vrot.slane %v2209_v55, 2  ;;  %v2214_v26 = vrot.slane %v2212_v11, 3  ;;  %v7021_v11 = vsel %vm1308_vm2, %v6868_v52, %v7006_v38  ;;  %8631 = vst [vmem:[#allocation32_spill] sm:$0xff] %v7025_v57 }
 0x191   : > { %8626 = vst [vmem:[#allocation27_spill] sm:$0xff] %v7002_v20  ;;  %v7009_v35 = vshll.u32 %v7002_v20, 16  ;;  %v1152_v41 = vrot.slane %v7002_v20, 1  ;;  %8630 = vst [vmem:[#allocation31_spill] sm:$0xff] %v7021_v11  ;;  %v7034_v52 = vsel %vm1308_vm2, %v6973_v29, %v1346_v58 }
 0x192   : > { %v788_v25 = vpop.f32.mrb[56].mxu0  ;;  %v2171_v6 = vsel %vm1308_vm2, %v2116_v13, %v2170_v9  ;;  %v2215_v21 = vor.u32 %v2214_v26, %v2211_v24  ;;  %v7040_v26 = vor.u32 %v1349_v45, %v1348_v28  ;;  %v6219_v28 = vld [vmem:[%s8492_s2 + $0x110] sm:$0xff]  }
 0x193   : > { %8629 = vst [vmem:[#allocation30_spill] sm:$0xff] %v7009_v35  ;;  %v790_v5 = vpop.f32.mrb[57].mxu0  ;;  %3645 = vmatprep.mubr.bf16.mxu1 %v2171_v6  ;;  %v1153_v34 = vsel %vm1126_vm0, %v1150_v51, %v1152_v41  ;;  %v1044_v37 = vrot.slane %v7009_v35, 1  ;;  %v894_v55 = vmax.f32 %v788_v25, 0.0  ;;  %v6218_v51 = vld [vmem:[%s8492_s2 + $0x108] sm:$0xff]  }
 0x194   : > { %v791_v60 = vpop.f32.mrb[58].mxu0  ;;  %3646 = vmatmul.mubr.bf16.vlgmr.msra.gmra.mrb[0].mxu1 %v7025_v57  ;;  %v2216_v16 = vsel %vm1308_vm2, %v2161_v15, %v2215_v21  ;;  %v2218_v63 = vshrl.u32 %v1153_v34, 16  ;;  %v2221_v32 = vshll.u32 %v1153_v34, 16 }
 0x195   : > { %v895_v13 = vmax.f32 %v791_v60, 0.0  ;;  %3742 = vmatpush1.bf16.msra.mxu1 %v6217_v0  ;;  %v793_v24 = vpop.f32.mrb[59].mxu0  ;;  %3453 = vmatprep.mubr.bf16.mxu0 %v2216_v16  ;;  %v1045_v7 = vsel %vm937_vm1, %v1040_v12, %v1044_v37  ;;  %v7045_v0 = vshrl.u32 %v7002_v20, 16 }
 0x196   : > { %3454 = vmatmul.mubr.bf16.gmra.mrb[136].mxu0 %v7034_v52  ;;  %3743 = vmatprep.subr.bf16.mxu1 %v8619_v27  ;;  %v2220_v15 = vrot.slane %v2218_v63, 2  ;;  %v2223_v29 = vrot.slane %v2221_v32, 3  ;;  %v2263_v5 = vshrl.u32 %v1045_v7, 16  ;;  %v2266_v25 = vshll.u32 %v1045_v7, 16 }
 0x197   : > { %8632 = vst [vmem:[#allocation33_spill] sm:$0xff] %v7045_v0  ;;  %v7047_v34 = vpack.c.bf16 %v895_v13, %v894_v55  ;;  %v7059_v55 = vsel %vm1308_vm2, %v1346_v58, %v7040_v26  ;;  %v1353_v58 = vrot.slane %v7009_v35, 3 }
 0x198   : > { %v2224_v60 = vor.u32 %v2223_v29, %v2220_v15  ;;  %v2265_v16 = vrot.slane %v2263_v5, 2  ;;  %v2268_v24 = vrot.slane %v2266_v25, 3  ;;  %v1048_v15 = vor.u32 %v7045_v0, %v1044_v37 }
 0x199   : > { %8633 = vst [vmem:[#allocation34_spill] sm:$0xff] %v7047_v34  ;;  %v7050_v12 = vshll.u32 %v7047_v34, 16  ;;  %3744 = vmatpush1.bf16.msra.mxu1 %v6218_v51  ;;  %v1154_v45 = vrot.slane %v7047_v34, 1  ;;  %v1352_v5 = vrot.slane %v7045_v0, 2  ;;  %v7069_v57 = vshrl.u32 %v7047_v34, 16 }
 0x19a   : > { %v796_v63 = vpop.f32.mrb[60].mxu0  ;;  %v2225_v32 = vsel %vm1308_vm2, %v2170_v9, %v2224_v60  ;;  %v2269_v7 = vor.u32 %v2268_v24, %v2265_v16  ;;  %3745 = vmatprep.subr.bf16.mxu1 %v8619_v27 }
 0x19b   : > { %8634 = vst [vmem:[#allocation35_spill] sm:$0xff] %v7050_v12  ;;  %v798_v13 = vpop.f32.mrb[61].mxu0  ;;  %3653 = vmatprep.mubr.bf16.mxu1 %v2225_v32  ;;  %v1155_v51 = vsel %vm1126_vm0, %v1152_v41, %v1154_v45  ;;  %v1052_v29 = vrot.slane %v7050_v12, 1  ;;  %8635 = vst [vmem:[#allocation36_spill] sm:$0xff] %v7069_v57 }
 0x19c   : > { %v799_v25 = vpop.f32.mrb[62].mxu0  ;;  %3654 = vmatmul.mubr.bf16.gmra.mrb[4].mxu1 %v2171_v6  ;;  %v2270_v9 = vsel %vm1308_vm2, %v2215_v21, %v2269_v7  ;;  %v2272_v16 = vshrl.u32 %v1155_v51, 16  ;;  %v2275_v24 = vshll.u32 %v1155_v51, 16  ;;  %v896_v13 = vmax.f32 %v796_v63, 0.0  ;;  %v6220_v6 = vld [vmem:[%s8492_s2 + $0x118] sm:$0xff]  }
 0x19d   : > { %v897_v8 = vmax.f32 %v799_v25, 0.0  ;;  %v801_v41 = vpop.f32.mrb[63].mxu0  ;;  %3461 = vmatprep.mubr.bf16.mxu0 %v2270_v9  ;;  %3746 = vmatpush1.bf16.msra.mxu1 %v6219_v28  ;;  %v1053_v37 = vsel %vm937_vm1, %v1048_v15, %v1052_v29  ;;  %v1354_v28 = vor.u32 %v1353_v58, %v1352_v5  ;;  %v1056_v5 = vor.u32 %v7069_v57, %v1052_v29 }
 0x19e   : > { %3462 = vmatmul.mubr.bf16.gmra.mrb[140].mxu0 %v7059_v55  ;;  %v2274_v21 = vrot.slane %v2272_v16, 2  ;;  %v2277_v51 = vrot.slane %v2275_v24, 3  ;;  %v2317_v0 = vshrl.u32 %v1053_v37, 16  ;;  %v2320_v35 = vshll.u32 %v1053_v37, 16  ;;  %3747 = vmatprep.subr.bf16.mxu1 %v8619_v27  ;;  %v6221_v16 = vld [vmem:[%s8492_s2 + $0x120] sm:$0xff]  }
 0x19f   : > { %v7077_v34 = vpack.c.bf16 %v897_v8, %v896_v13  ;;  %v1356_v8 = vrot.slane %v7069_v57, 2  ;;  %v1357_v13 = vrot.slane %v7050_v12, 3 }
 0x1a0   : > { %v2278_v63 = vor.u32 %v2277_v51, %v2274_v21  ;;  %v2319_v25 = vrot.slane %v2317_v0, 2  ;;  %v2322_v9 = vrot.slane %v2320_v35, 3 }
 0x1a1   : > { %8636 = vst [vmem:[#allocation37_spill] sm:$0xff] %v7077_v34  ;;  %v7080_v15 = vshll.u32 %v7077_v34, 16  ;;  %3748 = vmatpush1.bf16.msra.mxu1 %v6220_v6  ;;  %v1156_v41 = vrot.slane %v7077_v34, 1 }
 0x1a2   : > { %v804_v24 = vpop.f32.mrb[64].mxu0  ;;  %v2279_v37 = vsel %vm1308_vm2, %v2224_v60, %v2278_v63  ;;  %v2323_v20 = vor.u32 %v2322_v9, %v2319_v25  ;;  %3749 = vmatprep.subr.bf16.mxu1 %v8619_v27  ;;  %v7096_v60 = vsel %vm1308_vm2, %v7040_v26, %v1354_v28  ;;  %v7099_v9 = vshrl.u32 %v7077_v34, 16 }
 0x1a3   : > { %8637 = vst [vmem:[#allocation38_spill] sm:$0xff] %v7080_v15  ;;  %v806_v35 = vpop.f32.mrb[65].mxu0  ;;  %3661 = vmatprep.mubr.bf16.mxu1 %v2279_v37  ;;  %v1157_v0 = vsel %vm1126_vm0, %v1154_v45, %v1156_v41  ;;  %v1060_v58 = vrot.slane %v7080_v15, 1  ;;  %v898_v45 = vmax.f32 %v804_v24, 0.0  ;;  %v7109_v24 = vor.u32 %v1357_v13, %v1356_v8 }
 0x1a4   : > { %v807_v6 = vpop.f32.mrb[66].mxu0  ;;  %3662 = vmatmul.mubr.bf16.gmra.mrb[8].mxu1 %v2225_v32  ;;  %v2324_v21 = vsel %vm1308_vm2, %v2269_v7, %v2323_v20  ;;  %v2326_v51 = vshrl.u32 %v1157_v0, 16  ;;  %v2329_v25 = vshll.u32 %v1157_v0, 16  ;;  %8638 = vst [vmem:[#allocation39_spill] sm:$0xff] %v7099_v9  ;;  %v6222_v32 = vld [vmem:[%s8492_s2 + $0x128] sm:$0xff]   ;;  %v1360_v8 = vrot.slane %v7099_v9, 2 }
 0x1a5   : > { %v899_v35 = vmax.f32 %v807_v6, 0.0  ;;  %v809_v29 = vpop.f32.mrb[67].mxu0  ;;  %3469 = vmatprep.mubr.bf16.mxu0 %v2324_v21  ;;  %3750 = vmatpush1.bf16.msra.mxu1 %v6221_v16  ;;  %v1061_v12 = vsel %vm937_vm1, %v1056_v5, %v1060_v58  ;;  %v7123_v13 = vsel %vm1308_vm2, %v1354_v28, %v7109_v24 }
 0x1a6   : > { %3470 = vmatmul.mubr.bf16.gmra.mrb[144].mxu0 %v7096_v60  ;;  %v2328_v26 = vrot.slane %v2326_v51, 2  ;;  %v2331_v7 = vrot.slane %v2329_v25, 3  ;;  %v2371_v57 = vshrl.u32 %v1061_v12, 16  ;;  %v2374_v0 = vshll.u32 %v1061_v12, 16  ;;  %3751 = vmatprep.subr.bf16.mxu1 %v8619_v27  ;;  %v6223_v51 = vld [vmem:[%s8492_s2 + $0x130] sm:$0xff]  }
 0x1a7   : > { %v7107_v34 = vpack.c.bf16 %v899_v35, %v898_v45 }
 0x1a8   : > { %v2332_v6 = vor.u32 %v2331_v7, %v2328_v26  ;;  %v2373_v16 = vrot.slane %v2371_v57, 2  ;;  %v2376_v21 = vrot.slane %v2374_v0, 3 }
 0x1a9   : > { %8639 = vst [vmem:[#allocation40_spill] sm:$0xff] %v7107_v34  ;;  %v7112_v5 = vshll.u32 %v7107_v34, 16  ;;  %3752 = vmatpush1.bf16.msra.mxu1 %v6222_v32  ;;  %v1158_v29 = vrot.slane %v7107_v34, 1  ;;  %v1064_v32 = vor.u32 %v7099_v9, %v1060_v58 }
 0x1aa   : > { %v812_v12 = vpop.f32.mrb[68].mxu0  ;;  %v2333_v25 = vsel %vm1308_vm2, %v2278_v63, %v2332_v6  ;;  %v2377_v45 = vor.u32 %v2376_v21, %v2373_v16  ;;  %3753 = vmatprep.subr.bf16.mxu1 %v8619_v27  ;;  %v1361_v21 = vrot.slane %v7080_v15, 3 }
 0x1ab   : > { %8640 = vst [vmem:[#allocation41_spill] sm:$0xff] %v7112_v5  ;;  %v814_v57 = vpop.f32.mrb[69].mxu0  ;;  %3669 = vmatprep.mubr.bf16.mxu1 %v2333_v25  ;;  %v1159_v35 = vsel %vm1126_vm0, %v1156_v41, %v1158_v29  ;;  %v1068_v26 = vrot.slane %v7112_v5, 1  ;;  %v900_v31 = vmax.f32 %v812_v12, 0.0 }
 0x1ac   : > { %v815_v7 = vpop.f32.mrb[70].mxu0  ;;  %3670 = vmatmul.mubr.bf16.gmra.mrb[12].mxu1 %v2279_v37  ;;  %v2378_v63 = vsel %vm1308_vm2, %v2323_v20, %v2377_v45  ;;  %v2380_v0 = vshrl.u32 %v1159_v35, 16  ;;  %v2383_v16 = vshll.u32 %v1159_v35, 16  ;;  %v7131_v57 = vshrl.u32 %v7107_v34, 16  ;;  %v6224_v37 = vld [vmem:[%s8492_s2 + $0x138] sm:$0xff]  }
 0x1ad   : > { %v901_v28 = vmax.f32 %v815_v7, 0.0  ;;  %v817_v36 = vpop.f32.mrb[71].mxu0  ;;  %3477 = vmatprep.mubr.bf16.mxu0 %v2378_v63  ;;  %v1069_v41 = vsel %vm937_vm1, %v1064_v32, %v1068_v26  ;;  %3754 = vmatpush1.bf16.msra.mxu1 %v6223_v51  ;;  %v1362_v63 = vor.u32 %v1361_v21, %v1360_v8 }
 0x1ae   : > { %8641 = vst [vmem:[#allocation42_spill] sm:$0xff] %v7131_v57  ;;  %3478 = vmatmul.mubr.bf16.gmra.mrb[148].mxu0 %v7123_v13  ;;  %v2382_v20 = vrot.slane %v2380_v0, 2  ;;  %v2385_v58 = vrot.slane %v2383_v16, 3  ;;  %v2425_v35 = vshrl.u32 %v1069_v41, 16  ;;  %v2428_v15 = vshll.u32 %v1069_v41, 16  ;;  %3755 = vmatprep.subr.bf16.mxu1 %v8619_v27  ;;  %v6225_v0 = vld [vmem:[%s8492_s2 + $0x140] sm:$0xff]  }
 0x1af   : > { %v7139_v34 = vpack.c.bf16 %v901_v28, %v900_v31  ;;  %v1364_v31 = vrot.slane %v7131_v57, 2  ;;  %v1072_v21 = vor.u32 %v7131_v57, %v1068_v26 }
 0x1b0   : > { %v2386_v12 = vor.u32 %v2385_v58, %v2382_v20  ;;  %v2427_v36 = vrot.slane %v2425_v35, 2  ;;  %v2430_v7 = vrot.slane %v2428_v15, 3 }
 0x1b1   : > { %8642 = vst [vmem:[#allocation43_spill] sm:$0xff] %v7139_v34  ;;  %v7142_v51 = vshll.u32 %v7139_v34, 16  ;;  %v1160_v32 = vrot.slane %v7139_v34, 1  ;;  %3756 = vmatpush1.bf16.msra.mxu1 %v6224_v37  ;;  %v1365_v37 = vrot.slane %v7112_v5, 3 }
 0x1b2   : > { %v820_v16 = vpop.f32.mrb[72].mxu0  ;;  %v2387_v41 = vsel %vm1308_vm2, %v2332_v6, %v2386_v12  ;;  %v2431_v9 = vor.u32 %v2430_v7, %v2427_v36  ;;  %3757 = vmatprep.subr.bf16.mxu1 %v8619_v27  ;;  %v7158_v6 = vsel %vm1308_vm2, %v7109_v24, %v1362_v63  ;;  %v7161_v7 = vshrl.u32 %v7139_v34, 16 }
 0x1b3   : > { %8643 = vst [vmem:[#allocation44_spill] sm:$0xff] %v7142_v51  ;;  %v822_v15 = vpop.f32.mrb[73].mxu0  ;;  %3677 = vmatprep.mubr.bf16.mxu1 %v2387_v41  ;;  %v1161_v8 = vsel %vm1126_vm0, %v1158_v29, %v1160_v32  ;;  %v1076_v28 = vrot.slane %v7142_v51, 1  ;;  %v902_v29 = vmax.f32 %v820_v16, 0.0  ;;  %v7171_v16 = vor.u32 %v1365_v37, %v1364_v31 }
 0x1b4   : > { %v823_v20 = vpop.f32.mrb[74].mxu0  ;;  %3678 = vmatmul.mubr.bf16.gmra.mrb[16].mxu1 %v2333_v25  ;;  %v2432_v58 = vsel %vm1308_vm2, %v2377_v45, %v2431_v9  ;;  %v2434_v35 = vshrl.u32 %v1161_v8, 16  ;;  %v2437_v36 = vshll.u32 %v1161_v8, 16  ;;  %8644 = vst [vmem:[#allocation45_spill] sm:$0xff] %v7161_v7  ;;  %v6226_v25 = vld [vmem:[%s8492_s2 + $0x148] sm:$0xff]   ;;  %v1368_v37 = vrot.slane %v7161_v7, 2 }
 0x1b5   : > { %v903_v15 = vmax.f32 %v823_v20, 0.0  ;;  %v825_v26 = vpop.f32.mrb[75].mxu0  ;;  %3485 = vmatprep.mubr.bf16.mxu0 %v2432_v58  ;;  %v1077_v57 = vsel %vm937_vm1, %v1072_v21, %v1076_v28  ;;  %3758 = vmatpush1.bf16.msra.mxu1 %v6225_v0 }
 0x1b6   : > { %3486 = vmatmul.mubr.bf16.gmra.mrb[152].mxu0 %v7158_v6  ;;  %v2436_v24 = vrot.slane %v2434_v35, 2  ;;  %v2439_v45 = vrot.slane %v2437_v36, 3  ;;  %v2479_v5 = vshrl.u32 %v1077_v57, 16  ;;  %v2482_v8 = vshll.u32 %v1077_v57, 16  ;;  %3759 = vmatprep.subr.bf16.mxu1 %v8619_v27  ;;  %v6227_v35 = vld [vmem:[%s8492_s2 + $0x150] sm:$0xff]  }
 0x1b7   : > { %v7169_v34 = vpack.c.bf16 %v903_v15, %v902_v29  ;;  %v1187_v57 = vrot.slane %v6764_v40, 1  ;;  %v1080_v40 = vor.u32 %v7161_v7, %v1076_v28 }
 0x1b8   : > { %v2440_v20 = vor.u32 %v2439_v45, %v2436_v24  ;;  %v2481_v58 = vrot.slane %v2479_v5, 2  ;;  %v2484_v21 = vrot.slane %v2482_v8, 3  ;;  %v1188_v5 = vrot.slane %v6749_v30, 2 }
 0x1b9   : > { %8645 = vst [vmem:[#allocation46_spill] sm:$0xff] %v7169_v34  ;;  %v7174_v0 = vshll.u32 %v7169_v34, 16  ;;  %v1162_v26 = vrot.slane %v7169_v34, 1  ;;  %3760 = vmatpush1.bf16.msra.mxu1 %v6226_v25  ;;  %v7187_v25 = vsel %vm1308_vm2, %v1362_v63, %v7171_v16  ;;  %v1369_v30 = vrot.slane %v7142_v51, 3 }
 0x1ba   : > { %v828_v36 = vpop.f32.mrb[76].mxu0  ;;  %v2441_v29 = vsel %vm1308_vm2, %v2386_v12, %v2440_v20  ;;  %v2485_v31 = vor.u32 %v2484_v21, %v2481_v58  ;;  %3761 = vmatprep.subr.bf16.mxu1 %v8619_v27  ;;  %8647 = vst [vmem:[#allocation48_spill] sm:$0xff] %v7187_v25 }
 0x1bb   : > { %8646 = vst [vmem:[#allocation47_spill] sm:$0xff] %v7174_v0  ;;  %v830_v15 = vpop.f32.mrb[77].mxu0  ;;  %3685 = vmatprep.mubr.bf16.mxu1 %v2441_v29  ;;  %v1163_v24 = vsel %vm1126_vm0, %v1160_v32, %v1162_v26  ;;  %v1084_v45 = vrot.slane %v7174_v0, 1  ;;  %v904_v38 = vmax.f32 %v828_v36, 0.0 }
 0x1bc   : > { %v831_v12 = vpop.f32.mrb[78].mxu0  ;;  %3686 = vmatmul.mubr.bf16.gmra.mrb[20].mxu1 %v2387_v41  ;;  %v2486_v8 = vsel %vm1308_vm2, %v2431_v9, %v2485_v31  ;;  %v2488_v58 = vshrl.u32 %v1163_v24, 16  ;;  %v2491_v21 = vshll.u32 %v1163_v24, 16  ;;  %v7195_v15 = vshrl.u32 %v7169_v34, 16  ;;  %v6228_v41 = vld [vmem:[%s8492_s2 + $0x158] sm:$0xff]  }
 0x1bd   : > { %v905_v63 = vmax.f32 %v831_v12, 0.0  ;;  %v833_v11 = vpop.f32.mrb[79].mxu0  ;;  %3493 = vmatprep.mubr.bf16.mxu0 %v2486_v8  ;;  %v1085_v32 = vsel %vm937_vm1, %v1080_v40, %v1084_v45  ;;  %3762 = vmatpush1.bf16.msra.mxu1 %v6227_v35  ;;  %v1370_v8 = vor.u32 %v1369_v30, %v1368_v37 }
 0x1be   : > { %8648 = vst [vmem:[#allocation49_spill] sm:$0xff] %v7195_v15  ;;  %3494 = vmatmul.mubr.bf16.gmra.mrb[156].mxu0 %v7187_v25  ;;  %v2490_v9 = vrot.slane %v2488_v58, 2  ;;  %v2493_v28 = vrot.slane %v2491_v21, 3  ;;  %v2533_v24 = vshrl.u32 %v1085_v32, 16  ;;  %v2536_v51 = vshll.u32 %v1085_v32, 16  ;;  %3763 = vmatprep.subr.bf16.mxu1 %v8619_v27  ;;  %v6229_v58 = vld [vmem:[%s8492_s2 + $0x160] sm:$0xff]  }
 0x1bf   : > { %v7203_v34 = vpack.c.bf16 %v905_v63, %v904_v38  ;;  %v1372_v38 = vrot.slane %v7195_v15, 2  ;;  %v1088_v63 = vor.u32 %v7195_v15, %v1084_v45 }
 0x1c0   : > { %v2494_v36 = vor.u32 %v2493_v28, %v2490_v9  ;;  %v2535_v11 = vrot.slane %v2533_v24, 2  ;;  %v2538_v12 = vrot.slane %v2536_v51, 3  ;;  %v7215_v51 = vor.u32 %v1188_v5, %v1187_v57 }
 0x1c1   : > { %8649 = vst [vmem:[#allocation50_spill] sm:$0xff] %v7203_v34  ;;  %v7206_v35 = vshll.u32 %v7203_v34, 16  ;;  %v1164_v40 = vrot.slane %v7203_v34, 1  ;;  %3764 = vmatpush1.bf16.msra.mxu1 %v6228_v41  ;;  %v1373_v9 = vrot.slane %v7174_v0, 3  ;;  %v7224_v24 = vsel %vm1308_vm2, %v7171_v16, %v1370_v8 }
 0x1c2   : > { %v836_v21 = vpop.f32.mrb[80].mxu0  ;;  %v2495_v32 = vsel %vm1308_vm2, %v2440_v20, %v2494_v36  ;;  %v2539_v7 = vor.u32 %v2538_v12, %v2535_v11  ;;  %3765 = vmatprep.subr.bf16.mxu1 %v8619_v27  ;;  %8651 = vst [vmem:[#allocation52_spill] sm:$0xff] %v7215_v51  ;;  %8652 = vst [vmem:[#allocation53_spill] sm:$0xff] %v7224_v24  ;;  %v7227_v11 = vshrl.u32 %v7203_v34, 16 }
 0x1c3   : > { %8650 = vst [vmem:[#allocation51_spill] sm:$0xff] %v7206_v35  ;;  %v838_v37 = vpop.f32.mrb[81].mxu0  ;;  %3693 = vmatprep.mubr.bf16.mxu1 %v2495_v32  ;;  %v1165_v30 = vsel %vm1126_vm0, %v1162_v26, %v1164_v40  ;;  %v1092_v41 = vrot.slane %v7206_v35, 1  ;;  %v906_v26 = vmax.f32 %v836_v21, 0.0  ;;  %v1374_v21 = vor.u32 %v1373_v9, %v1372_v38 }
 0x1c4   : > { %v839_v28 = vpop.f32.mrb[82].mxu0  ;;  %3694 = vmatmul.mubr.bf16.gmra.mrb[24].mxu1 %v2441_v29  ;;  %v2540_v20 = vsel %vm1308_vm2, %v2485_v31, %v2539_v7  ;;  %v2542_v57 = vshrl.u32 %v1165_v30, 16  ;;  %v2545_v5 = vshll.u32 %v1165_v30, 16  ;;  %8653 = vst [vmem:[#allocation54_spill] sm:$0xff] %v7227_v11  ;;  %v6230_v29 = vld [vmem:[%s8492_s2 + $0x168] sm:$0xff]   ;;  %v1376_v15 = vrot.slane %v7227_v11, 2 }
 0x1c5   : > { %v907_v12 = vmax.f32 %v839_v28, 0.0  ;;  %v841_v45 = vpop.f32.mrb[83].mxu0  ;;  %3501 = vmatprep.mubr.bf16.mxu0 %v2540_v20  ;;  %v1093_v37 = vsel %vm937_vm1, %v1088_v63, %v1092_v41  ;;  %3766 = vmatpush1.bf16.msra.mxu1 %v6229_v58  ;;  %v7253_v9 = vsel %vm1171_vm4, %v6889_v42, %v7215_v51 }
 0x1c6   : > { %3502 = vmatmul.mubr.bf16.gmra.mrb[160].mxu0 %v7224_v24  ;;  %v2544_v16 = vrot.slane %v2542_v57, 2  ;;  %v2547_v31 = vrot.slane %v2545_v5, 3  ;;  %v2587_v0 = vshrl.u32 %v1093_v37, 16  ;;  %v2590_v30 = vshll.u32 %v1093_v37, 16  ;;  %3767 = vmatprep.subr.bf16.mxu1 %v8619_v27  ;;  %v6231_v5 = vld [vmem:[%s8492_s2 + $0x170] sm:$0xff]  }
 0x1c7   : > { %v7235_v34 = vpack.c.bf16 %v907_v12, %v906_v26  ;;  %v1377_v57 = vrot.slane %v7206_v35, 3  ;;  %v7256_v37 = vsel %vm1308_vm2, %v1370_v8, %v1374_v21 }
 0x1c8   : > { %v2548_v28 = vor.u32 %v2547_v31, %v2544_v16  ;;  %v2589_v20 = vrot.slane %v2587_v0, 2  ;;  %v2592_v45 = vrot.slane %v2590_v30, 3  ;;  %8656 = vst [vmem:[#allocation57_spill] sm:$0xff] %v7256_v37  ;;  %v1096_v16 = vor.u32 %v7227_v11, %v1092_v41  ;;  %v6232_v41 = vld [vmem:[%s8492_s2 + $0x178] sm:$0xff]  }
 0x1c9   : > { %8654 = vst [vmem:[#allocation55_spill] sm:$0xff] %v7235_v34  ;;  %v7238_v58 = vshll.u32 %v7235_v34, 16  ;;  %v7241_v63 = vrot.slane %v7235_v34, 1  ;;  %3768 = vmatpush1.bf16.msra.mxu1 %v6230_v29  ;;  %v7263_v31 = vshrl.u32 %v7235_v34, 16 }
 0x1ca   : > { %v844_v26 = vpop.f32.mrb[84].mxu0  ;;  %v2549_v38 = vsel %vm1308_vm2, %v2494_v36, %v2548_v28  ;;  %v2593_v0 = vor.u32 %v2592_v45, %v2589_v20  ;;  %3769 = vmatprep.subr.bf16.mxu1 %v8619_v27 }
 0x1cb   : > { %8655 = vst [vmem:[#allocation56_spill] sm:$0xff] %v7238_v58  ;;  %v846_v12 = vpop.f32.mrb[85].mxu0  ;;  %3701 = vmatprep.mubr.bf16.mxu1 %v2549_v38  ;;  %v1167_v29 = vsel %vm1126_vm0, %v1164_v40, %v7241_v63  ;;  %v1100_v36 = vrot.slane %v7238_v58, 1  ;;  %8657 = vst [vmem:[#allocation58_spill] sm:$0xff] %v7263_v31  ;;  %v7267_v40 = vor.u32 %v1377_v57, %v1376_v15 }
 0x1cc   : > { %v847_v30 = vpop.f32.mrb[86].mxu0  ;;  %3702 = vmatmul.mubr.bf16.gmra.mrb[28].mxu1 %v2495_v32  ;;  %v2594_v42 = vsel %vm1308_vm2, %v2539_v7, %v2593_v0  ;;  %v2596_v20 = vshrl.u32 %v1167_v29, 16  ;;  %v2599_v45 = vshll.u32 %v1167_v29, 16  ;;  %v908_v12 = vmax.f32 %v844_v26, 0.0 }
 0x1cd   : > { %v909_v35 = vmax.f32 %v847_v30, 0.0  ;;  %v849_v8 = vpop.f32.mrb[87].mxu0  ;;  %3509 = vmatprep.mubr.bf16.mxu0 %v2594_v42  ;;  %v1101_v24 = vsel %vm937_vm1, %v1096_v16, %v1100_v36  ;;  %3770 = vmatpush1.bf16.msra.mxu1 %v6231_v5  ;;  %v1104_v29 = vor.u32 %v7263_v31, %v1100_v36  ;;  %v1795_v5 = vshrl.u32 %v7253_v9, 16 }
 0x1ce   : > { %3510 = vmatmul.mubr.bf16.gmra.mrb[164].mxu0 %v7256_v37  ;;  %v2598_v32 = vrot.slane %v2596_v20, 2  ;;  %v2601_v34 = vrot.slane %v2599_v45, 3  ;;  %v2641_v7 = vshrl.u32 %v1101_v24, 16  ;;  %v2644_v11 = vshll.u32 %v1101_v24, 16  ;;  %3771 = vmatprep.subr.bf16.mxu1 %v8619_v27 }
 0x1cf   : > { %v7274_v26 = vpack.c.bf16 %v909_v35, %v908_v12  ;;  %v2695_v30 = vshrl.u32 %v1104_v29, 16  ;;  %v2698_v42 = vshll.u32 %v1104_v29, 16  ;;  %v1380_v8 = vrot.slane %v7263_v31, 2 }
 0x1d0   : > { %v7277_v16 = vor.u32 %v2601_v34, %v2598_v32  ;;  %v2643_v15 = vrot.slane %v2641_v7, 2  ;;  %v2646_v57 = vrot.slane %v2644_v11, 3  ;;  %v1798_v20 = vshll.u32 %v7253_v9, 16 }
 0x1d1   : > { %8658 = vst [vmem:[#allocation59_spill] sm:$0xff] %v7274_v26  ;;  %3772 = vmatpush1.bf16.msra.mxu1 %v6232_v41  ;;  %v7286_v34 = vsel %vm1308_vm2, %v1374_v21, %v7267_v40  ;;  %v1169_v11 = vrot.slane %v7274_v26, 1  ;;  %v2697_v32 = vrot.slane %v2695_v30, 2  ;;  %v2700_v41 = vrot.slane %v2698_v42, 3 }
 0x1d2   : > { %v852_v24 = vpop.f32.mrb[88].mxu0  ;;  %v2603_v35 = vsel %vm1308_vm2, %v2548_v28, %v7277_v16  ;;  %v2647_v45 = vor.u32 %v2646_v57, %v2643_v15  ;;  %3941 = vmatprep.subr.bf16.mxu1 %v8619_v27  ;;  %v1381_v9 = vrot.slane %v7238_v58, 3  ;;  %v1797_v58 = vrot.slane %v1795_v5, 2 }
 0x1d3   : > { %v910_v36 = vmax.f32 %v852_v24, 0.0  ;;  %v854_v12 = vpop.f32.mrb[89].mxu0  ;;  %3709 = vmatprep.mubr.bf16.mxu1 %v2603_v35  ;;  %v1170_v29 = vsel %vm1126_vm0, %v7241_v63, %v1169_v11  ;;  %v2713_v21 = vshrl.u32 %v1169_v11, 16  ;;  %v2716_v15 = vshll.u32 %v1169_v11, 16 }
 0x1d4   : > { %v855_v7 = vpop.f32.mrb[90].mxu0  ;;  %3710 = vmatmul.mubr.bf16.gmra.mrb[32].mxu1 %v2549_v38  ;;  %v2648_v28 = vsel %vm1308_vm2, %v2593_v0, %v2647_v45  ;;  %v2701_v31 = vor.u32 %v2700_v41, %v2697_v32  ;;  %v2650_v24 = vshrl.u32 %v1170_v29, 16  ;;  %v2653_v12 = vshll.u32 %v1170_v29, 16 }
 0x1d5   : > { %v911_v57 = vmax.f32 %v855_v7, 0.0  ;;  %3517 = vmatprep.mubr.bf16.mxu0 %v2648_v28  ;;  %v857_v26 = vpop.f32.mrb[91].mxu0  ;;  %v2715_v30 = vrot.slane %v2713_v21, 2  ;;  %v2718_v42 = vrot.slane %v2716_v15, 3  ;;  %v1800_v37 = vrot.slane %v1798_v20, 3 }
 0x1d6   : > { %3518 = vmatmul.mubr.bf16.gmra.mrb[168].mxu0 %v7286_v34  ;;  %v2702_v0 = vsel %vm1308_vm2, %v2647_v45, %v2701_v31  ;;  %v2652_v51 = vrot.slane %v2650_v24, 2  ;;  %v2655_v25 = vrot.slane %v2653_v12, 3  ;;  %v7298_v11 = vor.u32 %v1381_v9, %v1380_v8 }
 0x1d7   : > { %v7295_v38 = vpack.c.bf16 %v911_v57, %v910_v36  ;;  %3525 = vmatprep.mubr.bf16.mxu0 %v2702_v0  ;;  %v2704_v32 = vshrl.u32 %v7241_v63, 16  ;;  %v2707_v26 = vshll.u32 %v7241_v63, 16  ;;  %v2719_v28 = vor.u32 %v2718_v42, %v2715_v30 }
 0x1d8   : > { %8660 = vst [vmem:[#allocation61_spill] sm:$0xff] %v7298_v11  ;;  %v2656_v7 = vor.u32 %v2655_v25, %v2652_v51  ;;  %v7304_v29 = vor.u32 %v1800_v37, %v1797_v58  ;;  %v7311_v8 = vsel %vm1308_vm2, %v7267_v40, %v7298_v11  ;;  %v1688_v40 = vshrl.u32 %v6706_v61, 16 }
 0x1d9   : > { %8659 = vst [vmem:[#allocation60_spill] sm:$0xff] %v7295_v38  ;;  %v2706_v36 = vrot.slane %v2704_v32, 2  ;;  %v2709_v9 = vrot.slane %v2707_v26, 3  ;;  %v1696_v21 = vshrl.u32 %v6745_v54, 16  ;;  %v1759_v15 = vshrl.u32 %v6819_v19, 16 }
 0x1da   : > { %v7302_v41 = vpop.f32.mrb[92].mxu0  ;;  %v2657_v20 = vsel %vm1308_vm2, %v7277_v16, %v2656_v7  ;;  %v7316_v25 = vsel %vm1308_vm2, %v6944_v1, %v7304_v29  ;;  %v2720_v58 = vsel %vm1308_vm2, %v2656_v7, %v2719_v28  ;;  %v1138_v1 = vrot.slane %v6774_v10, 1 }
 0x1db   : > { %v862_v5 = vpop.f32.mrb[93].mxu0  ;;  %3717 = vmatprep.mubr.bf16.mxu1 %v2657_v20  ;;  %v2710_v63 = vor.u32 %v2709_v9, %v2706_v36  ;;  %v1813_v24 = vshrl.u32 %v6865_v43, 16  ;;  %v1816_v12 = vshll.u32 %v6865_v43, 16  ;;  %v1867_v30 = vshrl.u32 %v6892_v23, 16 }
 0x1dc   : > { %v863_v45 = vpop.f32.mrb[94].mxu0  ;;  %3718 = vmatmul.mubr.bf16.gmra.mrb[36].mxu1 %v2603_v35  ;;  %v1691_v35 = vshll.u32 %v6706_v61, 16  ;;  %v1870_v42 = vshll.u32 %v6892_v23, 16  ;;  %v1921_v61 = vshrl.u32 %v6934_v18, 16  ;;  %v1924_v0 = vshll.u32 %v6934_v18, 16 }
 0x1dd   : > { %v864_v51 = vpop.f32.mrb[95].mxu0  ;;  %3725 = vmatprep.mubr.bf16.mxu1 %v2720_v58  ;;  %v2711_v37 = vsel %vm1308_vm2, %v7277_v16, %v2710_v63  ;;  %v1762_v16 = vshll.u32 %v6819_v19, 16  ;;  %v7345_v7 = vrot.slane %v1688_v40, 2  ;;  %v7353_v5 = vrot.slane %v1759_v15, 2 }
 0x1de   : > { %3526 = vmatmul.mubr.bf16.gmra.mrb[172].mxu0 %v7311_v8  ;;  %v7347_v43 = vrot.slane %v1691_v35, 3  ;;  %v7358_v20 = vrot.slane %v1813_v24, 2  ;;  %v7360_v45 = vrot.slane %v1816_v12, 3  ;;  %v7362_v36 = vrot.slane %v1867_v30, 2 }
 0x1df   : > { %3533 = vmatprep.mubr.bf16.mxu0 %v2701_v31  ;;  %v1699_v31 = vshll.u32 %v6745_v54, 16  ;;  %v8661_v54 = vrot.slane %v6736_v47, 1  ;;  %v7355_v18 = vrot.slane %v1762_v16, 3  ;;  %v7366_v51 = vrot.slane %v1870_v42, 3 }
 0x1e0   : > { %v7368_v58 = vrot.slane %v1921_v61, 2  ;;  %v1978_v40 = vshll.u32 %v6967_v44, 16  ;;  %v2029_v35 = vshrl.u32 %v6988_v33, 16  ;;  %v2137_v15 = vshrl.u32 %v7059_v55, 16 }
 0x1e1   : > { %v1139_v19 = vsel %vm1126_vm0, %v8661_v54, %v1138_v1  ;;  %v7351_v23 = vrot.slane %v1699_v31, 3  ;;  %v2086_v31 = vshll.u32 %v7034_v52, 16  ;;  %v1271_v16 = vrot.slane %v6774_v10, 2 }
 0x1e2   : > { %v1840_v9 = vshrl.u32 %v1139_v19, 16  ;;  %v2140_v24 = vshll.u32 %v7059_v55, 16  ;;  %v2191_v12 = vshrl.u32 %v7096_v60, 16  ;;  %v1140_v42 = vrot.slane %v6808_v48, 1 }
 0x1e3   : > { %v2245_v55 = vshrl.u32 %v7123_v13, 16  ;;  %v2248_v26 = vshll.u32 %v7123_v13, 16  ;;  %v7395_v57 = vrot.slane %v2029_v35, 2  ;;  %v6234_v13 = vld [vmem:[%s8492_s2 + $0x188] sm:$0xff]   ;;  %v2302_v10 = vshll.u32 %v7158_v6, 16 }
 0x1e4   : > { %3726 = vmatmul.mubr.bf16.gmra.mrb[40].mxu1 %v2711_v37  ;;  %v7370_v37 = vrot.slane %v1924_v0, 3  ;;  %v1842_v30 = vrot.slane %v1840_v9, 2  ;;  %v1192_v0 = vrot.slane %v6783_v46, 2  ;;  %v8662_v46 = vrot.slane %v6736_v47, 2 }
 0x1e5   : > { %3733 = vmatprep.mubr.bf16.mxu1 %v2719_v28  ;;  %v7349_v28 = vrot.slane %v1696_v21, 2  ;;  %v2032_v21 = vshll.u32 %v6988_v33, 16  ;;  %v2194_v33 = vshll.u32 %v7096_v60, 16  ;;  %v7406_v60 = vrot.slane %v2086_v31, 3 }
 0x1e6   : > { %3534 = vmatmul.mubr.bf16.gmra.mrb[176].mxu0 %v7298_v11  ;;  %v7429_v31 = vrot.slane %v2248_v26, 3 }
 0x1e7   : > { %3573 = vmatprep.mubr.bf16.mxu0 %v6730_v4  ;;  %v7397_v9 = vrot.slane %v2032_v21, 3 }
 0x1e8   : > { %8668 = vst [vmem:[#allocation67_spill] sm:$0xff] %v7429_v31 }
 0x1ec   : > { %3734 = vmatmul.mubr.bf16.gmra.mrb[44].mxu1 %v2710_v63  ;;  %v1843_v63 = vshll.u32 %v1139_v19, 16  ;;  %v7391_v19 = vrot.slane %v1978_v40, 3  ;;  %v7421_v40 = vrot.slane %v2194_v33, 3  ;;  %v1142_v33 = vrot.slane %v6844_v14, 1 }
 0x1ed   : > { %3773 = vmatprep.mubr.bf16.mxu1 %v6770_v2  ;;  %v2083_v2 = vshrl.u32 %v7034_v52, 16  ;;  %v1191_v52 = vrot.slane %v6806_v62, 1  ;;  %v1272_v62 = vsel %vm1261_vm3, %v8662_v46, %v1271_v16  ;;  %v2299_v46 = vshrl.u32 %v7158_v6, 16  ;;  %v6235_v6 = vld [vmem:[%s8492_s2 + $0x190] sm:$0xff]  }
 0x1ee   : > { %3574 = vmatmul.mubr.bf16.vlgmr.msra.gmra.mrb[96].mxu0 %v6740_v50  ;;  %v1975_v50 = vshrl.u32 %v6967_v44, 16  ;;  %v6233_v44 = vld [vmem:[%s8492_s2 + $0x180] sm:$0xff]   ;;  %v1845_v61 = vrot.slane %v1843_v63, 3  ;;  %v7408_v63 = vrot.slane %v2137_v15, 2  ;;  %8666 = vst [vmem:[#allocation65_spill] sm:$0xff] %v7421_v40  ;;  %v1804_v15 = vshrl.u32 %v1272_v62, 16 }
 0x1ef   : > { %3581 = vmatprep.mubr.bf16.mxu0 %v6799_v39  ;;  %v7399_v32 = vrot.slane %v2083_v2, 2  ;;  %v1193_v21 = vor.u32 %v1192_v0, %v1191_v52  ;;  %v7427_v2 = vrot.slane %v2245_v55, 2  ;;  %v8670_v0 = vld [vmem:[#allocation48_spill] sm:$0xff]  ;;  %v1143_v47 = vsel %vm1126_vm0, %v1140_v42, %v1142_v33  ;;  %v8691_v40 = vld [vmem:[#allocation14_spill] sm:$0xff] }
 0x1f0   : > { %v7389_v54 = vrot.slane %v1975_v50, 2  ;;  %8663 = vst [vmem:[#allocation62_spill] sm:$0xff] %v7408_v63  ;;  %v7410_v50 = vrot.slane %v2140_v24, 3  ;;  %v7425_v35 = vor.u32 %v1845_v61, %v1842_v30  ;;  %v1273_v24 = vrot.slane %v6808_v48, 2  ;;  %v8669_v61 = vld [vmem:[#allocation8_spill] sm:$0xff]  ;;  %v8671_v48 = vld [vmem:[#allocation15_spill] sm:$0xff] }
 0x1f1   : > { %8667 = vst [vmem:[#allocation66_spill] sm:$0xff] %v7427_v2  ;;  %v1195_v30 = vrot.slane %v6837_v56, 1  ;;  %v1196_v52 = vrot.slane %v8669_v61, 2  ;;  %v2353_v26 = vshrl.u32 %v8670_v0, 16  ;;  %v2356_v55 = vshll.u32 %v8670_v0, 16  ;;  %v8676_v2 = vld [vmem:[#allocation31_spill] sm:$0xff] }
 0x1f2   : > { %8664 = vst [vmem:[#allocation63_spill] sm:$0xff] %v7410_v50  ;;  %v1806_v11 = vrot.slane %v1804_v15, 2  ;;  %v1274_v0 = vsel %vm1261_vm3, %v1271_v16, %v1273_v24  ;;  %v7456_v31 = vrot.slane %v2299_v46, 2  ;;  %v7462_v16 = vrot.slane %v2302_v10, 3 }
 0x1f3   : > { %v7460_v15 = vor.u32 %v1196_v52, %v1195_v30  ;;  %v1948_v46 = vshrl.u32 %v1143_v47, 16 }
 0x1f4   : > { %3774 = vmatmul.mubr.bf16.vlgmr.msra.gmra.mrb[48].mxu1 %v6842_v22  ;;  %v7419_v22 = vrot.slane %v2191_v12, 2  ;;  %8675 = vst [vmem:[#allocation8_spill] sm:$0xff] %v7456_v31  ;;  %8677 = vst [vmem:[#allocation48_spill] sm:$0xff] %v7462_v16 }
 0x1f5   : > { %3942 = vmatpush1.bf16.msra.mxu1 %v6233_v44  ;;  %3781 = vmatprep.mubr.bf16.mxu1 %v6875_v3  ;;  %v1807_v44 = vshll.u32 %v1272_v62, 16  ;;  %v7442_v62 = vsel %vm1308_vm2, %v8671_v48, %v7425_v35 }
 0x1f6   : > { %3582 = vmatmul.mubr.bf16.gmra.mrb[100].mxu0 %v6730_v4  ;;  %v1141_v4 = vsel %vm1126_vm0, %v1138_v1, %v1140_v42  ;;  %8665 = vst [vmem:[#allocation64_spill] sm:$0xff] %v7419_v22  ;;  %3943 = vmatprep.subr.bf16.mxu1 %v8619_v27  ;;  %v1204_v22 = vrot.slane %v8691_v40, 2 }
 0x1f7   : > { %3589 = vmatprep.mubr.bf16.mxu0 %v6914_v49  ;;  %v1894_v1 = vshrl.u32 %v1141_v4, 16  ;;  %v1897_v12 = vshll.u32 %v1141_v4, 16  ;;  %v8673_v4 = vld [vmem:[#allocation53_spill] sm:$0xff]  ;;  %v1809_v48 = vrot.slane %v1807_v44, 3 }
 0x1f8   : > { %v2407_v61 = vshrl.u32 %v8673_v4, 16  ;;  %v2410_v3 = vshll.u32 %v8673_v4, 16  ;;  %v6236_v44 = vld [vmem:[%s8492_s2 + $0x198] sm:$0xff]  }
 0x1f9   : > { %3944 = vmatpush1.bf16.msra.mxu1 %v6234_v13  ;;  %v8672_v13 = vld [vmem:[#allocation52_spill] sm:$0xff]  ;;  %v1896_v17 = vrot.slane %v1894_v1, 2  ;;  %v1899_v59 = vrot.slane %v1897_v12, 3  ;;  %v7468_v1 = vrot.slane %v2353_v26, 2  ;;  %v7470_v12 = vrot.slane %v2356_v55, 3 }
 0x1fa   : > { %3945 = vmatprep.subr.bf16.mxu1 %v8619_v27  ;;  %v1194_v56 = vsel %vm1171_vm4, %v8672_v13, %v1193_v21  ;;  %v7473_v30 = vrot.slane %v2407_v61, 2  ;;  %v7475_v10 = vrot.slane %v2410_v3, 3  ;;  %v1810_v52 = vor.u32 %v1809_v48, %v1806_v11 }
 0x1fb   : > { %v1849_v13 = vshrl.u32 %v1194_v56, 16  ;;  %v1852_v4 = vshll.u32 %v1194_v56, 16  ;;  %8678 = vst [vmem:[#allocation15_spill] sm:$0xff] %v7468_v1  ;;  %8679 = vst [vmem:[#allocation52_spill] sm:$0xff] %v7470_v12  ;;  %v8682_v56 = vld [vmem:[#allocation57_spill] sm:$0xff]  ;;  %v1198_v26 = vsel %vm1171_vm4, %v1193_v21, %v7460_v15  ;;  %v8687_v21 = vld [vmem:[#allocation10_spill] sm:$0xff] }
 0x1fc   : > { %3782 = vmatmul.mubr.bf16.gmra.mrb[52].mxu1 %v8674_v53  ;;  %v1858_v53 = vshrl.u32 %v1274_v0, 16  ;;  %8680 = vst [vmem:[#allocation53_spill] sm:$0xff] %v7473_v30  ;;  %8681 = vst [vmem:[#allocation22_spill] sm:$0xff] %v7475_v10  ;;  %v8684_v30 = vld [vmem:[#allocation12_spill] sm:$0xff] }
 0x1fd   : > { %3789 = vmatprep.mubr.bf16.mxu1 %v8676_v2  ;;  %3946 = vmatpush1.bf16.msra.mxu1 %v6235_v6  ;;  %v1951_v2 = vshll.u32 %v1143_v47, 16  ;;  %v7477_v6 = vor.u32 %v1899_v59, %v1896_v17  ;;  %v1851_v16 = vrot.slane %v1849_v13, 2  ;;  %v1854_v31 = vrot.slane %v1852_v4, 3  ;;  %v6237_v17 = vld [vmem:[%s8492_s2 + $0x1a0] sm:$0xff]   ;;  %v8686_v13 = vld [vmem:[#allocation13_spill] sm:$0xff] }
 0x1fe   : > { %3590 = vmatmul.mubr.bf16.gmra.mrb[104].mxu0 %v6799_v39  ;;  %v1861_v39 = vshll.u32 %v1274_v0, 16  ;;  %3947 = vmatprep.subr.bf16.mxu1 %v8619_v27  ;;  %v2461_v0 = vshrl.u32 %v8682_v56, 16  ;;  %v1860_v55 = vrot.slane %v1858_v53, 2  ;;  %v8683_v47 = vrot.slane %v6844_v14, 2 }
 0x1ff   : > { %3597 = vmatprep.mubr.bf16.mxu0 %v7442_v62  ;;  %v8685_v3 = vrot.slane %v8684_v30, 1  ;;  %v1950_v59 = vrot.slane %v1948_v46, 2  ;;  %v1953_v48 = vrot.slane %v1951_v2, 3  ;;  %v1199_v4 = vrot.slane %v8686_v13, 1 }
 0x200   : > { %v1863_v42 = vrot.slane %v1861_v39, 3  ;;  %v1276_v61 = vsel %vm1261_vm3, %v1273_v24, %v8683_v47  ;;  %v1200_v53 = vrot.slane %v8687_v21, 2  ;;  %v8688_v39 = vld [vmem:[#allocation29_spill] sm:$0xff]  ;;  %v1903_v2 = vshrl.u32 %v1198_v26, 16 }
 0x201   : > { %3948 = vmatpush1.bf16.msra.mxu1 %v6236_v44  ;;  %v1145_v11 = vsel %vm1126_vm0, %v1142_v33, %v8685_v3  ;;  %v7497_v24 = vsel %vm1308_vm2, %v8688_v39, %v1810_v52  ;;  %v7503_v33 = vsel %vm1308_vm2, %v7425_v35, %v7477_v6  ;;  %v1906_v44 = vshll.u32 %v1198_v26, 16  ;;  %v6238_v35 = vld [vmem:[%s8492_s2 + $0x1a8] sm:$0xff]  }
 0x202   : > { %3949 = vmatprep.subr.bf16.mxu1 %v8619_v27  ;;  %8689 = vst [vmem:[#allocation57_spill] sm:$0xff] %v7497_v24  ;;  %v1912_v46 = vshrl.u32 %v1276_v61, 16  ;;  %v1915_v47 = vshll.u32 %v1276_v61, 16  ;;  %v2005_v3 = vshll.u32 %v1145_v11, 16  ;;  %v2464_v13 = vshll.u32 %v8682_v56, 16  ;;  %v8690_v56 = vld [vmem:[#allocation16_spill] sm:$0xff] }
 0x203   : > { %v2515_v21 = vshrl.u32 %v7286_v34, 16  ;;  %v1855_v39 = vor.u32 %v1854_v31, %v1851_v16  ;;  %v1864_v26 = vor.u32 %v1863_v42, %v1860_v55  ;;  %v1201_v10 = vor.u32 %v1200_v53, %v1199_v4  ;;  %v8699_v4 = vld [vmem:[#allocation18_spill] sm:$0xff] }
 0x204   : > { %3790 = vmatmul.mubr.bf16.gmra.mrb[56].mxu1 %v7316_v25  ;;  %v2002_v25 = vshrl.u32 %v1145_v11, 16  ;;  %v1277_v12 = vrot.slane %v8684_v30, 2  ;;  %v1905_v61 = vrot.slane %v1903_v2, 2  ;;  %v1908_v11 = vrot.slane %v1906_v44, 3 }
 0x205   : > { %3797 = vmatprep.mubr.bf16.mxu1 %v7497_v24  ;;  %3950 = vmatpush1.bf16.msra.mxu1 %v6237_v17  ;;  %v1954_v24 = vor.u32 %v1953_v48, %v1950_v59  ;;  %v1203_v1 = vrot.slane %v8690_v56, 1  ;;  %v1917_v31 = vrot.slane %v1915_v47, 3  ;;  %v2007_v17 = vrot.slane %v2005_v3, 3  ;;  %v6239_v59 = vld [vmem:[%s8492_s2 + $0x1b0] sm:$0xff]  }
 0x206   : > { %3598 = vmatmul.mubr.bf16.gmra.mrb[108].mxu0 %v6914_v49  ;;  %v2518_v49 = vshll.u32 %v7286_v34, 16  ;;  %3951 = vmatprep.subr.bf16.mxu1 %v8619_v27  ;;  %v1914_v34 = vrot.slane %v1912_v46, 2  ;;  %v2004_v16 = vrot.slane %v2002_v25, 2  ;;  %v7517_v50 = vrot.slane %v2461_v0, 2 }
 0x207   : > { %3605 = vmatprep.mubr.bf16.mxu0 %v7503_v33  ;;  %v7519_v63 = vrot.slane %v2464_v13, 3  ;;  %v7521_v42 = vrot.slane %v2515_v21, 2  ;;  %v1856_v40 = vsel %vm1308_vm2, %v7304_v29, %v1855_v39  ;;  %v1202_v0 = vsel %vm1171_vm4, %v7460_v15, %v1201_v10 }
 0x208   : > { %v7523_v55 = vrot.slane %v2518_v49, 3  ;;  %v8694_v53 = vrot.slane %v6844_v14, 2  ;;  %v912_v44 = vmax.f32 %v7302_v41, 0.0  ;;  %v7539_v46 = vsel %vm1308_vm2, %v1810_v52, %v1864_v26  ;;  %v8696_v52 = vld [vmem:[#allocation17_spill] sm:$0xff]  ;;  %v8705_v14 = vld [vmem:[#allocation20_spill] sm:$0xff] }
 0x209   : > { %3952 = vmatpush1.bf16.msra.mxu1 %v6238_v35  ;;  %8695 = vst [vmem:[#allocation10_spill] sm:$0xff] %v7539_v46  ;;  %v7544_v29 = vsel %vm1308_vm2, %v7477_v6, %v1954_v24  ;;  %v7546_v47 = vor.u32 %v1204_v22, %v1203_v1  ;;  %v7550_v15 = vor.u32 %v1908_v11, %v1905_v61  ;;  %v8577_v3 = vrot.slane %v8696_v52, 2  ;;  %v6240_v22 = vld [vmem:[%s8492_s2 + $0x1b8] sm:$0xff]   ;;  %v8698_v6 = vld [vmem:[#allocation19_spill] sm:$0xff] }
 0x20a   : > { %8692 = vst [vmem:[#allocation13_spill] sm:$0xff] %v7523_v55  ;;  %v1278_v2 = vsel %vm1261_vm3, %v8694_v53, %v1277_v12  ;;  %3953 = vmatprep.subr.bf16.mxu1 %v8619_v27  ;;  %v7552_v25 = vor.u32 %v1917_v31, %v1914_v34  ;;  %v7554_v41 = vor.u32 %v2007_v17, %v2004_v16  ;;  %v1957_v13 = vshrl.u32 %v1202_v0, 16  ;;  %v8703_v61 = vld [vmem:[#allocation25_spill] sm:$0xff] }
 0x20b   : > { %v1966_v21 = vshrl.u32 %v1278_v2, 16  ;;  %v1969_v49 = vshll.u32 %v1278_v2, 16  ;;  %v2569_v35 = vshrl.u32 %v7311_v8, 16  ;;  %v1389_v11 = vshrl.u32 %v7295_v38, 16 }
 0x20c   : > { %3798 = vmatmul.mubr.bf16.gmra.mrb[60].mxu1 %v1856_v40  ;;  %v1392_v56 = vshll.u32 %v7295_v38, 16  ;;  %v7567_v34 = vpack.c.bf16 %v912_v44, %v912_v44  ;;  %v1206_v31 = vsel %vm1171_vm4, %v1201_v10, %v7546_v47  ;;  %v1910_v16 = vsel %vm1308_vm2, %v1855_v39, %v7550_v15  ;;  %v6241_v10 = vld [vmem:[%s8492_s2 + $0x1c0] sm:$0xff]   ;;  %v8706_v38 = vld [vmem:[#allocation24_spill] sm:$0xff] }
 0x20d   : > { %3805 = vmatprep.mubr.bf16.mxu1 %v7539_v46  ;;  %3954 = vmatpush1.bf16.msra.mxu1 %v6239_v59  ;;  %v7575_v17 = vsel %vm1308_vm2, %v1864_v26, %v7552_v25  ;;  %v7579_v59 = vsel %vm1308_vm2, %v1954_v24, %v7554_v41  ;;  %v1280_v40 = vsel %vm1261_vm3, %v1277_v12, %v8577_v3  ;;  %v1968_v2 = vrot.slane %v1966_v21, 2  ;;  %v8700_v12 = vld [vmem:[#allocation23_spill] sm:$0xff] }
 0x20e   : > { %3606 = vmatmul.mubr.bf16.gmra.mrb[112].mxu0 %v7442_v62  ;;  %v1960_v62 = vshll.u32 %v1202_v0, 16  ;;  %3955 = vmatprep.subr.bf16.mxu1 %v8619_v27  ;;  %8697 = vst [vmem:[#allocation29_spill] sm:$0xff] %v7575_v17  ;;  %v1959_v0 = vrot.slane %v1957_v13, 2  ;;  %v1971_v44 = vrot.slane %v1969_v49, 3  ;;  %v2011_v39 = vshrl.u32 %v1206_v31, 16  ;;  %v8702_v49 = vld [vmem:[#allocation26_spill] sm:$0xff] }
 0x20f   : > { %3613 = vmatprep.mubr.bf16.mxu0 %v7544_v29  ;;  %v2014_v26 = vshll.u32 %v1206_v31, 16  ;;  %v1207_v1 = vrot.slane %v8698_v6, 1  ;;  %v1208_v24 = vrot.slane %v8699_v4, 2  ;;  %v1211_v13 = vrot.slane %v8700_v12, 1 }
 0x210   : > { %v1962_v53 = vrot.slane %v1960_v62, 3  ;;  %v8701_v62 = vld [vmem:[#allocation21_spill] sm:$0xff]  ;;  %v1216_v3 = vrot.slane %v8703_v61, 2  ;;  %v1398_v30 = vshrl.u32 %v7567_v34, 16  ;;  %v7596_v31 = vrot.slane %v2569_v35, 2  ;;  %v6242_v61 = vld [vmem:[%s8492_s2 + $0x1c8] sm:$0xff]  }
 0x211   : > { %3956 = vmatpush1.bf16.msra.mxu1 %v6240_v22  ;;  %v1212_v21 = vrot.slane %v8701_v62, 2  ;;  %v1215_v22 = vrot.slane %v8702_v49, 1  ;;  %v2020_v4 = vshrl.u32 %v1280_v40, 16  ;;  %v2023_v6 = vshll.u32 %v1280_v40, 16 }
 0x212   : > { %3957 = vmatprep.subr.bf16.mxu1 %v8619_v27  ;;  %8704 = vst [vmem:[#allocation16_spill] sm:$0xff] %v7596_v31  ;;  %v1972_v12 = vor.u32 %v1971_v44, %v1968_v2  ;;  %v1281_v62 = vrot.slane %v8705_v14, 2  ;;  %v2013_v49 = vrot.slane %v2011_v39, 2  ;;  %v2016_v35 = vrot.slane %v2014_v26, 3  ;;  %v8707_v14 = vld [vmem:[#allocation27_spill] sm:$0xff]  ;;  %v8709_v26 = vld [vmem:[#allocation28_spill] sm:$0xff] }
 0x213   : > { %v1209_v46 = vor.u32 %v1208_v24, %v1207_v1  ;;  %v7607_v48 = vrot.slane %v1389_v11, 2  ;;  %v7609_v40 = vrot.slane %v1392_v56, 3  ;;  %v7613_v2 = vrot.slane %v1398_v30, 2  ;;  %v6243_v56 = vld [vmem:[%s8492_s2 + $0x1d0] sm:$0xff]  }
 0x214   : > { %3806 = vmatmul.mubr.bf16.gmra.mrb[64].mxu1 %v1910_v16  ;;  %v1963_v16 = vor.u32 %v1962_v53, %v1959_v0  ;;  %v1213_v0 = vor.u32 %v1212_v21, %v1211_v13  ;;  %v7611_v53 = vor.u32 %v1216_v3, %v1215_v22  ;;  %v2022_v44 = vrot.slane %v2020_v4, 2  ;;  %v8711_v4 = vld [vmem:[#allocation33_spill] sm:$0xff] }
 0x215   : > { %3813 = vmatprep.mubr.bf16.mxu1 %v7575_v17  ;;  %3958 = vmatpush1.bf16.msra.mxu1 %v6241_v10  ;;  %v1283_v17 = vrot.slane %v8706_v38, 2  ;;  %v2025_v10 = vrot.slane %v2023_v6, 3  ;;  %v1285_v31 = vrot.slane %v8707_v14, 2  ;;  %v7620_v1 = vsel %vm1308_vm2, %v7552_v25, %v1972_v12 }
 0x216   : > { %3614 = vmatmul.mubr.bf16.gmra.mrb[116].mxu0 %v7503_v33  ;;  %v1401_v33 = vshll.u32 %v7567_v34, 16  ;;  %3959 = vmatprep.subr.bf16.mxu1 %v8619_v27  ;;  %8708 = vst [vmem:[#allocation14_spill] sm:$0xff] %v7620_v1  ;;  %v7625_v11 = vsel %vm1308_vm2, %v7554_v41, %v8709_v26  ;;  %v8710_v3 = vrot.slane %v8696_v52, 2  ;;  %v1964_v24 = vsel %vm1308_vm2, %v7550_v15, %v1963_v16  ;;  %v8712_v15 = vld [vmem:[#allocation30_spill] sm:$0xff] }
 0x217   : > { %3621 = vmatprep.mubr.bf16.mxu0 %v7579_v59  ;;  %v7635_v13 = vor.u32 %v2016_v35, %v2013_v49  ;;  %v1210_v25 = vsel %vm1171_vm4, %v7546_v47, %v1209_v46  ;;  %v1284_v41 = vsel %vm1261_vm3, %v1281_v62, %v1283_v17  ;;  %v1214_v21 = vsel %vm1171_vm4, %v1209_v46, %v1213_v0  ;;  %v8713_v26 = vld [vmem:[#allocation34_spill] sm:$0xff] }
 0x218   : > { %v7616_v39 = vrot.slane %v1401_v33, 3  ;;  %v1282_v30 = vsel %vm1261_vm3, %v8710_v3, %v1281_v62  ;;  %v1218_v22 = vsel %vm1171_vm4, %v1213_v0, %v7611_v53  ;;  %v1219_v6 = vrot.slane %v8711_v4, 1  ;;  %v6244_v0 = vld [vmem:[%s8492_s2 + $0x1d8] sm:$0xff]  }
 0x219   : > { %3960 = vmatpush1.bf16.msra.mxu1 %v6242_v61  ;;  %v1220_v33 = vrot.slane %v8712_v15, 2  ;;  %v7649_v47 = vor.u32 %v2025_v10, %v2022_v44  ;;  %v2074_v62 = vshrl.u32 %v1282_v30, 16  ;;  %v2077_v61 = vshll.u32 %v1282_v30, 16 }
 0x21a   : > { %3961 = vmatprep.subr.bf16.mxu1 %v8619_v27  ;;  %v1286_v49 = vsel %vm1261_vm3, %v1283_v17, %v1285_v31  ;;  %v2068_v35 = vshll.u32 %v1210_v25, 16  ;;  %v2128_v46 = vshrl.u32 %v1284_v41, 16  ;;  %v1287_v3 = vrot.slane %v8713_v26, 2 }
 0x21b   : > { %v2122_v4 = vshll.u32 %v1214_v21, 16  ;;  %v2131_v15 = vshll.u32 %v1284_v41, 16  ;;  %v2173_v14 = vshrl.u32 %v1218_v22, 16  ;;  %v2176_v44 = vshll.u32 %v1218_v22, 16  ;;  %v6245_v22 = vld [vmem:[%s8492_s2 + $0x1e0] sm:$0xff]  }
 0x21c   : > { %3814 = vmatmul.mubr.bf16.gmra.mrb[68].mxu1 %v1964_v24  ;;  %v2119_v24 = vshrl.u32 %v1214_v21, 16  ;;  %v2182_v10 = vshrl.u32 %v1286_v49, 16  ;;  %v2185_v30 = vshll.u32 %v1286_v49, 16  ;;  %v7657_v17 = vor.u32 %v1220_v33, %v1219_v6 }
 0x21d   : > { %3821 = vmatprep.mubr.bf16.mxu1 %v7620_v1  ;;  %3962 = vmatpush1.bf16.msra.mxu1 %v6243_v56  ;;  %v7663_v56 = vsel %vm1308_vm2, %v1972_v12, %v7649_v47  ;;  %v2076_v26 = vrot.slane %v2074_v62, 2  ;;  %v2079_v38 = vrot.slane %v2077_v61, 3  ;;  %v2070_v21 = vrot.slane %v2068_v35, 3 }
 0x21e   : > { %3622 = vmatmul.mubr.bf16.gmra.mrb[120].mxu0 %v7544_v29  ;;  %v2065_v29 = vshrl.u32 %v1210_v25, 16  ;;  %3963 = vmatprep.subr.bf16.mxu1 %v8619_v27  ;;  %v2018_v25 = vsel %vm1308_vm2, %v1963_v16, %v7635_v13  ;;  %8714 = vst [vmem:[#allocation19_spill] sm:$0xff] %v7663_v56  ;;  %v2130_v41 = vrot.slane %v2128_v46, 2  ;;  %v1288_v1 = vsel %vm1261_vm3, %v1285_v31, %v1287_v3 }
 0x21f   : > { %3629 = vmatprep.mubr.bf16.mxu0 %v7625_v11  ;;  %v2121_v6 = vrot.slane %v2119_v24, 2  ;;  %v2124_v33 = vrot.slane %v2122_v4, 3  ;;  %v2133_v49 = vrot.slane %v2131_v15, 3  ;;  %v2175_v16 = vrot.slane %v2173_v14, 2  ;;  %v8717_v24 = vld [vmem:[#allocation35_spill] sm:$0xff] }
 0x220   : > { %v2067_v52 = vrot.slane %v2065_v29, 2  ;;  %v2178_v12 = vrot.slane %v2176_v44, 3  ;;  %v2184_v62 = vrot.slane %v2182_v10, 2  ;;  %v2187_v61 = vrot.slane %v2185_v30, 3  ;;  %v8715_v29 = vld [vmem:[#allocation32_spill] sm:$0xff]  ;;  %v8719_v30 = vld [vmem:[#allocation37_spill] sm:$0xff] }
 0x221   : > { %3964 = vmatpush1.bf16.msra.mxu1 %v6244_v0  ;;  %v1222_v31 = vsel %vm1171_vm4, %v7611_v53, %v7657_v17  ;;  %v2236_v35 = vshrl.u32 %v1288_v1, 16  ;;  %v2239_v46 = vshll.u32 %v1288_v1, 16  ;;  %v8716_v0 = vld [vmem:[#allocation36_spill] sm:$0xff]  ;;  %v1224_v4 = vrot.slane %v8717_v24, 2  ;;  %v6246_v53 = vld [vmem:[%s8492_s2 + $0x1e8] sm:$0xff]   ;;  %v8721_v24 = vld [vmem:[#allocation38_spill] sm:$0xff] }
 0x222   : > { %3965 = vmatprep.subr.bf16.mxu1 %v8619_v27  ;;  %v1223_v14 = vrot.slane %v8716_v0, 1  ;;  %v8718_v15 = vshll.u32 %v7311_v8, 16  ;;  %v2071_v44 = vor.u32 %v2070_v21, %v2067_v52  ;;  %v2080_v10 = vor.u32 %v2079_v38, %v2076_v26 }
 0x223   : > { %v2227_v1 = vshrl.u32 %v1222_v31, 16  ;;  %v2230_v55 = vshll.u32 %v1222_v31, 16  ;;  %v7689_v8 = vor.u32 %v7609_v40, %v7607_v48  ;;  %v7693_v52 = vor.u32 %v2178_v12, %v2175_v16  ;;  %v6248_v31 = vld [vmem:[%s8492_s2 + $0x1f8] sm:$0xff]  }
 0x224   : > { %3822 = vmatmul.mubr.bf16.gmra.mrb[72].mxu1 %v2018_v25  ;;  %v8591_v25 = vrot.slane %v8719_v30, 2  ;;  %v7695_v26 = vor.u32 %v2187_v61, %v2184_v62  ;;  %v2238_v21 = vrot.slane %v2236_v35, 2  ;;  %v7697_v0 = vor.u32 %v1224_v4, %v1223_v14 }
 0x225   : > { %3829 = vmatprep.mubr.bf16.mxu1 %v7663_v56  ;;  %3966 = vmatpush1.bf16.msra.mxu1 %v6245_v22  ;;  %v2134_v56 = vor.u32 %v2133_v49, %v2130_v41  ;;  %v2241_v22 = vrot.slane %v2239_v46, 3  ;;  %v1702_v41 = vor.u32 %v7351_v23, %v7349_v28  ;;  %v7705_v48 = vsel %vm1308_vm2, %v7649_v47, %v2080_v10 }
 0x226   : > { %3630 = vmatmul.mubr.bf16.gmra.mrb[124].mxu0 %v7579_v59  ;;  %v7680_v59 = vrot.slane %v8718_v15, 3  ;;  %3967 = vmatprep.subr.bf16.mxu1 %v8619_v27  ;;  %v7710_v40 = vsel %vm1261_vm3, %v1287_v3, %v8591_v25  ;;  %v1694_v28 = vor.u32 %v7347_v43, %v7345_v7  ;;  %v2229_v47 = vrot.slane %v2227_v1, 2  ;;  %v8725_v1 = vld [vmem:[#allocation65_spill] sm:$0xff] }
 0x227   : > { %3637 = vmatprep.mubr.bf16.mxu0 %v8715_v29  ;;  %v2125_v29 = vor.u32 %v2124_v33, %v2121_v6  ;;  %v2072_v6 = vsel %vm1308_vm2, %v7635_v13, %v2071_v44  ;;  %v6247_v33 = vld [vmem:[%s8492_s2 + $0x1f0] sm:$0xff]   ;;  %v7719_v13 = vsel %vm1308_vm2, %v2080_v10, %v2134_v56  ;;  %v2232_v49 = vrot.slane %v2230_v55, 3  ;;  %v8723_v10 = vld [vmem:[#allocation63_spill] sm:$0xff] }
 0x228   : > { %v1306_v3 = vrot.slane %v7567_v34, 2  ;;  %v7730_v7 = vsel %vm1308_vm2, %v2134_v56, %v7695_v26  ;;  %v7733_v43 = vsel %vm1308_vm2, %v1694_v28, %v1702_v41  ;;  %v7736_v55 = vor.u32 %v2241_v22, %v2238_v21  ;;  %v8720_v56 = vld [vmem:[#allocation39_spill] sm:$0xff]  ;;  %v8729_v28 = vld [vmem:[#allocation48_spill] sm:$0xff] }
 0x229   : > { %3968 = vmatpush1.bf16.msra.mxu1 %v6246_v53  ;;  %v2126_v23 = vsel %vm1308_vm2, %v2071_v44, %v2125_v29  ;;  %v7726_v16 = vsel %vm1308_vm2, %v2125_v29, %v7693_v52  ;;  %v7741_v12 = vsel %vm1171_vm4, %v7657_v17, %v7697_v0  ;;  %v1227_v61 = vrot.slane %v8720_v56, 1  ;;  %v8724_v29 = vld [vmem:[#allocation64_spill] sm:$0xff] }
 0x22a   : > { %3969 = vmatprep.subr.bf16.mxu1 %v8619_v27  ;;  %v1765_v35 = vor.u32 %v7355_v18, %v7353_v5  ;;  %v1819_v17 = vor.u32 %v7360_v45, %v7358_v20  ;;  %v1873_v46 = vor.u32 %v7366_v51, %v7362_v36  ;;  %v7756_v14 = vor.u32 %v2232_v49, %v2229_v47  ;;  %v8730_v49 = vld [vmem:[#allocation15_spill] sm:$0xff] }
 0x22b   : > { %v1228_v4 = vrot.slane %v8721_v24, 2  ;;  %v1927_v15 = vor.u32 %v7370_v37, %v7368_v58  ;;  %v1981_v44 = vor.u32 %v7391_v19, %v7389_v54  ;;  %v2281_v45 = vshrl.u32 %v7741_v12, 16  ;;  %v8722_v19 = vld [vmem:[#allocation62_spill] sm:$0xff] }
 0x22c   : > { %3830 = vmatmul.mubr.bf16.gmra.mrb[76].mxu1 %v2072_v6  ;;  %v7765_v5 = vsel %vm1308_vm2, %v1702_v41, %v1765_v35  ;;  %v7768_v18 = vsel %vm1308_vm2, %v1765_v35, %v1819_v17  ;;  %v7771_v20 = vsel %vm1308_vm2, %v1819_v17, %v1873_v46  ;;  %v2035_v58 = vor.u32 %v7397_v9, %v7395_v57  ;;  %v8726_v6 = vld [vmem:[#allocation66_spill] sm:$0xff]  ;;  %v8727_v57 = vld [vmem:[#allocation67_spill] sm:$0xff]  ;;  %v8732_v17 = vld [vmem:[#allocation53_spill] sm:$0xff] }
 0x22d   : > { %3837 = vmatprep.mubr.bf16.mxu1 %v7705_v48  ;;  %3970 = vmatpush1.bf16.msra.mxu1 %v6247_v33  ;;  %v7775_v36 = vsel %vm1308_vm2, %v1873_v46, %v1927_v15  ;;  %v7778_v51 = vsel %vm1308_vm2, %v1927_v15, %v1981_v44  ;;  %v2284_v37 = vshll.u32 %v7741_v12, 16  ;;  %v2089_v54 = vor.u32 %v7406_v60, %v7399_v32  ;;  %v8728_v33 = vld [vmem:[#allocation8_spill] sm:$0xff]  ;;  %v8733_v46 = vld [vmem:[#allocation22_spill] sm:$0xff] }
 0x22e   : > { %3638 = vmatmul.mubr.bf16.gmra.mrb[128].mxu0 %v7625_v11  ;;  %3971 = vmatprep.subr.bf16.mxu1 %v8619_v27  ;;  %v2143_v53 = vor.u32 %v8723_v10, %v8722_v19  ;;  %v2197_v21 = vor.u32 %v8725_v1, %v8724_v29  ;;  %v8588_v22 = vmov 0.0   ;;  %v7791_v41 = vsel %vm1308_vm2, %v1981_v44, %v2035_v58  ;;  %v8731_v32 = vld [vmem:[#allocation52_spill] sm:$0xff]  ;;  %v8734_v19 = vld [vmem:[#allocation13_spill] sm:$0xff]  ;;  %v8736_v1 = vld [vmem:[#allocation59_spill] sm:$0xff] }
 0x22f   : > { %4660 = vmatprep.mubr.bf16.mxu0 %v8619_v27  ;;  %v2251_v9 = vor.u32 %v8727_v57, %v8726_v6  ;;  %v2305_v47 = vor.u32 %v8729_v28, %v8728_v33  ;;  %v2359_v60 = vor.u32 %v8731_v32, %v8730_v49  ;;  %v7800_v56 = vsel %vm1308_vm2, %v2035_v58, %v2089_v54  ;;  %v8742_v49 = vld [vmem:[#allocation2_spill] sm:$0xff] }
 0x230   : > { %v7806_v35 = vsel %vm1308_vm2, %v2143_v53, %v2197_v21  ;;  %v2413_v24 = vor.u32 %v8733_v46, %v8732_v17  ;;  %v2467_v58 = vor.u32 %v7519_v63, %v7517_v50  ;;  %v2521_v10 = vor.u32 %v8734_v19, %v7521_v42  ;;  %v8739_v63 = vld [vmem:[#allocation5_spill] sm:$0xff]  ;;  %v8744_v17 = vld [vmem:[#allocation4_spill] sm:$0xff] }
 0x231   : > { %3972 = vmatpush1.bf16.msra.mxu1 %v6248_v31  ;;  %v7803_v31 = vsel %vm1308_vm2, %v2089_v54, %v2143_v53  ;;  %v7812_v15 = vsel %vm1308_vm2, %v2197_v21, %v2251_v9  ;;  %v7815_v44 = vsel %vm1308_vm2, %v2251_v9, %v2305_v47  ;;  %v8735_v53 = vld [vmem:[#allocation16_spill] sm:$0xff]  ;;  %v8737_v21 = vshrl.u32 %v8736_v1, 16 }
 0x232   : > { %5644 = vmatprep.subr.bf16.mxu1 %v8588_v22  ;;  %v7823_v54 = vsel %vm1308_vm2, %v2359_v60, %v2413_v24  ;;  %v2575_v29 = vor.u32 %v7680_v59, %v8735_v53  ;;  %v7832_v57 = vsel %vm1308_vm2, %v2413_v24, %v2467_v58  ;;  %v8738_v9 = vshll.u32 %v8736_v1, 16 }
 0x233   : > { %v1384_v6 = vrot.slane %v8737_v21, 2  ;;  %v8590_v50 = vrot.slane %v8739_v63, 3  ;;  %v7838_v28 = vsel %vm1308_vm2, %v2467_v58, %v2521_v10  ;;  %v8743_v32 = vrot.slane %v8742_v49, 3 }
 0x234   : > { %3838 = vmatmul.mubr.bf16.gmra.mrb[80].mxu1 %v2126_v23  ;;  %v7818_v23 = vsel %vm1308_vm2, %v2305_v47, %v2359_v60  ;;  %v1385_v33 = vrot.slane %v8738_v9, 3  ;;  %v7841_v42 = vsel %vm1308_vm2, %v2521_v10, %v2575_v29  ;;  %v8740_v47 = vld [vmem:[#allocation3_spill] sm:$0xff]  ;;  %v8745_v46 = vrot.slane %v8744_v17, 3  ;;  %v8747_v10 = vld [vmem:[#allocation40_spill] sm:$0xff] }
 0x235   : > { %3845 = vmatprep.mubr.bf16.mxu1 %v7719_v13  ;;  %v8741_v59 = vrot.slane %v8740_v47, 3  ;;  %v7853_v22 = vor.u32 %v1228_v4, %v1227_v61  ;;  %v1291_v62 = vrot.slane %v8747_v10, 2  ;;  %v8755_v12 = vor.u32 %v7616_v39, %v7613_v2 }
 0x236   : > { %v1386_v53 = vor.u32 %v1385_v33, %v1384_v6  ;;  %v8748_v49 = vmov %v8745_v46  ;;  %v8758_v39 = vshll.u32 %v7710_v40, 16 }
 0x237   : > { %v1409_v60 = vsel %vm1406_vm5, %v8743_v32, %v8741_v59  ;;  %v8746_v24 = vmov %v8741_v59  ;;  %v1413_v59 = vsel %vm1406_vm5, %v8748_v49, %v8590_v50  ;;  %v8749_v32 = vld [vmem:[#allocation61_spill] sm:$0xff] }
 0x238   : > { %v1411_v19 = vsel %vm1406_vm5, %v8746_v24, %v8745_v46  ;;  %v1705_v21 = vshrl.u32 %v1409_v60, 16  ;;  %v1708_v9 = vshll.u32 %v1409_v60, 16  ;;  %v1387_v47 = vsel %vm1308_vm2, %v8749_v32, %v1386_v53 }
 0x239   : > { %v1713_v58 = vshrl.u32 %v1411_v19, 16  ;;  %v1716_v11 = vshll.u32 %v1411_v19, 16  ;;  %v2623_v33 = vshrl.u32 %v1387_v47, 16  ;;  %v2626_v61 = vshll.u32 %v1387_v47, 16 }
 0x23a   : > { %v1707_v38 = vrot.slane %v1705_v21, 2  ;;  %v1710_v46 = vrot.slane %v1708_v9, 3  ;;  %v1396_v4 = vsel %vm1308_vm2, %v1386_v53, %v7689_v8  ;;  %v1768_v49 = vshrl.u32 %v1413_v59, 16  ;;  %v8750_v21 = vld [vmem:[#allocation60_spill] sm:$0xff] }
 0x23b   : > { %v1715_v6 = vrot.slane %v1713_v58, 2  ;;  %v1718_v60 = vrot.slane %v1716_v11, 3  ;;  %v2677_v24 = vshrl.u32 %v1396_v4, 16  ;;  %v2680_v17 = vshll.u32 %v1396_v4, 16  ;;  %v8753_v4 = vld [vmem:[#allocation42_spill] sm:$0xff] }
 0x23c   : > { %3846 = vmatmul.mubr.bf16.gmra.mrb[0].mxu1 %v7726_v16  ;;  %v1711_v19 = vor.u32 %v1710_v46, %v1707_v38  ;;  %v2625_v50 = vrot.slane %v2623_v33, 2  ;;  %v2628_v25 = vrot.slane %v2626_v61, 3  ;;  %v8751_v9 = vrot.slane %v8750_v21, 2 }
 0x23d   : > { %3853 = vmatprep.mubr.bf16.mxu1 %v7730_v7  ;;  %v1719_v58 = vor.u32 %v1718_v60, %v1715_v6  ;;  %v2234_v11 = vsel %vm1308_vm2, %v7693_v52, %v7756_v14  ;;  %v2283_v53 = vrot.slane %v2281_v45, 2  ;;  %v2679_v32 = vrot.slane %v2677_v24, 2 }
 0x23e   : > { %v7872_v16 = vsel %vm1261_vm3, %v8751_v9, %v1306_v3  ;;  %v2682_v38 = vrot.slane %v2680_v17, 3  ;;  %v2629_v47 = vor.u32 %v2628_v25, %v2625_v50  ;;  %v1770_v33 = vrot.slane %v1768_v49, 2 }
 0x23f   : > { %v7880_v46 = vsel %vm1308_vm2, %v1711_v19, %v1719_v58  ;;  %v1771_v61 = vshll.u32 %v1413_v59, 16  ;;  %v2286_v3 = vrot.slane %v2284_v37, 3  ;;  %v1230_v6 = vsel %vm1171_vm4, %v7697_v0, %v7853_v22  ;;  %v8756_v0 = vld [vmem:[#allocation41_spill] sm:$0xff] }
 0x240   : > { %8752 = vst [vmem:[#allocation18_spill] sm:$0xff] %v7880_v46  ;;  %v1231_v52 = vrot.slane %v8753_v4, 1  ;;  %v2683_v60 = vor.u32 %v2682_v38, %v2679_v32  ;;  %v8754_v45 = vrot.slane %v8719_v30, 2  ;;  %v7894_v50 = vsel %vm1308_vm2, %v2575_v29, %v2629_v47 }
 0x241   : > { %v1405_v37 = vsel %vm1308_vm2, %v7689_v8, %v8755_v12  ;;  %v1773_v59 = vrot.slane %v1771_v61, 3  ;;  %v1232_v24 = vrot.slane %v8756_v0, 2  ;;  %v7908_v29 = vsel %vm1308_vm2, %v7695_v26, %v7736_v55 }
 0x242   : > { %v1292_v25 = vsel %vm1261_vm3, %v8754_v45, %v1291_v62  ;;  %v7903_v17 = vsel %vm1308_vm2, %v2629_v47, %v2683_v60  ;;  %v2740_v19 = vshrl.u32 %v1405_v37, 16  ;;  %v2743_v49 = vshll.u32 %v1405_v37, 16 }
 0x243   : > { %v8757_v9 = vshrl.u32 %v7710_v40, 16  ;;  %v2295_v8 = vrot.slane %v8758_v39, 3  ;;  %v7914_v32 = vor.u32 %v1773_v59, %v1770_v33  ;;  %v2287_v38 = vor.u32 %v2286_v3, %v2283_v53 }
 0x244   : > { %3854 = vmatmul.mubr.bf16.gmra.mrb[4].mxu1 %v2234_v11  ;;  %v2742_v47 = vrot.slane %v2740_v19, 2  ;;  %v2745_v61 = vrot.slane %v2743_v49, 3  ;;  %v2335_v4 = vshrl.u32 %v1230_v6, 16  ;;  %v2338_v11 = vshll.u32 %v1230_v6, 16 }
 0x245   : > { %v2292_v2 = vrot.slane %v8757_v9, 2  ;;  %8759 = vst [vmem:[#allocation23_spill] sm:$0xff] %v7914_v32  ;;  %3861 = vmatprep.mubr.bf16.mxu1 %v7908_v29  ;;  %v2344_v45 = vshrl.u32 %v1292_v25, 16  ;;  %v7919_v26 = vsel %vm1308_vm2, %v1719_v58, %v7914_v32  ;;  %v2347_v12 = vshll.u32 %v1292_v25, 16  ;;  %v8762_v9 = vld [vmem:[#allocation43_spill] sm:$0xff] }
 0x246   : > { %8760 = vst [vmem:[#allocation21_spill] sm:$0xff] %v7919_v26  ;;  %v1233_v37 = vor.u32 %v1232_v24, %v1231_v52  ;;  %v7921_v0 = vor.u32 %v2745_v61, %v2742_v47  ;;  %v1293_v33 = vrot.slane %v8762_v9, 2  ;;  %v2288_v53 = vsel %vm1308_vm2, %v7756_v14, %v2287_v38  ;;  %v8764_v52 = vld [vmem:[#allocation45_spill] sm:$0xff]  ;;  %v8765_v24 = vld [vmem:[#allocation44_spill] sm:$0xff] }
 0x247   : > { %v2296_v40 = vor.u32 %v2295_v8, %v2292_v2  ;;  %v2337_v3 = vrot.slane %v2335_v4, 2  ;;  %v2340_v6 = vrot.slane %v2338_v11, 3  ;;  %v2346_v19 = vrot.slane %v2344_v45, 2 }
 0x248   : > { %8761 = vst [vmem:[#allocation26_spill] sm:$0xff] %v7921_v0  ;;  %v7926_v59 = vsel %vm1308_vm2, %v2683_v60, %v7921_v0  ;;  %v2349_v49 = vrot.slane %v2347_v12, 3  ;;  %v1234_v58 = vsel %vm1171_vm4, %v7853_v22, %v1233_v37  ;;  %v1235_v25 = vrot.slane %v8764_v52, 1  ;;  %v8766_v60 = vld [vmem:[#allocation46_spill] sm:$0xff]  ;;  %v8767_v52 = vld [vmem:[#allocation49_spill] sm:$0xff] }
 0x249   : > { %8763 = vst [vmem:[#allocation25_spill] sm:$0xff] %v7926_v59  ;;  %v1236_v2 = vrot.slane %v8765_v24, 2  ;;  %v7936_v39 = vsel %vm1308_vm2, %v7736_v55, %v2296_v40  ;;  %v1294_v14 = vsel %vm1261_vm3, %v1291_v62, %v1293_v33  ;;  %v1295_v8 = vrot.slane %v8766_v60, 2  ;;  %v8768_v24 = vld [vmem:[#allocation47_spill] sm:$0xff] }
 0x24a   : > { %v2341_v47 = vor.u32 %v2340_v6, %v2337_v3  ;;  %v2389_v61 = vshrl.u32 %v1234_v58, 16  ;;  %v2350_v22 = vor.u32 %v2349_v49, %v2346_v19  ;;  %v2392_v4 = vshll.u32 %v1234_v58, 16 }
 0x24b   : > { %v2398_v11 = vshrl.u32 %v1294_v14, 16  ;;  %v1237_v45 = vor.u32 %v1236_v2, %v1235_v25  ;;  %v2401_v12 = vshll.u32 %v1294_v14, 16  ;;  %v1239_v55 = vrot.slane %v8767_v52, 1  ;;  %v8769_v25 = vld [vmem:[#allocation50_spill] sm:$0xff] }
 0x24c   : > { %3862 = vmatmul.mubr.bf16.gmra.mrb[8].mxu1 %v2288_v53  ;;  %v1296_v53 = vsel %vm1261_vm3, %v1293_v33, %v1295_v8  ;;  %v1240_v27 = vrot.slane %v8768_v24, 2  ;;  %v2342_v9 = vsel %vm1308_vm2, %v2287_v38, %v2341_v47  ;;  %v2391_v62 = vrot.slane %v2389_v61, 2 }
 0x24d   : > { %3869 = vmatprep.mubr.bf16.mxu1 %v7936_v39  ;;  %v7948_v10 = vsel %vm1308_vm2, %v2296_v40, %v2350_v22  ;;  %v2394_v60 = vrot.slane %v2392_v4, 3  ;;  %v2400_v3 = vrot.slane %v2398_v11, 2  ;;  %v1238_v6 = vsel %vm1171_vm4, %v1233_v37, %v1237_v45 }
 0x24e   : > { %v2403_v19 = vrot.slane %v2401_v12, 3  ;;  %v2452_v49 = vshrl.u32 %v1296_v53, 16  ;;  %v2455_v58 = vshll.u32 %v1296_v53, 16  ;;  %v1297_v33 = vrot.slane %v8769_v25, 2  ;;  %v8770_v12 = vld [vmem:[#allocation54_spill] sm:$0xff]  ;;  %v8771_v53 = vld [vmem:[#allocation51_spill] sm:$0xff] }
 0x24f   : > { %v1241_v2 = vor.u32 %v1240_v27, %v1239_v55  ;;  %v2443_v14 = vshrl.u32 %v1238_v6, 16  ;;  %v2446_v52 = vshll.u32 %v1238_v6, 16  ;;  %v2395_v38 = vor.u32 %v2394_v60, %v2391_v62 }
 0x250   : > { %v2404_v61 = vor.u32 %v2403_v19, %v2400_v3  ;;  %v2454_v24 = vrot.slane %v2452_v49, 2  ;;  %v2457_v40 = vrot.slane %v2455_v58, 3  ;;  %v1298_v4 = vsel %vm1261_vm3, %v1295_v8, %v1297_v33 }
 0x251   : > { %v1242_v11 = vsel %vm1171_vm4, %v1237_v45, %v1241_v2  ;;  %v2445_v37 = vrot.slane %v2443_v14, 2  ;;  %v1243_v30 = vrot.slane %v8770_v12, 1  ;;  %v1244_v32 = vrot.slane %v8771_v53, 2  ;;  %v8775_v12 = vld [vmem:[#allocation58_spill] sm:$0xff] }
 0x252   : > { %v2396_v25 = vsel %vm1308_vm2, %v2341_v47, %v2395_v38  ;;  %v2506_v26 = vshrl.u32 %v1298_v4, 16  ;;  %v7959_v27 = vsel %vm1308_vm2, %v2350_v22, %v2404_v61  ;;  %v2458_v60 = vor.u32 %v2457_v40, %v2454_v24 }
 0x253   : > { %v2497_v55 = vshrl.u32 %v1242_v11, 16  ;;  %v2509_v62 = vshll.u32 %v1298_v4, 16  ;;  %v1446_v8 = vrot.slane %v8750_v21, 3  ;;  %v1448_v45 = vrot.slane %v7567_v34, 3 }
 0x254   : > { %3870 = vmatmul.mubr.bf16.gmra.mrb[12].mxu1 %v2342_v9  ;;  %v2448_v9 = vrot.slane %v2446_v52, 3  ;;  %v2500_v3 = vshll.u32 %v1242_v11, 16  ;;  %v1444_v6 = vrot.slane %v8736_v1, 3  ;;  %v1245_v49 = vor.u32 %v1244_v32, %v1243_v30 }
 0x255   : > { %3877 = vmatprep.mubr.bf16.mxu1 %v7948_v10  ;;  %v2508_v58 = vrot.slane %v2506_v26, 2  ;;  %v7969_v52 = vsel %vm1308_vm2, %v2404_v61, %v2458_v60  ;;  %v2499_v24 = vrot.slane %v2497_v55, 2  ;;  %v2511_v40 = vrot.slane %v2509_v62, 3 }
 0x256   : > { %v2449_v19 = vor.u32 %v2448_v9, %v2445_v37  ;;  %v2502_v11 = vrot.slane %v2500_v3, 3  ;;  %v1447_v32 = vsel %vm1406_vm5, %v1444_v6, %v1446_v8  ;;  %v1449_v26 = vsel %vm1406_vm5, %v1446_v8, %v1448_v45 }
 0x257   : > { %v1246_v61 = vsel %vm1171_vm4, %v1241_v2, %v1245_v49  ;;  %v1247_v53 = vrot.slane %v8775_v12, 1  ;;  %v2749_v3 = vshrl.u32 %v1449_v26, 16 }
 0x258   : > { %v2450_v9 = vsel %vm1308_vm2, %v2395_v38, %v2449_v19  ;;  %v2503_v8 = vor.u32 %v2502_v11, %v2499_v24  ;;  %v2554_v12 = vshll.u32 %v1246_v61, 16  ;;  %v1301_v24 = vrot.slane %v8736_v1, 2 }
 0x259   : > { %v2751_v46 = vrot.slane %v2749_v3, 2 }
 0x25c   : > { %3878 = vmatmul.mubr.bf16.gmra.mrb[16].mxu1 %v2396_v25  ;;  %v8773_v25 = vld [vmem:[#allocation55_spill] sm:$0xff] }
 0x25d   : > { %3885 = vmatprep.mubr.bf16.mxu1 %v7959_v27  ;;  %v8596_v22 = vrot.slane %v8773_v25, 3  ;;  %v1299_v34 = vrot.slane %v8773_v25, 2  ;;  %v8776_v25 = vld [vmem:[#allocation56_spill] sm:$0xff] }
 0x25f   : > { %v1445_v30 = vsel %vm1406_vm5, %v8596_v22, %v1444_v6  ;;  %v1300_v22 = vsel %vm1261_vm3, %v1297_v33, %v1299_v34  ;;  %v1248_v6 = vrot.slane %v8776_v25, 2 }
 0x260   : > { %v2632_v55 = vshrl.u32 %v1445_v30, 16  ;;  %v2635_v62 = vshll.u32 %v1445_v30, 16  ;;  %v2752_v30 = vshll.u32 %v1449_v26, 16  ;;  %v2504_v26 = vsel %vm1308_vm2, %v2449_v19, %v2503_v8 }
 0x261   : > { %v7965_v47 = vpop.f32.mrb[132].mxu0  ;;  %v1249_v25 = vor.u32 %v1248_v6, %v1247_v53  ;;  %v8777_v6 = vshrl.u32 %v8736_v1, 16 }
 0x262   : > { %8772 = vst [vmem:[#allocation28_spill] sm:$0xff] %v7965_v47  ;;  %v3449_v14 = vpop.f32.mrb[133].mxu0  ;;  %v2512_v47 = vor.u32 %v2511_v40, %v2508_v58  ;;  %v2634_v63 = vrot.slane %v2632_v55, 2  ;;  %v2637_v38 = vrot.slane %v2635_v62, 3  ;;  %v2754_v55 = vrot.slane %v2752_v30, 3 }
 0x263   : > { %v7972_v4 = vpop.f32.mrb[134].mxu0  ;;  %v2686_v14 = vshrl.u32 %v1447_v32, 16  ;;  %v2556_v62 = vrot.slane %v2554_v12, 3  ;;  %v1250_v3 = vsel %vm1171_vm4, %v1245_v49, %v1249_v25 }
 0x264   : > { %8774 = vst [vmem:[#allocation33_spill] sm:$0xff] %v7972_v4  ;;  %v3452_v37 = vpop.f32.mrb[135].mxu0  ;;  %v2689_v4 = vshll.u32 %v1447_v32, 16  ;;  %3886 = vmatmul.mubr.bf16.gmra.mrb[20].mxu1 %v2450_v9  ;;  %v2560_v32 = vshrl.u32 %v1300_v22, 16  ;;  %v2563_v9 = vshll.u32 %v1300_v22, 16  ;;  %v7987_v58 = vor.u32 %v2637_v38, %v2634_v63 }
 0x265   : > { %3893 = vmatprep.mubr.bf16.mxu1 %v7969_v52  ;;  %v2688_v45 = vrot.slane %v2686_v14, 2  ;;  %v2551_v37 = vshrl.u32 %v1246_v61, 16  ;;  %v7998_v61 = vsel %vm1308_vm2, %v2458_v60, %v2512_v47  ;;  %v8000_v63 = vor.u32 %v2754_v55, %v2751_v46 }
 0x266   : > { %v2691_v2 = vrot.slane %v2689_v4, 3  ;;  %v2562_v53 = vrot.slane %v2560_v32, 2  ;;  %v2565_v14 = vrot.slane %v2563_v9, 3  ;;  %v1254_v38 = vrot.slane %v8777_v6, 1 }
 0x267   : > { %v2553_v22 = vrot.slane %v2551_v37, 2  ;;  %v1302_v46 = vsel %vm1261_vm3, %v1299_v34, %v1301_v24  ;;  %v2605_v12 = vshrl.u32 %v1250_v3, 16  ;;  %v2608_v30 = vshll.u32 %v1250_v3, 16 }
 0x268   : > { %v2692_v33 = vor.u32 %v2691_v2, %v2688_v45  ;;  %v8778_v45 = vshll.u32 %v8736_v1, 16  ;;  %v2566_v32 = vor.u32 %v2565_v14, %v2562_v53  ;;  %v2614_v9 = vshrl.u32 %v1302_v46, 16 }
 0x269   : > { %v7985_v0 = vpop.f32.mrb[136].mxu0  ;;  %v2557_v37 = vor.u32 %v2556_v62, %v2553_v22  ;;  %v2610_v6 = vrot.slane %v2608_v30, 3  ;;  %v8779_v53 = vrot.slane %v8750_v21, 2 }
 0x26a   : > { %v3457_v40 = vpop.f32.mrb[137].mxu0  ;;  %v7994_v4 = vsel %vm1308_vm2, %v7987_v58, %v2692_v33  ;;  %v1257_v2 = vrot.slane %v8778_v45, 2  ;;  %v8009_v19 = vsel %vm1308_vm2, %v2692_v33, %v8000_v63  ;;  %v8019_v34 = vsel %vm1308_vm2, %v2512_v47, %v2566_v32 }
 0x26b   : > { %v7989_v59 = vpop.f32.mrb[138].mxu0  ;;  %v2617_v40 = vshll.u32 %v1302_v46, 16  ;;  %v2558_v33 = vsel %vm1308_vm2, %v2503_v8, %v2557_v37  ;;  %v2616_v45 = vrot.slane %v2614_v9, 2  ;;  %v1304_v14 = vsel %vm1261_vm3, %v1301_v24, %v8779_v53 }
 0x26c   : > { %v3460_v11 = vpop.f32.mrb[139].mxu0  ;;  %3894 = vmatmul.mubr.bf16.gmra.mrb[24].mxu1 %v2504_v26  ;;  %v1258_v55 = vor.u32 %v1257_v2, %v1254_v38  ;;  %v2607_v26 = vrot.slane %v2605_v12, 2  ;;  %v2668_v30 = vshrl.u32 %v1304_v14, 16  ;;  %v2671_v47 = vshll.u32 %v1304_v14, 16 }
 0x26d   : > { %3901 = vmatprep.mubr.bf16.mxu1 %v7998_v61  ;;  %v2619_v22 = vrot.slane %v2617_v40, 3 }
 0x26e   : > { %v1259_v62 = vsel %vm1171_vm4, %v1249_v25, %v1258_v55  ;;  %v2611_v38 = vor.u32 %v2610_v6, %v2607_v26  ;;  %v2670_v24 = vrot.slane %v2668_v30, 2 }
 0x26f   : > { %v2659_v8 = vshrl.u32 %v1259_v62, 16  ;;  %v2662_v2 = vshll.u32 %v1259_v62, 16  ;;  %v2620_v12 = vor.u32 %v2619_v22, %v2616_v45  ;;  %v2722_v45 = vshrl.u32 %v1258_v55, 16 }
 0x270   : > { %v2612_v25 = vsel %vm1308_vm2, %v2557_v37, %v2611_v38  ;;  %v2725_v22 = vshll.u32 %v1258_v55, 16 }
 0x271   : > { %v8013_v60 = vpop.f32.mrb[140].mxu0  ;;  %v2661_v40 = vrot.slane %v2659_v8, 2  ;;  %v8032_v21 = vsel %vm1308_vm2, %v2566_v32, %v2620_v12 }
 0x272   : > { %v3465_v49 = vpop.f32.mrb[141].mxu0  ;;  %v2727_v32 = vrot.slane %v2725_v22, 3 }
 0x273   : > { %v8015_v1 = vpop.f32.mrb[142].mxu0 }
 0x274   : > { %v3468_v11 = vpop.f32.mrb[143].mxu0  ;;  %3902 = vmatmul.mubr.bf16.gmra.mrb[28].mxu1 %v2558_v33  ;;  %v2673_v33 = vrot.slane %v2671_v47, 3 }
 0x275   : > { %3909 = vmatprep.mubr.bf16.mxu1 %v8019_v34  ;;  %v2664_v11 = vrot.slane %v2662_v2, 3  ;;  %v2724_v2 = vrot.slane %v2722_v45, 2 }
 0x276   : > { %v8037_v53 = vor.u32 %v2673_v33, %v2670_v24 }
 0x277   : > { %v2665_v6 = vor.u32 %v2664_v11, %v2661_v40  ;;  %v2728_v55 = vor.u32 %v2727_v32, %v2724_v2 }
 0x279   : > { %v8026_v3 = vpop.f32.mrb[144].mxu0  ;;  %v2666_v8 = vsel %vm1308_vm2, %v2611_v38, %v2665_v6  ;;  %v2729_v40 = vsel %vm1308_vm2, %v2665_v6, %v2728_v55  ;;  %v6249_v6 = vld [vmem:[%s8492_s2 + $0x200] sm:$0xff]  }
 0x27a   : > { %v3473_v46 = vpop.f32.mrb[145].mxu0 }
 0x27b   : > { %v8028_v49 = vpop.f32.mrb[146].mxu0  ;;  %v8044_v46 = vsel %vm1308_vm2, %v2620_v12, %v8037_v53 }
 0x27c   : > { %v3476_v9 = vpop.f32.mrb[147].mxu0  ;;  %3910 = vmatmul.mubr.bf16.gmra.mrb[32].mxu1 %v2612_v25 }
 0x27d   : > { %3917 = vmatprep.mubr.bf16.mxu1 %v8032_v21 }
 0x281   : > { %v8035_v26 = vpop.f32.mrb[148].mxu0 }
 0x282   : > { %v3481_v62 = vpop.f32.mrb[149].mxu0 }
 0x283   : > { %v8039_v14 = vpop.f32.mrb[150].mxu0 }
 0x284   : > { %v3484_v37 = vpop.f32.mrb[151].mxu0  ;;  %3918 = vmatmul.mubr.bf16.gmra.mrb[36].mxu1 %v2666_v8  ;;  %v6250_v8 = vld [vmem:[%s8492_s2 + $0x208] sm:$0xff]  }
 0x285   : > { %3925 = vmatprep.mubr.bf16.mxu1 %v8044_v46  ;;  %v8780_v37 = vld [vmem:[#allocation11_spill] sm:$0xff] }
 0x289   : > { %v8047_v30 = vpop.f32.mrb[152].mxu0 }
 0x28a   : > { %v3489_v47 = vpop.f32.mrb[153].mxu0 }
 0x28b   : > { %v8049_v9 = vpop.f32.mrb[154].mxu0  ;;  %v6251_v47 = vld [vmem:[%s8492_s2 + $0x210] sm:$0xff]  }
 0x28c   : > { %v3492_v25 = vpop.f32.mrb[155].mxu0  ;;  %3926 = vmatmul.mubr.bf16.gmra.mrb[40].mxu1 %v2729_v40  ;;  %v6252_v40 = vld [vmem:[%s8492_s2 + $0x218] sm:$0xff]  }
 0x28d   : > { %3933 = vmatprep.mubr.bf16.mxu1 %v8037_v53 }
 0x291   : > { %v8053_v38 = vpop.f32.mrb[156].mxu0 }
 0x292   : > { %v3497_v11 = vpop.f32.mrb[157].mxu0 }
 0x293   : > { %v8055_v24 = vpop.f32.mrb[158].mxu0 }
 0x294   : > { %v3500_v12 = vpop.f32.mrb[159].mxu0  ;;  %3934 = vmatmul.mubr.bf16.gmra.mrb[44].mxu1 %v2728_v55 }
 0x295   : > { %3973 = vmatprep.mubr.bf16.mxu1 %v7733_v43  ;;  %v8781_v43 = vmov 0.0  }
 0x299   : > { %v8058_v33 = vpop.f32.mrb[160].mxu0 }
 0x29a   : > { %v3505_v45 = vpop.f32.mrb[161].mxu0 }
 0x29b   : > { %v8060_v22 = vpop.f32.mrb[162].mxu0 }
 0x29c   : > { %v3508_v62 = vpop.f32.mrb[163].mxu0  ;;  %3974 = vmatmul.mubr.bf16.vlgmr.msra.gmra.mrb[48].mxu1 %v8780_v37  ;;  %v6254_v37 = vld [vmem:[%s8492_s2 + $0x228] sm:$0xff]  }
 0x29d   : > { %5645 = vmatpush3.bf16.msra.mxu1 %v6249_v6  ;;  %3981 = vmatprep.mubr.bf16.mxu1 %v7765_v5  ;;  %v8782_v5 = vld [vmem:[#allocation31_spill] sm:$0xff]  ;;  %v6253_v6 = vld [vmem:[%s8492_s2 + $0x220] sm:$0xff]  }
 0x29e   : > { %5646 = vmatprep.subr.bf16.mxu1 %v8781_v43 }
 0x2a1   : > { %v8071_v2 = vpop.f32.mrb[164].mxu0  ;;  %5647 = vmatpush3.bf16.msra.mxu1 %v6250_v8 }
 0x2a2   : > { %v3513_v32 = vpop.f32.mrb[165].mxu0  ;;  %5648 = vmatprep.subr.bf16.mxu1 %v8781_v43 }
 0x2a3   : > { %v8073_v55 = vpop.f32.mrb[166].mxu0 }
 0x2a4   : > { %v3516_v25 = vpop.f32.mrb[167].mxu0  ;;  %3982 = vmatmul.mubr.bf16.gmra.mrb[52].mxu1 %v8782_v5 }
 0x2a5   : > { %3989 = vmatprep.mubr.bf16.mxu1 %v7768_v18  ;;  %5649 = vmatpush3.bf16.msra.mxu1 %v6251_v47  ;;  %v8783_v18 = vld [vmem:[#allocation57_spill] sm:$0xff]  ;;  %v6255_v25 = vld [vmem:[%s8492_s2 + $0x230] sm:$0xff]  }
 0x2a6   : > { %5650 = vmatprep.subr.bf16.mxu1 %v8781_v43 }
 0x2a9   : > { %v8085_v11 = vpop.f32.mrb[168].mxu0  ;;  %5651 = vmatpush3.bf16.msra.mxu1 %v6252_v40  ;;  %v6256_v40 = vld [vmem:[%s8492_s2 + $0x238] sm:$0xff]  }
 0x2aa   : > { %v3521_v12 = vpop.f32.mrb[169].mxu0  ;;  %5652 = vmatprep.subr.bf16.mxu1 %v8781_v43 }
 0x2ab   : > { %v8087_v45 = vpop.f32.mrb[170].mxu0 }
 0x2ac   : > { %v3524_v62 = vpop.f32.mrb[171].mxu0  ;;  %3990 = vmatmul.mubr.bf16.gmra.mrb[56].mxu1 %v8783_v18 }
 0x2ad   : > { %3997 = vmatprep.mubr.bf16.mxu1 %v7771_v20  ;;  %5653 = vmatpush3.bf16.msra.mxu1 %v6253_v6  ;;  %v8785_v20 = vld [vmem:[#allocation10_spill] sm:$0xff] }
 0x2ae   : > { %5654 = vmatprep.subr.bf16.mxu1 %v8781_v43 }
 0x2b1   : > { %v8099_v8 = vpop.f32.mrb[172].mxu0  ;;  %5655 = vmatpush3.bf16.msra.mxu1 %v6254_v37  ;;  %v8786_v37 = vld [vmem:[#allocation29_spill] sm:$0xff] }
 0x2b2   : > { %v3529_v32 = vpop.f32.mrb[173].mxu0  ;;  %5656 = vmatprep.subr.bf16.mxu1 %v8781_v43 }
 0x2b3   : > { %v8101_v47 = vpop.f32.mrb[174].mxu0 }
 0x2b4   : > { %8784 = vst [vmem:[#allocation30_spill] sm:$0xff] %v8101_v47  ;;  %v3532_v5 = vpop.f32.mrb[175].mxu0  ;;  %3998 = vmatmul.mubr.bf16.gmra.mrb[60].mxu1 %v8785_v20  ;;  %v8787_v20 = vld [vmem:[#allocation14_spill] sm:$0xff] }
 0x2b5   : > { %4005 = vmatprep.mubr.bf16.mxu1 %v7775_v36  ;;  %5657 = vmatpush3.bf16.msra.mxu1 %v6255_v25 }
 0x2b6   : > { %5658 = vmatprep.subr.bf16.mxu1 %v8781_v43 }
 0x2b9   : > { %v8113_v12 = vpop.f32.mrb[176].mxu0  ;;  %5659 = vmatpush3.bf16.msra.mxu1 %v6256_v40 }
 0x2ba   : > { %v3537_v6 = vpop.f32.mrb[177].mxu0 }
 0x2bb   : > { %v3538_v62 = vpop.f32.mrb[178].mxu0 }
 0x2bc   : > { %v3539_v18 = vpop.f32.mrb[179].mxu0  ;;  %4006 = vmatmul.mubr.bf16.gmra.mrb[64].mxu1 %v8786_v37 }
 0x2bd   : > { %4013 = vmatprep.mubr.bf16.mxu1 %v7778_v51  ;;  %v8788_v18 = vld [vmem:[#allocation19_spill] sm:$0xff] }
 0x2c1   : > { %v8117_v32 = vpop.f32.mrb[96].mxu0 }
 0x2c2   : > { %v3577_v36 = vpop.f32.mrb[97].mxu0 }
 0x2c3   : > { %v8119_v25 = vpop.f32.mrb[98].mxu0 }
 0x2c4   : > { %v3580_v5 = vpop.f32.mrb[99].mxu0  ;;  %4014 = vmatmul.mubr.bf16.gmra.mrb[68].mxu1 %v8787_v20 }
 0x2c5   : > { %4021 = vmatprep.mubr.bf16.mxu1 %v7791_v41 }
 0x2c9   : > { %v8123_v47 = vpop.f32.mrb[100].mxu0 }
 0x2ca   : > { %v3585_v6 = vpop.f32.mrb[101].mxu0 }
 0x2cb   : > { %v8125_v62 = vpop.f32.mrb[102].mxu0 }
 0x2cc   : > { %v3588_v40 = vpop.f32.mrb[103].mxu0  ;;  %4022 = vmatmul.mubr.bf16.gmra.mrb[72].mxu1 %v8788_v18 }
 0x2cd   : > { %4029 = vmatprep.mubr.bf16.mxu1 %v7800_v56 }
 0x2d1   : > { %v8129_v51 = vpop.f32.mrb[104].mxu0 }
 0x2d2   : > { %v3593_v37 = vpop.f32.mrb[105].mxu0 }
 0x2d3   : > { %v8131_v36 = vpop.f32.mrb[106].mxu0 }
 0x2d4   : > { %v3596_v5 = vpop.f32.mrb[107].mxu0  ;;  %4030 = vmatmul.mubr.bf16.gmra.mrb[76].mxu1 %v7705_v48 }
 0x2d5   : > { %4037 = vmatprep.mubr.bf16.mxu1 %v7803_v31 }
 0x2d9   : > { %v8135_v41 = vpop.f32.mrb[108].mxu0 }
 0x2da   : > { %v3601_v20 = vpop.f32.mrb[109].mxu0 }
 0x2db   : > { %v8137_v6 = vpop.f32.mrb[110].mxu0 }
 0x2dc   : > { %v3604_v40 = vpop.f32.mrb[111].mxu0  ;;  %4038 = vmatmul.mubr.bf16.gmra.mrb[80].mxu1 %v7719_v13 }
 0x2dd   : > { %4045 = vmatprep.mubr.bf16.mxu1 %v7806_v35 }
 0x2e1   : > { %v8141_v56 = vpop.f32.mrb[112].mxu0 }
 0x2e2   : > { %v3609_v18 = vpop.f32.mrb[113].mxu0 }
 0x2e3   : > { %v8143_v37 = vpop.f32.mrb[114].mxu0 }
 0x2e4   : > { %v3612_v5 = vpop.f32.mrb[115].mxu0  ;;  %4046 = vmatmul.mubr.bf16.gmra.mrb[0].mxu1 %v7730_v7 }
 0x2e5   : > { %4053 = vmatprep.mubr.bf16.mxu1 %v7812_v15 }
 0x2e9   : > { %v8147_v48 = vpop.f32.mrb[116].mxu0 }
 0x2ea   : > { %v3617_v31 = vpop.f32.mrb[117].mxu0 }
 0x2eb   : > { %v8149_v20 = vpop.f32.mrb[118].mxu0 }
 0x2ec   : > { %v3620_v40 = vpop.f32.mrb[119].mxu0  ;;  %4054 = vmatmul.mubr.bf16.gmra.mrb[4].mxu1 %v7908_v29 }
 0x2ed   : > { %4061 = vmatprep.mubr.bf16.mxu1 %v7815_v44 }
 0x2f1   : > { %v8153_v13 = vpop.f32.mrb[120].mxu0 }
 0x2f2   : > { %v3625_v35 = vpop.f32.mrb[121].mxu0 }
 0x2f3   : > { %v8155_v18 = vpop.f32.mrb[122].mxu0 }
 0x2f4   : > { %v3628_v5 = vpop.f32.mrb[123].mxu0  ;;  %4062 = vmatmul.mubr.bf16.gmra.mrb[8].mxu1 %v7936_v39 }
 0x2f5   : > { %4069 = vmatprep.mubr.bf16.mxu1 %v7818_v23  ;;  %v2731_v23 = vshrl.u32 %v7872_v16, 16 }
 0x2f9   : > { %v8159_v7 = vpop.f32.mrb[124].mxu0 }
 0x2fa   : > { %v3633_v15 = vpop.f32.mrb[125].mxu0 }
 0x2fb   : > { %v8161_v31 = vpop.f32.mrb[126].mxu0 }
 0x2fc   : > { %v3636_v40 = vpop.f32.mrb[127].mxu0  ;;  %4070 = vmatmul.mubr.bf16.gmra.mrb[12].mxu1 %v7948_v10 }
 0x2fd   : > { %4077 = vmatprep.mubr.bf16.mxu1 %v7823_v54  ;;  %v2734_v54 = vshll.u32 %v7872_v16, 16 }
 0x2ff   : > { %v2736_v10 = vrot.slane %v2734_v54, 3 }
 0x301   : > { %v8165_v44 = vpop.f32.mrb[128].mxu0 }
 0x302   : > { %v3641_v29 = vpop.f32.mrb[129].mxu0 }
 0x303   : > { %v8167_v35 = vpop.f32.mrb[130].mxu0 }
 0x304   : > { %v3644_v5 = vpop.f32.mrb[131].mxu0  ;;  %4078 = vmatmul.mubr.bf16.gmra.mrb[16].mxu1 %v7959_v27  ;;  %v8792_v27 = vld [vmem:[#allocation18_spill] sm:$0xff] }
 0x305   : > { %4085 = vmatprep.mubr.bf16.mxu1 %v7832_v57  ;;  %v2733_v57 = vrot.slane %v2731_v23, 2  ;;  %v8796_v5 = vld [vmem:[#allocation21_spill] sm:$0xff] }
 0x307   : > { %v2737_v39 = vor.u32 %v2736_v10, %v2733_v57 }
 0x30c   : > { %4086 = vmatmul.mubr.bf16.gmra.mrb[20].mxu1 %v7969_v52  ;;  %v8793_v52 = vld [vmem:[#allocation5_spill] sm:$0xff] }
 0x30d   : > { %4093 = vmatprep.mubr.bf16.mxu1 %v7838_v28  ;;  %v8789_v28 = vld [vmem:[#allocation25_spill] sm:$0xff] }
 0x314   : > { %4094 = vmatmul.mubr.bf16.gmra.mrb[24].mxu1 %v7998_v61  ;;  %v8794_v61 = vrot.slane %v8793_v52, 3 }
 0x315   : > { %4101 = vmatprep.mubr.bf16.mxu1 %v7841_v42  ;;  %v2738_v42 = vsel %vm1308_vm2, %v8037_v53, %v2737_v39 }
 0x31c   : > { %4102 = vmatmul.mubr.bf16.gmra.mrb[28].mxu1 %v8019_v34 }
 0x31d   : > { %4109 = vmatprep.mubr.bf16.mxu1 %v7894_v50  ;;  %v8790_v50 = vld [vmem:[#allocation26_spill] sm:$0xff] }
 0x324   : > { %4110 = vmatmul.mubr.bf16.gmra.mrb[32].mxu1 %v8032_v21 }
 0x325   : > { %4117 = vmatprep.mubr.bf16.mxu1 %v7903_v17  ;;  %v8791_v17 = vld [vmem:[#allocation6_spill] sm:$0xff] }
 0x326   : > { %v1414_v16 = vrot.slane %v8791_v17, 3 }
 0x328   : > { %v1415_v34 = vsel %vm1406_vm5, %v8794_v61, %v1414_v16  ;;  %v6259_v61 = vld [vmem:[%s8493_s3 + $0x4] ss:$8 sps:$4 sm:$0xff]  }
 0x329   : > { %v1822_v21 = vshrl.u32 %v1415_v34, 16  ;;  %v1825_v53 = vshll.u32 %v1415_v34, 16  ;;  %4628 = vmatprep.subr.bf16.mxu0 %v6259_v61  ;;  %v6263_v61 = vld [vmem:[%s8493_s3 + $0x20] ss:$8 sps:$4 sm:$0xff]  }
 0x32b   : > { %v1824_v40 = vrot.slane %v1822_v21, 2  ;;  %v1827_v29 = vrot.slane %v1825_v53, 3 }
 0x32c   : > { %4118 = vmatmul.mubr.bf16.gmra.mrb[36].mxu1 %v8044_v46  ;;  %v8795_v46 = vld [vmem:[#allocation7_spill] sm:$0xff] }
 0x32d   : > { %4125 = vmatprep.mubr.bf16.mxu1 %v8789_v28  ;;  %v1416_v15 = vrot.slane %v8795_v46, 3  ;;  %v1828_v54 = vor.u32 %v1827_v29, %v1824_v40  ;;  %v8797_v28 = vld [vmem:[#allocation9_spill] sm:$0xff]  ;;  %v8799_v46 = vld [vmem:[#allocation12_spill] sm:$0xff] }
 0x32e   : > { %v1420_v40 = vrot.slane %v8799_v46, 3 }
 0x32f   : > { %v1417_v23 = vsel %vm1406_vm5, %v1414_v16, %v1416_v15  ;;  %v6257_v16 = vld [vmem:[%s8493_s3] ss:$8 sps:$4 sm:$0xff]  }
 0x330   : > { %v1876_v57 = vshrl.u32 %v1417_v23, 16  ;;  %v1879_v10 = vshll.u32 %v1417_v23, 16  ;;  %4629 = vmatpush1.bf16.msra.mxu0 %v6257_v16 }
 0x332   : > { %v1878_v17 = vrot.slane %v1876_v57, 2  ;;  %v6260_v57 = vld [vmem:[%s8493_s3 + $0x10] ss:$8 sps:$4 sm:$0xff]  }
 0x334   : > { %4126 = vmatmul.mubr.bf16.gmra.mrb[40].mxu1 %v2738_v42  ;;  %v8798_v42 = vld [vmem:[#allocation23_spill] sm:$0xff] }
 0x335   : > { %4133 = vmatprep.mubr.bf16.mxu1 %v8790_v50  ;;  %v1829_v50 = vsel %vm1308_vm2, %v8798_v42, %v1828_v54 }
 0x33c   : > { %4134 = vmatmul.mubr.bf16.gmra.mrb[44].mxu1 %v2737_v39  ;;  %v1418_v39 = vrot.slane %v8797_v28, 3 }
 0x33d   : > { %5660 = vmatprep.mubr.msk.bf16.mxu1 %vm6307_vm6, %v8781_v43 }
 0x33e   : > { %v1419_v52 = vsel %vm1406_vm5, %v1416_v15, %v1418_v39  ;;  %v1421_v23 = vsel %vm1406_vm5, %v1418_v39, %v1420_v40 }
 0x33f   : > { %v1930_v21 = vshrl.u32 %v1419_v52, 16  ;;  %v1933_v53 = vshll.u32 %v1419_v52, 16  ;;  %v1984_v42 = vshrl.u32 %v1421_v23, 16 }
 0x341   : > { %v1932_v29 = vrot.slane %v1930_v21, 2  ;;  %v6265_v21 = vld [vmem:[%s8493_s3 + $0x24] ss:$8 sps:$4 sm:$0xff]  }
 0x344   : > { %5661 = vmatmul.mubr.bf16.vlgmr.msra.gmra.mrb[48].mxu1 %v8792_v27  ;;  %v1881_v27 = vrot.slane %v1879_v10, 3  ;;  %v6262_v10 = vld [vmem:[%s8493_s3 + $0x14] ss:$8 sps:$4 sm:$0xff]  }
 0x345   : > { %5664 = vmatprep.mubr.msk.bf16.mxu1 %vm6307_vm6, %v8781_v43  ;;  %4630 = vmatprep.subr.bf16.mxu0 %v6262_v10 }
 0x346   : > { %v1882_v34 = vor.u32 %v1881_v27, %v1878_v17  ;;  %4631 = vmatpush1.bf16.msra.mxu0 %v6260_v57  ;;  %v1986_v27 = vrot.slane %v1984_v42, 2 }
 0x347   : > { %4632 = vmatprep.subr.bf16.mxu0 %v6265_v21 }
 0x348   : > { %v1883_v15 = vsel %vm1308_vm2, %v1828_v54, %v1882_v34  ;;  %v1987_v54 = vshll.u32 %v1421_v23, 16  ;;  %v6271_v23 = vld [vmem:[%s8493_s3 + $0x44] ss:$8 sps:$4 sm:$0xff]  }
 0x34a   : > { %v1989_v52 = vrot.slane %v1987_v54, 3  ;;  %4633 = vmatpush1.bf16.msra.mxu0 %v6263_v61  ;;  %v6269_v54 = vld [vmem:[%s8493_s3 + $0x40] ss:$8 sps:$4 sm:$0xff]   ;;  %v8802_v61 = vld [vmem:[#allocation24_spill] sm:$0xff] }
 0x34b   : > { %v1426_v21 = vrot.slane %v8802_v61, 3 }
 0x34c   : > { %5665 = vmatmul.mubr.bf16.gmra.mrb[52].mxu1 %v8796_v5  ;;  %v1935_v5 = vrot.slane %v1933_v53, 3  ;;  %v1990_v53 = vor.u32 %v1989_v52, %v1986_v27 }
 0x34d   : > { %5668 = vmatprep.mubr.msk.bf16.mxu1 %vm6307_vm6, %v8781_v43 }
 0x34e   : > { %v1936_v28 = vor.u32 %v1935_v5, %v1932_v29  ;;  %v8801_v29 = vld [vmem:[#allocation20_spill] sm:$0xff] }
 0x34f   : > { %v1424_v5 = vrot.slane %v8801_v29, 3 }
 0x350   : > { %v1937_v39 = vsel %vm1308_vm2, %v1882_v34, %v1936_v28  ;;  %v6268_v34 = vld [vmem:[%s8493_s3 + $0x34] ss:$8 sps:$4 sm:$0xff]   ;;  %v1991_v57 = vsel %vm1308_vm2, %v1936_v28, %v1990_v53 }
 0x351   : > { %4634 = vmatprep.subr.bf16.mxu0 %v6268_v34  ;;  %v1427_v29 = vsel %vm1406_vm5, %v1424_v5, %v1426_v21 }
 0x354   : > { %5669 = vmatmul.mubr.bf16.gmra.mrb[56].mxu1 %v1829_v50  ;;  %v8800_v50 = vld [vmem:[#allocation17_spill] sm:$0xff] }
 0x355   : > { %5672 = vmatprep.mubr.msk.bf16.mxu1 %vm6307_vm6, %v8781_v43  ;;  %v1422_v17 = vrot.slane %v8800_v50, 3 }
 0x357   : > { %v1423_v16 = vsel %vm1406_vm5, %v1420_v40, %v1422_v17  ;;  %v6266_v40 = vld [vmem:[%s8493_s3 + $0x30] ss:$8 sps:$4 sm:$0xff]   ;;  %v1425_v50 = vsel %vm1406_vm5, %v1422_v17, %v1424_v5  ;;  %v6277_v17 = vld [vmem:[%s8493_s3 + $0x64] ss:$8 sps:$4 sm:$0xff]  }
 0x358   : > { %v2038_v46 = vshrl.u32 %v1423_v16, 16  ;;  %4635 = vmatpush1.bf16.msra.mxu0 %v6266_v40  ;;  %v2092_v28 = vshrl.u32 %v1425_v50, 16  ;;  %v2095_v52 = vshll.u32 %v1425_v50, 16  ;;  %v6275_v40 = vld [vmem:[%s8493_s3 + $0x60] ss:$8 sps:$4 sm:$0xff]  }
 0x359   : > { %4636 = vmatprep.subr.bf16.mxu0 %v6271_v23  ;;  %v6280_v23 = vld [vmem:[%s8493_s3 + $0x74] ss:$8 sps:$4 sm:$0xff]  }
 0x35a   : > { %v2040_v10 = vrot.slane %v2038_v46, 2  ;;  %v2094_v46 = vrot.slane %v2092_v28, 2 }
 0x35c   : > { %5673 = vmatmul.mubr.bf16.gmra.mrb[60].mxu1 %v1883_v15  ;;  %v2041_v15 = vshll.u32 %v1423_v16, 16  ;;  %4637 = vmatpush1.bf16.msra.mxu0 %v6269_v54  ;;  %v6272_v16 = vld [vmem:[%s8493_s3 + $0x50] ss:$8 sps:$4 sm:$0xff]   ;;  %v8803_v54 = vld [vmem:[#allocation27_spill] sm:$0xff] }
 0x35d   : > { %5676 = vmatprep.mubr.msk.bf16.mxu1 %vm6307_vm6, %v8781_v43  ;;  %v1428_v50 = vrot.slane %v8803_v54, 3 }
 0x35e   : > { %v2043_v42 = vrot.slane %v2041_v15, 3  ;;  %v2097_v15 = vrot.slane %v2095_v52, 3 }
 0x35f   : > { %v1429_v52 = vsel %vm1406_vm5, %v1426_v21, %v1428_v50 }
 0x360   : > { %v2044_v27 = vor.u32 %v2043_v42, %v2040_v10  ;;  %v2149_v10 = vshll.u32 %v1427_v29, 16  ;;  %v6278_v42 = vld [vmem:[%s8493_s3 + $0x70] ss:$8 sps:$4 sm:$0xff]   ;;  %v2200_v61 = vshrl.u32 %v1429_v52, 16 }
 0x362   : > { %v2045_v34 = vsel %vm1308_vm2, %v1990_v53, %v2044_v27  ;;  %v2146_v53 = vshrl.u32 %v1427_v29, 16  ;;  %v2151_v28 = vrot.slane %v2149_v10, 3  ;;  %v8805_v10 = vld [vmem:[#allocation37_spill] sm:$0xff] }
 0x364   : > { %5677 = vmatmul.mubr.bf16.gmra.mrb[64].mxu1 %v1937_v39  ;;  %v6274_v39 = vld [vmem:[%s8493_s3 + $0x54] ss:$8 sps:$4 sm:$0xff]  }
 0x365   : > { %5680 = vmatprep.mubr.msk.bf16.mxu1 %vm6307_vm6, %v8781_v43  ;;  %4638 = vmatprep.subr.bf16.mxu0 %v6274_v39  ;;  %v2148_v39 = vrot.slane %v2146_v53, 2 }
 0x366   : > { %4639 = vmatpush1.bf16.msra.mxu0 %v6272_v16 }
 0x367   : > { %4640 = vmatprep.subr.bf16.mxu0 %v6277_v17  ;;  %v2152_v16 = vor.u32 %v2151_v28, %v2148_v39  ;;  %v2203_v17 = vshll.u32 %v1429_v52, 16 }
 0x369   : > { %v2205_v29 = vrot.slane %v2203_v17, 3 }
 0x36a   : > { %4641 = vmatpush1.bf16.msra.mxu0 %v6275_v40  ;;  %v2202_v40 = vrot.slane %v2200_v61, 2  ;;  %v8806_v61 = vld [vmem:[#allocation40_spill] sm:$0xff] }
 0x36b   : > { %4642 = vmatprep.subr.bf16.mxu0 %v6280_v23  ;;  %v1434_v17 = vrot.slane %v8806_v61, 3 }
 0x36c   : > { %5681 = vmatmul.mubr.bf16.gmra.mrb[68].mxu1 %v1991_v57  ;;  %v2098_v57 = vor.u32 %v2097_v15, %v2094_v46  ;;  %v2206_v23 = vor.u32 %v2205_v29, %v2202_v40 }
 0x36d   : > { %5684 = vmatprep.mubr.msk.bf16.mxu1 %vm6307_vm6, %v8781_v43 }
 0x36e   : > { %v2099_v5 = vsel %vm1308_vm2, %v2044_v27, %v2098_v57  ;;  %4643 = vmatpush1.bf16.msra.mxu0 %v6278_v42  ;;  %v2153_v15 = vsel %vm1308_vm2, %v2098_v57, %v2152_v16  ;;  %v1432_v42 = vrot.slane %v8805_v10, 3  ;;  %v2207_v54 = vsel %vm1308_vm2, %v2152_v16, %v2206_v23 }
 0x370   : > { %v1435_v16 = vsel %vm1406_vm5, %v1432_v42, %v1434_v17 }
 0x374   : > { %5685 = vmatmul.mubr.bf16.gmra.mrb[72].mxu1 %v2045_v34  ;;  %v8804_v34 = vld [vmem:[#allocation34_spill] sm:$0xff] }
 0x375   : > { %5688 = vmatprep.mubr.msk.bf16.mxu1 %vm6307_vm6, %v8781_v43  ;;  %v1430_v46 = vrot.slane %v8804_v34, 3 }
 0x377   : > { %v1431_v27 = vsel %vm1406_vm5, %v1428_v50, %v1430_v46  ;;  %v1433_v57 = vsel %vm1406_vm5, %v1430_v46, %v1432_v42  ;;  %v2362_v46 = vshrl.u32 %v1435_v16, 16 }
 0x378   : > { %v2254_v21 = vshrl.u32 %v1431_v27, 16  ;;  %v2257_v53 = vshll.u32 %v1431_v27, 16  ;;  %v2308_v50 = vshrl.u32 %v1433_v57, 16  ;;  %v2311_v52 = vshll.u32 %v1433_v57, 16 }
 0x379   : > { %v2365_v27 = vshll.u32 %v1435_v16, 16 }
 0x37a   : > { %v2259_v39 = vrot.slane %v2257_v53, 3  ;;  %v2313_v40 = vrot.slane %v2311_v52, 3 }
 0x37c   : > { %5689 = vmatmul.mubr.bf16.gmra.mrb[76].mxu1 %v2099_v5  ;;  %v2256_v5 = vrot.slane %v2254_v21, 2  ;;  %v8807_v21 = vld [vmem:[#allocation43_spill] sm:$0xff] }
 0x37d   : > { %5692 = vmatprep.mubr.msk.bf16.mxu1 %vm6307_vm6, %v8781_v43  ;;  %v1436_v53 = vrot.slane %v8807_v21, 3 }
 0x37e   : > { %v2260_v28 = vor.u32 %v2259_v39, %v2256_v5  ;;  %v2367_v5 = vrot.slane %v2365_v27, 3 }
 0x380   : > { %v2261_v34 = vsel %vm1308_vm2, %v2206_v23, %v2260_v28  ;;  %v1437_v23 = vsel %vm1406_vm5, %v1434_v17, %v1436_v53 }
 0x381   : > { %v2416_v42 = vshrl.u32 %v1437_v23, 16  ;;  %v2419_v57 = vshll.u32 %v1437_v23, 16 }
 0x384   : > { %5693 = vmatmul.mubr.bf16.gmra.mrb[80].mxu1 %v2153_v15  ;;  %v2310_v15 = vrot.slane %v2308_v50, 2  ;;  %v8808_v50 = vld [vmem:[#allocation46_spill] sm:$0xff] }
 0x385   : > { %5696 = vmatprep.mubr.msk.bf16.mxu1 %vm6307_vm6, %v8781_v43  ;;  %v1438_v52 = vrot.slane %v8808_v50, 3 }
 0x386   : > { %v2314_v29 = vor.u32 %v2313_v40, %v2310_v15  ;;  %v2421_v15 = vrot.slane %v2419_v57, 3 }
 0x388   : > { %v2315_v10 = vsel %vm1308_vm2, %v2260_v28, %v2314_v29  ;;  %v1439_v28 = vsel %vm1406_vm5, %v1436_v53, %v1438_v52 }
 0x389   : > { %v2470_v17 = vshrl.u32 %v1439_v28, 16  ;;  %v2473_v16 = vshll.u32 %v1439_v28, 16 }
 0x38c   : > { %5697 = vmatmul.mubr.bf16.gmra.mrb[0].mxu1 %v2207_v54  ;;  %v2364_v54 = vrot.slane %v2362_v46, 2  ;;  %v8809_v46 = vld [vmem:[#allocation50_spill] sm:$0xff] }
 0x38d   : > { %5700 = vmatprep.mubr.msk.bf16.mxu1 %vm6307_vm6, %v8781_v43  ;;  %v1440_v27 = vrot.slane %v8809_v46, 3 }
 0x38e   : > { %v2368_v39 = vor.u32 %v2367_v5, %v2364_v54  ;;  %v2475_v54 = vrot.slane %v2473_v16, 3 }
 0x390   : > { %v2369_v61 = vsel %vm1308_vm2, %v2314_v29, %v2368_v39  ;;  %v1441_v29 = vsel %vm1406_vm5, %v1438_v52, %v1440_v27 }
 0x391   : > { %v2524_v53 = vshrl.u32 %v1441_v29, 16  ;;  %v2527_v23 = vshll.u32 %v1441_v29, 16 }
 0x393   : > { %v2526_v57 = vrot.slane %v2524_v53, 2  ;;  %v2529_v50 = vrot.slane %v2527_v23, 3 }
 0x394   : > { %5701 = vmatmul.mubr.bf16.gmra.mrb[4].mxu1 %v2261_v34  ;;  %v2418_v34 = vrot.slane %v2416_v42, 2 }
 0x395   : > { %5704 = vmatprep.mubr.msk.bf16.mxu1 %vm6307_vm6, %v8781_v43 }
 0x396   : > { %v2422_v40 = vor.u32 %v2421_v15, %v2418_v34  ;;  %v2530_v15 = vor.u32 %v2529_v50, %v2526_v57 }
 0x398   : > { %v2423_v21 = vsel %vm1308_vm2, %v2368_v39, %v2422_v40 }
 0x39c   : > { %5705 = vmatmul.mubr.bf16.gmra.mrb[8].mxu1 %v2315_v10  ;;  %v2472_v10 = vrot.slane %v2470_v17, 2 }
 0x39d   : > { %5708 = vmatprep.mubr.msk.bf16.mxu1 %vm6307_vm6, %v8781_v43 }
 0x39e   : > { %v2476_v5 = vor.u32 %v2475_v54, %v2472_v10 }
 0x3a0   : > { %v2477_v42 = vsel %vm1308_vm2, %v2422_v40, %v2476_v5  ;;  %v2531_v17 = vsel %vm1308_vm2, %v2476_v5, %v2530_v15 }
 0x3a4   : > { %5709 = vmatmul.mubr.bf16.gmra.mrb[12].mxu1 %v2369_v61  ;;  %v8810_v61 = vld [vmem:[#allocation55_spill] sm:$0xff] }
 0x3a5   : > { %5712 = vmatprep.mubr.msk.bf16.mxu1 %vm6307_vm6, %v8781_v43  ;;  %v8811_v34 = vrot.slane %v8810_v61, 3 }
 0x3a7   : > { %v1443_v39 = vsel %vm1406_vm5, %v1440_v27, %v8811_v34 }
 0x3a8   : > { %v2578_v52 = vshrl.u32 %v1443_v39, 16  ;;  %v2581_v28 = vshll.u32 %v1443_v39, 16 }
 0x3aa   : > { %v2580_v16 = vrot.slane %v2578_v52, 2  ;;  %v2583_v46 = vrot.slane %v2581_v28, 3 }
 0x3ac   : > { %5713 = vmatmul.mubr.bf16.gmra.mrb[16].mxu1 %v2423_v21  ;;  %v2584_v40 = vor.u32 %v2583_v46, %v2580_v16 }
 0x3ad   : > { %5716 = vmatprep.mubr.msk.bf16.mxu1 %vm6307_vm6, %v8781_v43 }
 0x3ae   : > { %v2585_v21 = vsel %vm1308_vm2, %v2530_v15, %v2584_v40  ;;  %v2639_v27 = vsel %vm1308_vm2, %v2584_v40, %v7987_v58 }
 0x3b4   : > { %5717 = vmatmul.mubr.bf16.gmra.mrb[20].mxu1 %v2477_v42 }
 0x3b5   : > { %5720 = vmatprep.mubr.msk.bf16.mxu1 %vm6307_vm6, %v8781_v43 }
 0x3bc   : > { %5721 = vmatmul.mubr.bf16.gmra.mrb[24].mxu1 %v2531_v17 }
 0x3bd   : > { %5724 = vmatprep.mubr.msk.bf16.mxu1 %vm6307_vm6, %v8781_v43 }
 0x3c4   : > { %5725 = vmatmul.mubr.bf16.gmra.mrb[28].mxu1 %v2585_v21 }
 0x3c5   : > { %5728 = vmatprep.mubr.msk.bf16.mxu1 %vm6307_vm6, %v8781_v43 }
 0x3cc   : > { %5729 = vmatmul.mubr.bf16.gmra.mrb[32].mxu1 %v2639_v27 }
 0x3cd   : > { %5732 = vmatprep.mubr.msk.bf16.mxu1 %vm6307_vm6, %v8781_v43 }
 0x3d4   : > { %5733 = vmatmul.mubr.bf16.gmra.mrb[36].mxu1 %v7994_v4 }
 0x3d5   : > { %5736 = vmatprep.mubr.msk.bf16.mxu1 %vm6307_vm6, %v8781_v43 }
 0x3dc   : > { %5737 = vmatmul.mubr.bf16.gmra.mrb[40].mxu1 %v8009_v19 }
 0x3dd   : > { %5740 = vmatprep.mubr.msk.bf16.mxu1 %vm6307_vm6, %v8781_v43  ;;  %v8812_v43 = vmov 0  }
 0x3e4   : > { %5741 = vmatmul.mubr.bf16.gmra.mrb[44].mxu1 %v8000_v63 }
 0x417   : > { %v4175_v10 = vpop.f32.mrb[48].mxu1 }
 0x418   : > { %v5776_v54 = vadd.f32 %v4175_v10, %v8117_v32  ;;  %v5662_v58 = vpop.f32.mrb[49].mxu1 }
 0x419   : > { %v4178_v29 = vpop.f32.mrb[50].mxu1 }
 0x41a   : > { %v5777_v5 = vadd.f32 %v4178_v29, %v8119_v25  ;;  %v5663_v53 = vpop.f32.mrb[51].mxu1  ;;  %v4341_v23 = vmax.f32 %v5776_v54, 0.0 }
 0x41c   : > { %v4342_v4 = vmax.f32 %v5777_v5, 0.0 }
 0x41e   : > { %v4382_v42 = vpack.c.bf16 %v4342_v4, %v4341_v23 }
 0x41f   : > { %v4183_v57 = vpop.f32.mrb[52].mxu1 }
 0x420   : > { %v5778_v50 = vadd.f32 %v4183_v57, %v8123_v47  ;;  %v5666_v19 = vpop.f32.mrb[53].mxu1  ;;  %4661 = vmatmul.mubr.bf16.vlgmr.msra.gmra.mrb[180].mxu0 %v4382_v42 }
 0x421   : > { %v4186_v61 = vpop.f32.mrb[54].mxu1  ;;  %4670 = vmatprep.mubr.bf16.mxu0 %v8812_v43 }
 0x422   : > { %v5779_v63 = vadd.f32 %v4186_v61, %v8125_v62  ;;  %v5667_v34 = vpop.f32.mrb[55].mxu1  ;;  %v4343_v32 = vmax.f32 %v5778_v50, 0.0 }
 0x424   : > { %v4344_v39 = vmax.f32 %v5779_v63, 0.0 }
 0x426   : > { %v4383_v15 = vpack.c.bf16 %v4344_v39, %v4343_v32 }
 0x427   : > { %v4191_v52 = vpop.f32.mrb[56].mxu1 }
 0x428   : > { %v5780_v25 = vadd.f32 %v4191_v52, %v8129_v51  ;;  %v5670_v28 = vpop.f32.mrb[57].mxu1  ;;  %4671 = vmatmul.mubr.bf16.gmra.mrb[184].mxu0 %v4383_v15 }
 0x429   : > { %v4194_v17 = vpop.f32.mrb[58].mxu1  ;;  %4680 = vmatprep.mubr.bf16.mxu0 %v8812_v43 }
 0x42a   : > { %v5781_v47 = vadd.f32 %v4194_v17, %v8131_v36  ;;  %v5671_v16 = vpop.f32.mrb[59].mxu1  ;;  %v4345_v46 = vmax.f32 %v5780_v25, 0.0 }
 0x42c   : > { %v4346_v40 = vmax.f32 %v5781_v47, 0.0 }
 0x42e   : > { %v4384_v21 = vpack.c.bf16 %v4346_v40, %v4345_v46 }
 0x42f   : > { %v4199_v27 = vpop.f32.mrb[60].mxu1 }
 0x430   : > { %v5782_v62 = vadd.f32 %v4199_v27, %v8135_v41  ;;  %v5674_v10 = vpop.f32.mrb[61].mxu1  ;;  %4681 = vmatmul.mubr.bf16.gmra.mrb[188].mxu0 %v4384_v21 }
 0x431   : > { %v4202_v54 = vpop.f32.mrb[62].mxu1  ;;  %4690 = vmatprep.mubr.bf16.mxu0 %v8812_v43 }
 0x432   : > { %v5783_v51 = vadd.f32 %v4202_v54, %v8137_v6  ;;  %v5675_v58 = vpop.f32.mrb[63].mxu1  ;;  %v4347_v29 = vmax.f32 %v5782_v62, 0.0 }
 0x434   : > { %v4348_v5 = vmax.f32 %v5783_v51, 0.0 }
 0x436   : > { %v4385_v53 = vpack.c.bf16 %v4348_v5, %v4347_v29 }
 0x437   : > { %v4207_v23 = vpop.f32.mrb[64].mxu1 }
 0x438   : > { %v5784_v36 = vadd.f32 %v4207_v23, %v8141_v56  ;;  %v5678_v4 = vpop.f32.mrb[65].mxu1  ;;  %4691 = vmatmul.mubr.bf16.gmra.mrb[192].mxu0 %v4385_v53 }
 0x439   : > { %v4210_v42 = vpop.f32.mrb[66].mxu1  ;;  %4700 = vmatprep.mubr.bf16.mxu0 %v8812_v43 }
 0x43a   : > { %v5785_v41 = vadd.f32 %v4210_v42, %v8143_v37  ;;  %v5679_v57 = vpop.f32.mrb[67].mxu1  ;;  %v4349_v50 = vmax.f32 %v5784_v36, 0.0 }
 0x43c   : > { %v4350_v19 = vmax.f32 %v5785_v41, 0.0 }
 0x43e   : > { %v4386_v61 = vpack.c.bf16 %v4350_v19, %v4349_v50 }
 0x43f   : > { %v4215_v63 = vpop.f32.mrb[68].mxu1 }
 0x440   : > { %v5786_v6 = vadd.f32 %v4215_v63, %v8147_v48  ;;  %v5682_v34 = vpop.f32.mrb[69].mxu1  ;;  %4701 = vmatmul.mubr.bf16.gmra.mrb[196].mxu0 %v4386_v61 }
 0x441   : > { %v4218_v32 = vpop.f32.mrb[70].mxu1  ;;  %4710 = vmatprep.mubr.bf16.mxu0 %v8812_v43 }
 0x442   : > { %v5787_v56 = vadd.f32 %v4218_v32, %v8149_v20  ;;  %v5683_v39 = vpop.f32.mrb[71].mxu1  ;;  %v4351_v15 = vmax.f32 %v5786_v6, 0.0 }
 0x444   : > { %v4352_v52 = vmax.f32 %v5787_v56, 0.0 }
 0x446   : > { %v4387_v25 = vpack.c.bf16 %v4352_v52, %v4351_v15 }
 0x447   : > { %v4223_v28 = vpop.f32.mrb[72].mxu1 }
 0x448   : > { %v5788_v37 = vadd.f32 %v4223_v28, %v8153_v13  ;;  %v5686_v17 = vpop.f32.mrb[73].mxu1  ;;  %4711 = vmatmul.mubr.bf16.gmra.mrb[200].mxu0 %v4387_v25 }
 0x449   : > { %v4226_v47 = vpop.f32.mrb[74].mxu1  ;;  %4720 = vmatprep.mubr.bf16.mxu0 %v8812_v43 }
 0x44a   : > { %v5789_v48 = vadd.f32 %v4226_v47, %v8155_v18  ;;  %v5687_v16 = vpop.f32.mrb[75].mxu1  ;;  %v4353_v46 = vmax.f32 %v5788_v37, 0.0 }
 0x44c   : > { %v4354_v40 = vmax.f32 %v5789_v48, 0.0 }
 0x44e   : > { %v4388_v21 = vpack.c.bf16 %v4354_v40, %v4353_v46 }
 0x44f   : > { %v4231_v27 = vpop.f32.mrb[76].mxu1 }
 0x450   : > { %v5790_v20 = vadd.f32 %v4231_v27, %v8159_v7  ;;  %v5690_v62 = vpop.f32.mrb[77].mxu1  ;;  %4721 = vmatmul.mubr.bf16.gmra.mrb[204].mxu0 %v4388_v21 }
 0x451   : > { %v4234_v10 = vpop.f32.mrb[78].mxu1  ;;  %4730 = vmatprep.mubr.bf16.mxu0 %v8812_v43 }
 0x452   : > { %v5791_v13 = vadd.f32 %v4234_v10, %v8161_v31  ;;  %v5691_v54 = vpop.f32.mrb[79].mxu1  ;;  %v4355_v51 = vmax.f32 %v5790_v20, 0.0  ;;  %v8813_v31 = vld [vmem:[#allocation28_spill] sm:$0xff] }
 0x454   : > { %v4356_v58 = vmax.f32 %v5791_v13, 0.0 }
 0x456   : > { %v4389_v29 = vpack.c.bf16 %v4356_v58, %v4355_v51 }
 0x457   : > { %v4239_v5 = vpop.f32.mrb[80].mxu1 }
 0x458   : > { %v5792_v18 = vadd.f32 %v4239_v5, %v8165_v44  ;;  %v5694_v53 = vpop.f32.mrb[81].mxu1  ;;  %4731 = vmatmul.mubr.bf16.gmra.mrb[208].mxu0 %v4389_v29  ;;  %v8814_v44 = vld [vmem:[#allocation33_spill] sm:$0xff] }
 0x459   : > { %v4242_v23 = vpop.f32.mrb[82].mxu1  ;;  %4740 = vmatprep.mubr.bf16.mxu0 %v8812_v43 }
 0x45a   : > { %v5793_v7 = vadd.f32 %v4242_v23, %v8167_v35  ;;  %v5695_v36 = vpop.f32.mrb[83].mxu1  ;;  %v4357_v4 = vmax.f32 %v5792_v18, 0.0 }
 0x45c   : > { %v4358_v42 = vmax.f32 %v5793_v7, 0.0 }
 0x45e   : > { %v4390_v41 = vpack.c.bf16 %v4358_v42, %v4357_v4 }
 0x45f   : > { %v4247_v57 = vpop.f32.mrb[0].mxu1 }
 0x460   : > { %v5794_v50 = vadd.f32 %v4247_v57, %v8813_v31  ;;  %v5698_v19 = vpop.f32.mrb[1].mxu1  ;;  %4741 = vmatmul.mubr.bf16.gmra.mrb[212].mxu0 %v4390_v41 }
 0x461   : > { %v4250_v61 = vpop.f32.mrb[2].mxu1  ;;  %4750 = vmatprep.mubr.bf16.mxu0 %v8812_v43 }
 0x462   : > { %v5795_v63 = vadd.f32 %v4250_v61, %v8814_v44  ;;  %v5699_v6 = vpop.f32.mrb[3].mxu1  ;;  %v4359_v34 = vmax.f32 %v5794_v50, 0.0 }
 0x464   : > { %v4360_v32 = vmax.f32 %v5795_v63, 0.0 }
 0x466   : > { %v4391_v56 = vpack.c.bf16 %v4360_v32, %v4359_v34 }
 0x467   : > { %v4255_v39 = vpop.f32.mrb[4].mxu1 }
 0x468   : > { %v5796_v35 = vadd.f32 %v4255_v39, %v7985_v0  ;;  %v5702_v15 = vpop.f32.mrb[5].mxu1  ;;  %4751 = vmatmul.mubr.bf16.gmra.mrb[216].mxu0 %v4391_v56 }
 0x469   : > { %v4258_v52 = vpop.f32.mrb[6].mxu1  ;;  %4760 = vmatprep.mubr.bf16.mxu0 %v8812_v43 }
 0x46a   : > { %v5797_v25 = vadd.f32 %v4258_v52, %v7989_v59  ;;  %v5703_v28 = vpop.f32.mrb[7].mxu1  ;;  %v4361_v37 = vmax.f32 %v5796_v35, 0.0 }
 0x46c   : > { %v4362_v17 = vmax.f32 %v5797_v25, 0.0 }
 0x46e   : > { %v4392_v47 = vpack.c.bf16 %v4362_v17, %v4361_v37 }
 0x46f   : > { %v4263_v48 = vpop.f32.mrb[8].mxu1 }
 0x470   : > { %v5798_v16 = vadd.f32 %v4263_v48, %v8013_v60  ;;  %v5706_v46 = vpop.f32.mrb[9].mxu1  ;;  %4761 = vmatmul.mubr.bf16.gmra.mrb[220].mxu0 %v4392_v47 }
 0x471   : > { %v4266_v40 = vpop.f32.mrb[10].mxu1  ;;  %4770 = vmatprep.mubr.bf16.mxu0 %v8812_v43 }
 0x472   : > { %v5799_v0 = vadd.f32 %v4266_v40, %v8015_v1  ;;  %v5707_v21 = vpop.f32.mrb[11].mxu1  ;;  %v4363_v27 = vmax.f32 %v5798_v16, 0.0 }
 0x474   : > { %v4364_v20 = vmax.f32 %v5799_v0, 0.0 }
 0x476   : > { %v4393_v62 = vpack.c.bf16 %v4364_v20, %v4363_v27 }
 0x477   : > { %v4271_v10 = vpop.f32.mrb[12].mxu1 }
 0x478   : > { %v5800_v59 = vadd.f32 %v4271_v10, %v8026_v3  ;;  %v5710_v13 = vpop.f32.mrb[13].mxu1  ;;  %4771 = vmatmul.mubr.bf16.gmra.mrb[224].mxu0 %v4393_v62 }
 0x479   : > { %v4274_v54 = vpop.f32.mrb[14].mxu1  ;;  %4780 = vmatprep.mubr.bf16.mxu0 %v8812_v43 }
 0x47a   : > { %v5801_v60 = vadd.f32 %v4274_v54, %v8028_v49  ;;  %v5711_v51 = vpop.f32.mrb[15].mxu1  ;;  %v4365_v58 = vmax.f32 %v5800_v59, 0.0 }
 0x47c   : > { %v4366_v29 = vmax.f32 %v5801_v60, 0.0 }
 0x47e   : > { %v4394_v5 = vpack.c.bf16 %v4366_v29, %v4365_v58 }
 0x47f   : > { %v4279_v18 = vpop.f32.mrb[16].mxu1 }
 0x480   : > { %v5802_v1 = vadd.f32 %v4279_v18, %v8035_v26  ;;  %v5714_v53 = vpop.f32.mrb[17].mxu1  ;;  %4781 = vmatmul.mubr.bf16.gmra.mrb[228].mxu0 %v4394_v5 }
 0x481   : > { %v4282_v23 = vpop.f32.mrb[18].mxu1  ;;  %4790 = vmatprep.mubr.bf16.mxu0 %v8812_v43 }
 0x482   : > { %v5803_v3 = vadd.f32 %v4282_v23, %v8039_v14  ;;  %v5715_v7 = vpop.f32.mrb[19].mxu1  ;;  %v4367_v36 = vmax.f32 %v5802_v1, 0.0 }
 0x484   : > { %v4368_v4 = vmax.f32 %v5803_v3, 0.0 }
 0x486   : > { %v4395_v42 = vpack.c.bf16 %v4368_v4, %v4367_v36 }
 0x487   : > { %v4287_v41 = vpop.f32.mrb[20].mxu1 }
 0x488   : > { %v5804_v49 = vadd.f32 %v4287_v41, %v8047_v30  ;;  %v5718_v57 = vpop.f32.mrb[21].mxu1  ;;  %4791 = vmatmul.mubr.bf16.gmra.mrb[232].mxu0 %v4395_v42  ;;  %v5474_v41 = vld [vmem:[%s6377_s6 + $0x18] sm:$0xff] }
 0x489   : > { %v4290_v31 = vpop.f32.mrb[22].mxu1  ;;  %4800 = vmatprep.mubr.bf16.mxu0 %v8812_v43  ;;  %v4466_v57 = vunpack.c.l.bf16 %v5474_v41 }
 0x48a   : > { %v5805_v26 = vadd.f32 %v4290_v31, %v8049_v9  ;;  %v5719_v50 = vpop.f32.mrb[23].mxu1  ;;  %v4369_v19 = vmax.f32 %v5804_v49, 0.0  ;;  %v5475_v49 = vld [vmem:[%s6377_s6 + $0x20] sm:$0xff]  ;;  %v4467_v31 = vunpack.c.h.bf16 %v5474_v41 }
 0x48c   : > { %v4370_v61 = vmax.f32 %v5805_v26, 0.0  ;;  %v4468_v26 = vunpack.c.l.bf16 %v5475_v49 }
 0x48e   : > { %v4396_v44 = vpack.c.bf16 %v4370_v61, %v4369_v19  ;;  %v4469_v19 = vunpack.c.h.bf16 %v5475_v49 }
 0x48f   : > { %v4295_v63 = vpop.f32.mrb[24].mxu1 }
 0x490   : > { %v5806_v14 = vadd.f32 %v4295_v63, %v8053_v38  ;;  %v5722_v6 = vpop.f32.mrb[25].mxu1  ;;  %4801 = vmatmul.mubr.bf16.gmra.mrb[236].mxu0 %v4396_v44 }
 0x491   : > { %v4298_v34 = vpop.f32.mrb[26].mxu1  ;;  %4810 = vmatprep.mubr.bf16.mxu0 %v8812_v43 }
 0x492   : > { %v5807_v30 = vadd.f32 %v4298_v34, %v8055_v24  ;;  %v5723_v32 = vpop.f32.mrb[27].mxu1  ;;  %v4371_v56 = vmax.f32 %v5806_v14, 0.0  ;;  %v5476_v14 = vld [vmem:[%s6377_s6 + $0x28] sm:$0xff] }
 0x494   : > { %v4372_v39 = vmax.f32 %v5807_v30, 0.0 }
 0x496   : > { %v4397_v35 = vpack.c.bf16 %v4372_v39, %v4371_v56  ;;  %v5477_v56 = vld [vmem:[%s6377_s6 + $0x30] sm:$0xff] }
 0x497   : > { %v4303_v15 = vpop.f32.mrb[28].mxu1 }
 0x498   : > { %v5808_v9 = vadd.f32 %v4303_v15, %v8058_v33  ;;  %v5726_v52 = vpop.f32.mrb[29].mxu1  ;;  %4811 = vmatmul.mubr.bf16.gmra.mrb[240].mxu0 %v4397_v35  ;;  %v4470_v35 = vunpack.c.l.bf16 %v5476_v14 }
 0x499   : > { %v4306_v25 = vpop.f32.mrb[30].mxu1  ;;  %4820 = vmatprep.mubr.bf16.mxu0 %v8812_v43  ;;  %v4471_v52 = vunpack.c.h.bf16 %v5476_v14 }
 0x49a   : > { %v5809_v38 = vadd.f32 %v4306_v25, %v8060_v22  ;;  %v5727_v28 = vpop.f32.mrb[31].mxu1  ;;  %v4373_v37 = vmax.f32 %v5808_v9, 0.0  ;;  %v4472_v25 = vunpack.c.l.bf16 %v5477_v56 }
 0x49c   : > { %v4374_v17 = vmax.f32 %v5809_v38, 0.0 }
 0x49e   : > { %v4398_v47 = vpack.c.bf16 %v4374_v17, %v4373_v37  ;;  %v4473_v37 = vunpack.c.h.bf16 %v5477_v56 }
 0x49f   : > { %v4311_v48 = vpop.f32.mrb[32].mxu1 }
 0x4a0   : > { %v5810_v24 = vadd.f32 %v4311_v48, %v8071_v2  ;;  %v5730_v16 = vpop.f32.mrb[33].mxu1  ;;  %4821 = vmatmul.mubr.bf16.gmra.mrb[244].mxu0 %v4398_v47 }
 0x4a1   : > { %v4314_v46 = vpop.f32.mrb[34].mxu1  ;;  %4830 = vmatprep.mubr.bf16.mxu0 %v8812_v43  ;;  %v5478_v16 = vld [vmem:[%s6377_s6 + $0x38] sm:$0xff] }
 0x4a2   : > { %v5811_v33 = vadd.f32 %v4314_v46, %v8073_v55  ;;  %v5731_v40 = vpop.f32.mrb[35].mxu1  ;;  %v4375_v0 = vmax.f32 %v5810_v24, 0.0 }
 0x4a4   : > { %v4376_v21 = vmax.f32 %v5811_v33, 0.0 }
 0x4a6   : > { %v4399_v27 = vpack.c.bf16 %v4376_v21, %v4375_v0 }
 0x4a7   : > { %v4319_v20 = vpop.f32.mrb[36].mxu1 }
 0x4a8   : > { %v5812_v22 = vadd.f32 %v4319_v20, %v8085_v11  ;;  %v5734_v62 = vpop.f32.mrb[37].mxu1  ;;  %4831 = vmatmul.mubr.bf16.gmra.mrb[248].mxu0 %v4399_v27  ;;  %v8815_v11 = vld [vmem:[#allocation30_spill] sm:$0xff] }
 0x4a9   : > { %v4322_v10 = vpop.f32.mrb[38].mxu1  ;;  %4840 = vmatprep.mubr.bf16.mxu0 %v8812_v43  ;;  %v5479_v27 = vld [vmem:[%s6377_s6 + $0x40] sm:$0xff] }
 0x4aa   : > { %v5813_v2 = vadd.f32 %v4322_v10, %v8087_v45  ;;  %v5735_v59 = vpop.f32.mrb[39].mxu1  ;;  %v4377_v13 = vmax.f32 %v5812_v22, 0.0  ;;  %v4474_v22 = vunpack.c.l.bf16 %v5478_v16 }
 0x4ab   : > { %v4476_v59 = vunpack.c.l.bf16 %v5479_v27 }
 0x4ac   : > { %v4378_v54 = vmax.f32 %v5813_v2, 0.0  ;;  %v4475_v2 = vunpack.c.h.bf16 %v5478_v16 }
 0x4ae   : > { %v4400_v60 = vpack.c.bf16 %v4378_v54, %v4377_v13 }
 0x4af   : > { %v4327_v51 = vpop.f32.mrb[40].mxu1 }
 0x4b0   : > { %v5814_v55 = vadd.f32 %v4327_v51, %v8099_v8  ;;  %v5738_v58 = vpop.f32.mrb[41].mxu1  ;;  %4841 = vmatmul.mubr.bf16.gmra.mrb[252].mxu0 %v4400_v60  ;;  %v4477_v60 = vunpack.c.h.bf16 %v5479_v27 }
 0x4b1   : > { %v4330_v29 = vpop.f32.mrb[42].mxu1  ;;  %4850 = vmatprep.mubr.bf16.mxu0 %v8812_v43 }
 0x4b2   : > { %v5815_v5 = vadd.f32 %v4330_v29, %v8815_v11  ;;  %v5739_v18 = vpop.f32.mrb[43].mxu1  ;;  %v4379_v1 = vmax.f32 %v5814_v55, 0.0  ;;  %v5480_v11 = vld [vmem:[%s6377_s6 + $0x48] sm:$0xff] }
 0x4b4   : > { %v4380_v53 = vmax.f32 %v5815_v5, 0.0 }
 0x4b6   : > { %v4401_v45 = vpack.c.bf16 %v4380_v53, %v4379_v1 }
 0x4b7   : > { %v4335_v23 = vpop.f32.mrb[44].mxu1 }
 0x4b8   : > { %v5816_v3 = vadd.f32 %v4335_v23, %v8113_v12  ;;  %v5742_v7 = vpop.f32.mrb[45].mxu1  ;;  %4851 = vmatmul.mubr.bf16.gmra.mrb[0].mxu0 %v4401_v45  ;;  %v5481_v23 = vld [vmem:[%s6377_s6 + $0x50] sm:$0xff] }
 0x4b9   : > { %v4338_v8 = vpop.f32.mrb[46].mxu1  ;;  %4860 = vmatprep.mubr.bf16.mxu0 %v8812_v43  ;;  %v4478_v7 = vunpack.c.l.bf16 %v5480_v11 }
 0x4ba   : > { %v4381_v36 = vmax.f32 %v5816_v3, 0.0  ;;  %v5743_v4 = vpop.f32.mrb[47].mxu1 }
 0x4bb   : > { %v4479_v4 = vunpack.c.h.bf16 %v5480_v11 }
 0x4bc   : > { %v4402_v42 = vpack.c.bf16 %v4381_v36, %v4381_v36 }
 0x4c0   : > { %4861 = vmatmul.mubr.bf16.gmra.mrb[4].mxu0 %v4402_v42  ;;  %v4480_v42 = vunpack.c.l.bf16 %v5481_v23 }
 0x4f3   : > { %v4662_v50 = vpop.f32.mrb[180].mxu0 }
 0x4f4   : > { %v4663_v12 = vadd.f32 %v4662_v50, %v4466_v57  ;;  %v4664_v61 = vpop.f32.mrb[181].mxu0  ;;  %v4481_v57 = vunpack.c.h.bf16 %v5481_v23 }
 0x4f5   : > { %v4665_v44 = vadd.f32 %v4664_v61, %v4467_v31  ;;  %v4666_v63 = vpop.f32.mrb[182].mxu0 }
 0x4f6   : > { %v4869_v43 = vmax.f32 %v4663_v12, 0.0  ;;  %v4667_v6 = vadd.f32 %v4666_v63, %v4468_v26  ;;  %v4668_v34 = vpop.f32.mrb[183].mxu0  ;;  %v5482_v12 = vld [vmem:[%s6377_s6 + $0x58] sm:$0xff] }
 0x4f7   : > { %v4870_v30 = vmax.f32 %v4665_v44, 0.0  ;;  %v4669_v32 = vadd.f32 %v4668_v34, %v4469_v19 }
 0x4f8   : > { %v4871_v39 = vmax.f32 %v4667_v6, 0.0  ;;  %v5483_v6 = vld [vmem:[%s6377_s6 + $0x60] sm:$0xff] }
 0x4f9   : > { %v5574_v15 = vpack.c.bf16 %v4870_v30, %v4869_v43  ;;  %v4872_v9 = vmax.f32 %v4669_v32, 0.0  ;;  %v4482_v30 = vunpack.c.l.bf16 %v5482_v12 }
 0x4fb   : > { %5199 = vst [vmem:[%s8401_s23] sm:$0xff] %v5574_v15  ;;  %v5575_v38 = vpack.c.bf16 %v4872_v9, %v4871_v39  ;;  %v4672_v28 = vpop.f32.mrb[184].mxu0  ;;  %v4483_v39 = vunpack.c.h.bf16 %v5482_v12 }
 0x4fc   : > { %v4673_v17 = vadd.f32 %v4672_v28, %v4470_v35  ;;  %v4674_v47 = vpop.f32.mrb[185].mxu0  ;;  %v4484_v35 = vunpack.c.l.bf16 %v5483_v6 }
 0x4fd   : > { %5200 = vst [vmem:[%s8401_s23 + $0x8] sm:$0xff] %v5575_v38  ;;  %v4675_v48 = vadd.f32 %v4674_v47, %v4471_v52  ;;  %v4676_v24 = vpop.f32.mrb[186].mxu0  ;;  %v4485_v52 = vunpack.c.h.bf16 %v5483_v6 }
 0x4fe   : > { %v4873_v46 = vmax.f32 %v4673_v17, 0.0  ;;  %v4677_v33 = vadd.f32 %v4676_v24, %v4472_v25  ;;  %v4678_v40 = vpop.f32.mrb[187].mxu0  ;;  %v5484_v17 = vld [vmem:[%s6377_s6 + $0x68] sm:$0xff] }
 0x4ff   : > { %v4874_v0 = vmax.f32 %v4675_v48, 0.0  ;;  %v4679_v21 = vadd.f32 %v4678_v40, %v4473_v37 }
 0x500   : > { %v4875_v20 = vmax.f32 %v4677_v33, 0.0  ;;  %v5485_v33 = vld [vmem:[%s6377_s6 + $0x70] sm:$0xff] }
 0x501   : > { %v5576_v62 = vpack.c.bf16 %v4874_v0, %v4873_v46  ;;  %v4876_v10 = vmax.f32 %v4679_v21, 0.0  ;;  %v4486_v0 = vunpack.c.l.bf16 %v5484_v17 }
 0x503   : > { %5201 = vst [vmem:[%s8401_s23 + $0x10] sm:$0xff] %v5576_v62  ;;  %v5577_v13 = vpack.c.bf16 %v4876_v10, %v4875_v20  ;;  %v4682_v54 = vpop.f32.mrb[188].mxu0  ;;  %v4487_v20 = vunpack.c.h.bf16 %v5484_v17 }
 0x504   : > { %v4683_v51 = vadd.f32 %v4682_v54, %v4474_v22  ;;  %v4684_v55 = vpop.f32.mrb[189].mxu0  ;;  %v4488_v22 = vunpack.c.l.bf16 %v5485_v33 }
 0x505   : > { %5202 = vst [vmem:[%s8401_s23 + $0x18] sm:$0xff] %v5577_v13  ;;  %v4685_v58 = vadd.f32 %v4684_v55, %v4475_v2  ;;  %v4686_v29 = vpop.f32.mrb[190].mxu0  ;;  %v4489_v2 = vunpack.c.h.bf16 %v5485_v33 }
 0x506   : > { %v4877_v5 = vmax.f32 %v4683_v51, 0.0  ;;  %v4687_v18 = vadd.f32 %v4686_v29, %v4476_v59  ;;  %v4688_v1 = vpop.f32.mrb[191].mxu0  ;;  %v5486_v51 = vld [vmem:[%s6377_s6 + $0x78] sm:$0xff] }
 0x507   : > { %v4878_v53 = vmax.f32 %v4685_v58, 0.0  ;;  %v4689_v45 = vadd.f32 %v4688_v1, %v4477_v60 }
 0x508   : > { %v4879_v3 = vmax.f32 %v4687_v18, 0.0  ;;  %v5487_v18 = vld [vmem:[%s6377_s6 + $0x80] sm:$0xff] }
 0x509   : > { %v5578_v8 = vpack.c.bf16 %v4878_v53, %v4877_v5  ;;  %v4880_v36 = vmax.f32 %v4689_v45, 0.0  ;;  %v4490_v53 = vunpack.c.l.bf16 %v5486_v51 }
 0x50b   : > { %5203 = vst [vmem:[%s8401_s23 + $0x20] sm:$0xff] %v5578_v8  ;;  %v5579_v41 = vpack.c.bf16 %v4880_v36, %v4879_v3  ;;  %v4692_v49 = vpop.f32.mrb[192].mxu0  ;;  %v4491_v3 = vunpack.c.h.bf16 %v5486_v51 }
 0x50c   : > { %v4693_v31 = vadd.f32 %v4692_v49, %v4478_v7  ;;  %v4694_v26 = vpop.f32.mrb[193].mxu0  ;;  %v4492_v7 = vunpack.c.l.bf16 %v5487_v18 }
 0x50d   : > { %5204 = vst [vmem:[%s8401_s23 + $0x28] sm:$0xff] %v5579_v41  ;;  %v4695_v50 = vadd.f32 %v4694_v26, %v4479_v4  ;;  %v4696_v19 = vpop.f32.mrb[194].mxu0  ;;  %v4493_v4 = vunpack.c.h.bf16 %v5487_v18 }
 0x50e   : > { %v4881_v61 = vmax.f32 %v4693_v31, 0.0  ;;  %v4697_v44 = vadd.f32 %v4696_v19, %v4480_v42  ;;  %v4698_v63 = vpop.f32.mrb[195].mxu0  ;;  %v5488_v31 = vld [vmem:[%s6377_s6 + $0x88] sm:$0xff] }
 0x50f   : > { %v4882_v14 = vmax.f32 %v4695_v50, 0.0  ;;  %v4699_v43 = vadd.f32 %v4698_v63, %v4481_v57 }
 0x510   : > { %v4883_v34 = vmax.f32 %v4697_v44, 0.0  ;;  %v5489_v44 = vld [vmem:[%s6377_s6 + $0x90] sm:$0xff] }
 0x511   : > { %v5580_v32 = vpack.c.bf16 %v4882_v14, %v4881_v61  ;;  %v4884_v56 = vmax.f32 %v4699_v43, 0.0  ;;  %v4494_v14 = vunpack.c.l.bf16 %v5488_v31 }
 0x513   : > { %5205 = vst [vmem:[%s8401_s23 + $0x30] sm:$0xff] %v5580_v32  ;;  %v5581_v15 = vpack.c.bf16 %v4884_v56, %v4883_v34  ;;  %v4702_v9 = vpop.f32.mrb[196].mxu0  ;;  %v4495_v34 = vunpack.c.h.bf16 %v5488_v31 }
 0x514   : > { %v4703_v25 = vadd.f32 %v4702_v9, %v4482_v30  ;;  %v4704_v38 = vpop.f32.mrb[197].mxu0  ;;  %v4496_v30 = vunpack.c.l.bf16 %v5489_v44 }
 0x515   : > { %5206 = vst [vmem:[%s8401_s23 + $0x38] sm:$0xff] %v5581_v15  ;;  %v4705_v28 = vadd.f32 %v4704_v38, %v4483_v39  ;;  %v4706_v37 = vpop.f32.mrb[198].mxu0  ;;  %v4497_v39 = vunpack.c.h.bf16 %v5489_v44 }
 0x516   : > { %v4885_v47 = vmax.f32 %v4703_v25, 0.0  ;;  %v4707_v48 = vadd.f32 %v4706_v37, %v4484_v35  ;;  %v4708_v24 = vpop.f32.mrb[199].mxu0  ;;  %v5490_v25 = vld [vmem:[%s6377_s6 + $0x98] sm:$0xff] }
 0x517   : > { %v4886_v16 = vmax.f32 %v4705_v28, 0.0  ;;  %v4709_v46 = vadd.f32 %v4708_v24, %v4485_v52 }
 0x518   : > { %v4887_v40 = vmax.f32 %v4707_v48, 0.0  ;;  %v5491_v48 = vld [vmem:[%s6377_s6 + $0xa0] sm:$0xff] }
 0x519   : > { %v5582_v21 = vpack.c.bf16 %v4886_v16, %v4885_v47  ;;  %v4888_v27 = vmax.f32 %v4709_v46, 0.0  ;;  %v4498_v16 = vunpack.c.l.bf16 %v5490_v25 }
 0x51b   : > { %5207 = vst [vmem:[%s8401_s23 + $0x40] sm:$0xff] %v5582_v21  ;;  %v5583_v62 = vpack.c.bf16 %v4888_v27, %v4887_v40  ;;  %v4712_v10 = vpop.f32.mrb[200].mxu0  ;;  %v4499_v40 = vunpack.c.h.bf16 %v5490_v25 }
 0x51c   : > { %v4713_v59 = vadd.f32 %v4712_v10, %v4486_v0  ;;  %v4714_v13 = vpop.f32.mrb[201].mxu0  ;;  %v4500_v0 = vunpack.c.l.bf16 %v5491_v48 }
 0x51d   : > { %5208 = vst [vmem:[%s8401_s23 + $0x48] sm:$0xff] %v5583_v62  ;;  %v4715_v54 = vadd.f32 %v4714_v13, %v4487_v20  ;;  %v4716_v60 = vpop.f32.mrb[202].mxu0  ;;  %v4501_v20 = vunpack.c.h.bf16 %v5491_v48 }
 0x51e   : > { %v4889_v55 = vmax.f32 %v4713_v59, 0.0  ;;  %v4717_v58 = vadd.f32 %v4716_v60, %v4488_v22  ;;  %v4718_v29 = vpop.f32.mrb[203].mxu0  ;;  %v5492_v59 = vld [vmem:[%s6377_s6 + $0xa8] sm:$0xff] }
 0x51f   : > { %v4890_v11 = vmax.f32 %v4715_v54, 0.0  ;;  %v4719_v5 = vadd.f32 %v4718_v29, %v4489_v2 }
 0x520   : > { %v4891_v1 = vmax.f32 %v4717_v58, 0.0  ;;  %v5493_v58 = vld [vmem:[%s6377_s6 + $0xb0] sm:$0xff] }
 0x521   : > { %v5584_v45 = vpack.c.bf16 %v4890_v11, %v4889_v55  ;;  %v4892_v23 = vmax.f32 %v4719_v5, 0.0  ;;  %v4502_v11 = vunpack.c.l.bf16 %v5492_v59 }
 0x523   : > { %5209 = vst [vmem:[%s8401_s23 + $0x50] sm:$0xff] %v5584_v45  ;;  %v5585_v8 = vpack.c.bf16 %v4892_v23, %v4891_v1  ;;  %v4722_v36 = vpop.f32.mrb[204].mxu0  ;;  %v4503_v1 = vunpack.c.h.bf16 %v5492_v59 }
 0x524   : > { %v4723_v42 = vadd.f32 %v4722_v36, %v4490_v53  ;;  %v4724_v41 = vpop.f32.mrb[205].mxu0  ;;  %v4504_v53 = vunpack.c.l.bf16 %v5493_v58 }
 0x525   : > { %5210 = vst [vmem:[%s8401_s23 + $0x58] sm:$0xff] %v5585_v8  ;;  %v4725_v49 = vadd.f32 %v4724_v41, %v4491_v3  ;;  %v4726_v57 = vpop.f32.mrb[206].mxu0  ;;  %v4505_v3 = vunpack.c.h.bf16 %v5493_v58 }
 0x526   : > { %v4893_v26 = vmax.f32 %v4723_v42, 0.0  ;;  %v4727_v50 = vadd.f32 %v4726_v57, %v4492_v7  ;;  %v4728_v19 = vpop.f32.mrb[207].mxu0  ;;  %v5494_v42 = vld [vmem:[%s6377_s6 + $0xb8] sm:$0xff] }
 0x527   : > { %v4894_v12 = vmax.f32 %v4725_v49, 0.0  ;;  %v4729_v61 = vadd.f32 %v4728_v19, %v4493_v4 }
 0x528   : > { %v4895_v63 = vmax.f32 %v4727_v50, 0.0  ;;  %v5495_v50 = vld [vmem:[%s6377_s6 + $0xc0] sm:$0xff] }
 0x529   : > { %v5586_v43 = vpack.c.bf16 %v4894_v12, %v4893_v26  ;;  %v4896_v6 = vmax.f32 %v4729_v61, 0.0  ;;  %v4506_v12 = vunpack.c.l.bf16 %v5494_v42 }
 0x52b   : > { %5211 = vst [vmem:[%s8401_s23 + $0x60] sm:$0xff] %v5586_v43  ;;  %v5587_v32 = vpack.c.bf16 %v4896_v6, %v4895_v63  ;;  %v4732_v56 = vpop.f32.mrb[208].mxu0  ;;  %v4507_v63 = vunpack.c.h.bf16 %v5494_v42 }
 0x52c   : > { %v4733_v35 = vadd.f32 %v4732_v56, %v4494_v14  ;;  %v4734_v15 = vpop.f32.mrb[209].mxu0  ;;  %v4508_v14 = vunpack.c.l.bf16 %v5495_v50 }
 0x52d   : > { %5212 = vst [vmem:[%s8401_s23 + $0x68] sm:$0xff] %v5587_v32  ;;  %v4735_v9 = vadd.f32 %v4734_v15, %v4495_v34  ;;  %v4736_v52 = vpop.f32.mrb[210].mxu0  ;;  %v4509_v34 = vunpack.c.h.bf16 %v5495_v50 }
 0x52e   : > { %v4897_v38 = vmax.f32 %v4733_v35, 0.0  ;;  %v4737_v28 = vadd.f32 %v4736_v52, %v4496_v30  ;;  %v4738_v37 = vpop.f32.mrb[211].mxu0  ;;  %v5496_v35 = vld [vmem:[%s6377_s6 + $0xc8] sm:$0xff] }
 0x52f   : > { %v4898_v17 = vmax.f32 %v4735_v9, 0.0  ;;  %v4739_v47 = vadd.f32 %v4738_v37, %v4497_v39 }
 0x530   : > { %v4899_v24 = vmax.f32 %v4737_v28, 0.0  ;;  %v5497_v28 = vld [vmem:[%s6377_s6 + $0xd0] sm:$0xff] }
 0x531   : > { %v5588_v46 = vpack.c.bf16 %v4898_v17, %v4897_v38  ;;  %v4900_v33 = vmax.f32 %v4739_v47, 0.0  ;;  %v4510_v17 = vunpack.c.l.bf16 %v5496_v35 }
 0x533   : > { %5213 = vst [vmem:[%s8401_s23 + $0x70] sm:$0xff] %v5588_v46  ;;  %v5589_v21 = vpack.c.bf16 %v4900_v33, %v4899_v24  ;;  %v4742_v27 = vpop.f32.mrb[212].mxu0  ;;  %v4511_v24 = vunpack.c.h.bf16 %v5496_v35 }
 0x534   : > { %v4743_v22 = vadd.f32 %v4742_v27, %v4498_v16  ;;  %v4744_v62 = vpop.f32.mrb[213].mxu0  ;;  %v4512_v16 = vunpack.c.l.bf16 %v5497_v28 }
 0x535   : > { %5214 = vst [vmem:[%s8401_s23 + $0x78] sm:$0xff] %v5589_v21  ;;  %v4745_v10 = vadd.f32 %v4744_v62, %v4499_v40  ;;  %v4746_v2 = vpop.f32.mrb[214].mxu0  ;;  %v4513_v40 = vunpack.c.h.bf16 %v5497_v28 }
 0x536   : > { %v4901_v13 = vmax.f32 %v4743_v22, 0.0  ;;  %v4747_v54 = vadd.f32 %v4746_v2, %v4500_v0  ;;  %v4748_v60 = vpop.f32.mrb[215].mxu0  ;;  %v5498_v22 = vld [vmem:[%s6377_s6 + $0xd8] sm:$0xff] }
 0x537   : > { %v4902_v51 = vmax.f32 %v4745_v10, 0.0  ;;  %v4749_v55 = vadd.f32 %v4748_v60, %v4501_v20 }
 0x538   : > { %v4903_v29 = vmax.f32 %v4747_v54, 0.0  ;;  %v5499_v54 = vld [vmem:[%s6377_s6 + $0xe0] sm:$0xff] }
 0x539   : > { %v5590_v5 = vpack.c.bf16 %v4902_v51, %v4901_v13  ;;  %v4904_v18 = vmax.f32 %v4749_v55, 0.0  ;;  %v4514_v51 = vunpack.c.l.bf16 %v5498_v22 }
 0x53b   : > { %5215 = vst [vmem:[%s8401_s23 + $0x80] sm:$0xff] %v5590_v5  ;;  %v5591_v45 = vpack.c.bf16 %v4904_v18, %v4903_v29  ;;  %v4752_v23 = vpop.f32.mrb[216].mxu0  ;;  %v4515_v29 = vunpack.c.h.bf16 %v5498_v22 }
 0x53c   : > { %v4753_v7 = vadd.f32 %v4752_v23, %v4502_v11  ;;  %v4754_v8 = vpop.f32.mrb[217].mxu0  ;;  %v4516_v11 = vunpack.c.l.bf16 %v5499_v54 }
 0x53d   : > { %5216 = vst [vmem:[%s8401_s23 + $0x88] sm:$0xff] %v5591_v45  ;;  %v4755_v36 = vadd.f32 %v4754_v8, %v4503_v1  ;;  %v4756_v4 = vpop.f32.mrb[218].mxu0  ;;  %v4517_v1 = vunpack.c.h.bf16 %v5499_v54 }
 0x53e   : > { %v4905_v41 = vmax.f32 %v4753_v7, 0.0  ;;  %v4757_v49 = vadd.f32 %v4756_v4, %v4504_v53  ;;  %v4758_v57 = vpop.f32.mrb[219].mxu0  ;;  %v5500_v7 = vld [vmem:[%s6377_s6 + $0xe8] sm:$0xff] }
 0x53f   : > { %v4906_v31 = vmax.f32 %v4755_v36, 0.0  ;;  %v4759_v26 = vadd.f32 %v4758_v57, %v4505_v3 }
 0x540   : > { %v4907_v19 = vmax.f32 %v4757_v49, 0.0  ;;  %v5501_v49 = vld [vmem:[%s6377_s6 + $0xf0] sm:$0xff] }
 0x541   : > { %v5592_v61 = vpack.c.bf16 %v4906_v31, %v4905_v41  ;;  %v4908_v44 = vmax.f32 %v4759_v26, 0.0  ;;  %v4518_v31 = vunpack.c.l.bf16 %v5500_v7 }
 0x543   : > { %5217 = vst [vmem:[%s8401_s23 + $0x90] sm:$0xff] %v5592_v61  ;;  %v5593_v43 = vpack.c.bf16 %v4908_v44, %v4907_v19  ;;  %v4762_v6 = vpop.f32.mrb[220].mxu0  ;;  %v4519_v19 = vunpack.c.h.bf16 %v5500_v7 }
 0x544   : > { %v4763_v30 = vadd.f32 %v4762_v6, %v4506_v12  ;;  %v4764_v32 = vpop.f32.mrb[221].mxu0  ;;  %v4520_v12 = vunpack.c.l.bf16 %v5501_v49 }
 0x545   : > { %5218 = vst [vmem:[%s8401_s23 + $0x98] sm:$0xff] %v5593_v43  ;;  %v4765_v56 = vadd.f32 %v4764_v32, %v4507_v63  ;;  %v4766_v39 = vpop.f32.mrb[222].mxu0  ;;  %v4521_v63 = vunpack.c.h.bf16 %v5501_v49 }
 0x546   : > { %v4909_v15 = vmax.f32 %v4763_v30, 0.0  ;;  %v4767_v9 = vadd.f32 %v4766_v39, %v4508_v14  ;;  %v4768_v52 = vpop.f32.mrb[223].mxu0  ;;  %v5502_v30 = vld [vmem:[%s6377_s6 + $0xf8] sm:$0xff] }
 0x547   : > { %v4910_v25 = vmax.f32 %v4765_v56, 0.0  ;;  %v4769_v38 = vadd.f32 %v4768_v52, %v4509_v34 }
 0x548   : > { %v4911_v37 = vmax.f32 %v4767_v9, 0.0  ;;  %v5503_v9 = vld [vmem:[%s6377_s6 + $0x100] sm:$0xff] }
 0x549   : > { %v5594_v47 = vpack.c.bf16 %v4910_v25, %v4909_v15  ;;  %v4912_v48 = vmax.f32 %v4769_v38, 0.0  ;;  %v4522_v25 = vunpack.c.l.bf16 %v5502_v30 }
 0x54b   : > { %5219 = vst [vmem:[%s8401_s23 + $0xa0] sm:$0xff] %v5594_v47  ;;  %v5595_v46 = vpack.c.bf16 %v4912_v48, %v4911_v37  ;;  %v4772_v33 = vpop.f32.mrb[224].mxu0  ;;  %v4523_v37 = vunpack.c.h.bf16 %v5502_v30 }
 0x54c   : > { %v4773_v0 = vadd.f32 %v4772_v33, %v4510_v17  ;;  %v4774_v21 = vpop.f32.mrb[225].mxu0  ;;  %v4524_v17 = vunpack.c.l.bf16 %v5503_v9 }
 0x54d   : > { %5220 = vst [vmem:[%s8401_s23 + $0xa8] sm:$0xff] %v5595_v46  ;;  %v4775_v27 = vadd.f32 %v4774_v21, %v4511_v24  ;;  %v4776_v20 = vpop.f32.mrb[226].mxu0  ;;  %v4525_v24 = vunpack.c.h.bf16 %v5503_v9 }
 0x54e   : > { %v4913_v62 = vmax.f32 %v4773_v0, 0.0  ;;  %v4777_v10 = vadd.f32 %v4776_v20, %v4512_v16  ;;  %v4778_v2 = vpop.f32.mrb[227].mxu0  ;;  %v5504_v0 = vld [vmem:[%s6377_s6 + $0x108] sm:$0xff] }
 0x54f   : > { %v4914_v59 = vmax.f32 %v4775_v27, 0.0  ;;  %v4779_v13 = vadd.f32 %v4778_v2, %v4513_v40 }
 0x550   : > { %v4915_v60 = vmax.f32 %v4777_v10, 0.0  ;;  %v5505_v10 = vld [vmem:[%s6377_s6 + $0x110] sm:$0xff] }
 0x551   : > { %v5596_v55 = vpack.c.bf16 %v4914_v59, %v4913_v62  ;;  %v4916_v58 = vmax.f32 %v4779_v13, 0.0  ;;  %v4526_v59 = vunpack.c.l.bf16 %v5504_v0 }
 0x553   : > { %5221 = vst [vmem:[%s8401_s23 + $0xb0] sm:$0xff] %v5596_v55  ;;  %v5597_v5 = vpack.c.bf16 %v4916_v58, %v4915_v60  ;;  %v4782_v18 = vpop.f32.mrb[228].mxu0  ;;  %v4527_v60 = vunpack.c.h.bf16 %v5504_v0 }
 0x554   : > { %v4783_v53 = vadd.f32 %v4782_v18, %v4514_v51  ;;  %v4784_v45 = vpop.f32.mrb[229].mxu0  ;;  %v4528_v51 = vunpack.c.l.bf16 %v5505_v10 }
 0x555   : > { %5222 = vst [vmem:[%s8401_s23 + $0xb8] sm:$0xff] %v5597_v5  ;;  %v4785_v23 = vadd.f32 %v4784_v45, %v4515_v29  ;;  %v4786_v3 = vpop.f32.mrb[230].mxu0  ;;  %v4529_v29 = vunpack.c.h.bf16 %v5505_v10 }
 0x556   : > { %v4917_v8 = vmax.f32 %v4783_v53, 0.0  ;;  %v4787_v36 = vadd.f32 %v4786_v3, %v4516_v11  ;;  %v4788_v4 = vpop.f32.mrb[231].mxu0  ;;  %v5506_v53 = vld [vmem:[%s6377_s6 + $0x118] sm:$0xff] }
 0x557   : > { %v4918_v42 = vmax.f32 %v4785_v23, 0.0  ;;  %v4789_v41 = vadd.f32 %v4788_v4, %v4517_v1 }
 0x558   : > { %v4919_v57 = vmax.f32 %v4787_v36, 0.0  ;;  %v5507_v36 = vld [vmem:[%s6377_s6 + $0x120] sm:$0xff] }
 0x559   : > { %v5598_v26 = vpack.c.bf16 %v4918_v42, %v4917_v8  ;;  %v4920_v50 = vmax.f32 %v4789_v41, 0.0  ;;  %v4530_v42 = vunpack.c.l.bf16 %v5506_v53 }
 0x55b   : > { %5223 = vst [vmem:[%s8401_s23 + $0xc0] sm:$0xff] %v5598_v26  ;;  %v5599_v61 = vpack.c.bf16 %v4920_v50, %v4919_v57  ;;  %v4792_v44 = vpop.f32.mrb[232].mxu0  ;;  %v4531_v57 = vunpack.c.h.bf16 %v5506_v53 }
 0x55c   : > { %v4793_v14 = vadd.f32 %v4792_v44, %v4518_v31  ;;  %v4794_v43 = vpop.f32.mrb[233].mxu0  ;;  %v4532_v31 = vunpack.c.l.bf16 %v5507_v36 }
 0x55d   : > { %5224 = vst [vmem:[%s8401_s23 + $0xc8] sm:$0xff] %v5599_v61  ;;  %v4795_v6 = vadd.f32 %v4794_v43, %v4519_v19  ;;  %v4796_v34 = vpop.f32.mrb[234].mxu0  ;;  %v4533_v19 = vunpack.c.h.bf16 %v5507_v36 }
 0x55e   : > { %v4921_v32 = vmax.f32 %v4793_v14, 0.0  ;;  %v4797_v56 = vadd.f32 %v4796_v34, %v4520_v12  ;;  %v4798_v39 = vpop.f32.mrb[235].mxu0  ;;  %v5508_v14 = vld [vmem:[%s6377_s6 + $0x128] sm:$0xff] }
 0x55f   : > { %v4922_v35 = vmax.f32 %v4795_v6, 0.0  ;;  %v4799_v15 = vadd.f32 %v4798_v39, %v4521_v63 }
 0x560   : > { %v4923_v52 = vmax.f32 %v4797_v56, 0.0  ;;  %v5509_v56 = vld [vmem:[%s6377_s6 + $0x130] sm:$0xff] }
 0x561   : > { %v5600_v38 = vpack.c.bf16 %v4922_v35, %v4921_v32  ;;  %v4924_v28 = vmax.f32 %v4799_v15, 0.0  ;;  %v4534_v35 = vunpack.c.l.bf16 %v5508_v14 }
 0x563   : > { %5225 = vst [vmem:[%s8401_s23 + $0xd0] sm:$0xff] %v5600_v38  ;;  %v5601_v47 = vpack.c.bf16 %v4924_v28, %v4923_v52  ;;  %v4802_v48 = vpop.f32.mrb[236].mxu0  ;;  %v4535_v52 = vunpack.c.h.bf16 %v5508_v14 }
 0x564   : > { %v4803_v16 = vadd.f32 %v4802_v48, %v4522_v25  ;;  %v4804_v46 = vpop.f32.mrb[237].mxu0  ;;  %v4536_v25 = vunpack.c.l.bf16 %v5509_v56 }
 0x565   : > { %5226 = vst [vmem:[%s8401_s23 + $0xd8] sm:$0xff] %v5601_v47  ;;  %v4805_v33 = vadd.f32 %v4804_v46, %v4523_v37  ;;  %v4806_v40 = vpop.f32.mrb[238].mxu0  ;;  %v4537_v37 = vunpack.c.h.bf16 %v5509_v56 }
 0x566   : > { %v4925_v21 = vmax.f32 %v4803_v16, 0.0  ;;  %v4807_v27 = vadd.f32 %v4806_v40, %v4524_v17  ;;  %v4808_v20 = vpop.f32.mrb[239].mxu0  ;;  %v5510_v16 = vld [vmem:[%s6377_s6 + $0x138] sm:$0xff] }
 0x567   : > { %v4926_v22 = vmax.f32 %v4805_v33, 0.0  ;;  %v4809_v62 = vadd.f32 %v4808_v20, %v4525_v24 }
 0x568   : > { %v4927_v2 = vmax.f32 %v4807_v27, 0.0  ;;  %v5511_v27 = vld [vmem:[%s6377_s6 + $0x140] sm:$0xff] }
 0x569   : > { %v5602_v13 = vpack.c.bf16 %v4926_v22, %v4925_v21  ;;  %v4928_v54 = vmax.f32 %v4809_v62, 0.0  ;;  %v4538_v22 = vunpack.c.l.bf16 %v5510_v16 }
 0x56b   : > { %5227 = vst [vmem:[%s8401_s23 + $0xe0] sm:$0xff] %v5602_v13  ;;  %v5603_v55 = vpack.c.bf16 %v4928_v54, %v4927_v2  ;;  %v4812_v58 = vpop.f32.mrb[240].mxu0  ;;  %v4539_v2 = vunpack.c.h.bf16 %v5510_v16 }
 0x56c   : > { %v4813_v11 = vadd.f32 %v4812_v58, %v4526_v59  ;;  %v4814_v5 = vpop.f32.mrb[241].mxu0  ;;  %v4540_v59 = vunpack.c.l.bf16 %v5511_v27 }
 0x56d   : > { %5228 = vst [vmem:[%s8401_s23 + $0xe8] sm:$0xff] %v5603_v55  ;;  %v4815_v18 = vadd.f32 %v4814_v5, %v4527_v60  ;;  %v4816_v1 = vpop.f32.mrb[242].mxu0  ;;  %v4541_v60 = vunpack.c.h.bf16 %v5511_v27 }
 0x56e   : > { %v4929_v45 = vmax.f32 %v4813_v11, 0.0  ;;  %v4817_v23 = vadd.f32 %v4816_v1, %v4528_v51  ;;  %v4818_v3 = vpop.f32.mrb[243].mxu0  ;;  %v5512_v11 = vld [vmem:[%s6377_s6 + $0x148] sm:$0xff] }
 0x56f   : > { %v4930_v7 = vmax.f32 %v4815_v18, 0.0  ;;  %v4819_v8 = vadd.f32 %v4818_v3, %v4529_v29 }
 0x570   : > { %v4931_v4 = vmax.f32 %v4817_v23, 0.0  ;;  %v5513_v23 = vld [vmem:[%s6377_s6 + $0x150] sm:$0xff] }
 0x571   : > { %v5604_v41 = vpack.c.bf16 %v4930_v7, %v4929_v45  ;;  %v4932_v49 = vmax.f32 %v4819_v8, 0.0  ;;  %v4542_v7 = vunpack.c.l.bf16 %v5512_v11 }
 0x573   : > { %5229 = vst [vmem:[%s8401_s23 + $0xf0] sm:$0xff] %v5604_v41  ;;  %v5605_v26 = vpack.c.bf16 %v4932_v49, %v4931_v4  ;;  %v4822_v50 = vpop.f32.mrb[244].mxu0  ;;  %v4543_v4 = vunpack.c.h.bf16 %v5512_v11 }
 0x574   : > { %v4823_v12 = vadd.f32 %v4822_v50, %v4530_v42  ;;  %v4824_v61 = vpop.f32.mrb[245].mxu0  ;;  %v4544_v42 = vunpack.c.l.bf16 %v5513_v23 }
 0x575   : > { %5230 = vst [vmem:[%s8401_s23 + $0xf8] sm:$0xff] %v5605_v26  ;;  %v4825_v44 = vadd.f32 %v4824_v61, %v4531_v57  ;;  %v4826_v63 = vpop.f32.mrb[246].mxu0  ;;  %v4545_v57 = vunpack.c.h.bf16 %v5513_v23 }
 0x576   : > { %v4933_v43 = vmax.f32 %v4823_v12, 0.0  ;;  %v4827_v6 = vadd.f32 %v4826_v63, %v4532_v31  ;;  %v4828_v34 = vpop.f32.mrb[247].mxu0  ;;  %v5514_v12 = vld [vmem:[%s6377_s6 + $0x158] sm:$0xff] }
 0x577   : > { %v4934_v30 = vmax.f32 %v4825_v44, 0.0  ;;  %v4829_v32 = vadd.f32 %v4828_v34, %v4533_v19  ;;  %v4546_v34 = vunpack.c.l.bf16 %v5514_v12  ;;  %v4547_v56 = vunpack.c.h.bf16 %v5514_v12 }
 0x578   : > { %v4935_v39 = vmax.f32 %v4827_v6, 0.0 }
 0x579   : > { %v5606_v15 = vpack.c.bf16 %v4934_v30, %v4933_v43  ;;  %v4936_v9 = vmax.f32 %v4829_v32, 0.0 }
 0x57b   : > { %5231 = vst [vmem:[%s8401_s23 + $0x100] sm:$0xff] %v5606_v15  ;;  %v5607_v38 = vpack.c.bf16 %v4936_v9, %v4935_v39  ;;  %v4832_v28 = vpop.f32.mrb[248].mxu0 }
 0x57c   : > { %v4833_v17 = vadd.f32 %v4832_v28, %v4534_v35  ;;  %v4834_v47 = vpop.f32.mrb[249].mxu0 }
 0x57d   : > { %5232 = vst [vmem:[%s8401_s23 + $0x108] sm:$0xff] %v5607_v38  ;;  %v4835_v48 = vadd.f32 %v4834_v47, %v4535_v52  ;;  %v4836_v24 = vpop.f32.mrb[250].mxu0 }
 0x57e   : > { %v4937_v46 = vmax.f32 %v4833_v17, 0.0  ;;  %v4837_v33 = vadd.f32 %v4836_v24, %v4536_v25  ;;  %v4838_v40 = vpop.f32.mrb[251].mxu0 }
 0x57f   : > { %v4938_v0 = vmax.f32 %v4835_v48, 0.0  ;;  %v4839_v21 = vadd.f32 %v4838_v40, %v4537_v37 }
 0x580   : > { %v4939_v20 = vmax.f32 %v4837_v33, 0.0 }
 0x581   : > { %v5608_v62 = vpack.c.bf16 %v4938_v0, %v4937_v46  ;;  %v4940_v10 = vmax.f32 %v4839_v21, 0.0 }
 0x583   : > { %5233 = vst [vmem:[%s8401_s23 + $0x110] sm:$0xff] %v5608_v62  ;;  %v5609_v13 = vpack.c.bf16 %v4940_v10, %v4939_v20  ;;  %v4842_v54 = vpop.f32.mrb[252].mxu0 }
 0x584   : > { %v4843_v51 = vadd.f32 %v4842_v54, %v4538_v22  ;;  %v4844_v55 = vpop.f32.mrb[253].mxu0 }
 0x585   : > { %5234 = vst [vmem:[%s8401_s23 + $0x118] sm:$0xff] %v5609_v13  ;;  %v4845_v58 = vadd.f32 %v4844_v55, %v4539_v2  ;;  %v4846_v29 = vpop.f32.mrb[254].mxu0 }
 0x586   : > { %v4941_v5 = vmax.f32 %v4843_v51, 0.0  ;;  %v4847_v18 = vadd.f32 %v4846_v29, %v4540_v59  ;;  %v4848_v1 = vpop.f32.mrb[255].mxu0 }
 0x587   : > { %v4942_v53 = vmax.f32 %v4845_v58, 0.0  ;;  %v4849_v45 = vadd.f32 %v4848_v1, %v4541_v60 }
 0x588   : > { %v4943_v3 = vmax.f32 %v4847_v18, 0.0 }
 0x589   : > { %v5610_v8 = vpack.c.bf16 %v4942_v53, %v4941_v5  ;;  %v4944_v36 = vmax.f32 %v4849_v45, 0.0 }
 0x58b   : > { %5235 = vst [vmem:[%s8401_s23 + $0x120] sm:$0xff] %v5610_v8  ;;  %v5611_v41 = vpack.c.bf16 %v4944_v36, %v4943_v3  ;;  %v4852_v49 = vpop.f32.mrb[0].mxu0 }
 0x58c   : > { %v4853_v31 = vadd.f32 %v4852_v49, %v4542_v7  ;;  %v4854_v26 = vpop.f32.mrb[1].mxu0 }
 0x58d   : > { %5236 = vst [vmem:[%s8401_s23 + $0x128] sm:$0xff] %v5611_v41  ;;  %v4855_v50 = vadd.f32 %v4854_v26, %v4543_v4  ;;  %v4856_v19 = vpop.f32.mrb[2].mxu0 }
 0x58e   : > { %v4945_v61 = vmax.f32 %v4853_v31, 0.0  ;;  %v4857_v44 = vadd.f32 %v4856_v19, %v4544_v42  ;;  %v4858_v63 = vpop.f32.mrb[3].mxu0 }
 0x58f   : > { %v4946_v14 = vmax.f32 %v4855_v50, 0.0  ;;  %v4859_v43 = vadd.f32 %v4858_v63, %v4545_v57 }
 0x590   : > { %v4947_v6 = vmax.f32 %v4857_v44, 0.0 }
 0x591   : > { %v5612_v30 = vpack.c.bf16 %v4946_v14, %v4945_v61  ;;  %v4948_v32 = vmax.f32 %v4859_v43, 0.0 }
 0x593   : > { %5237 = vst [vmem:[%s8401_s23 + $0x130] sm:$0xff] %v5612_v30  ;;  %v5613_v39 = vpack.c.bf16 %v4948_v32, %v4947_v6  ;;  %v4862_v35 = vpop.f32.mrb[4].mxu0 }
 0x594   : > { %v4863_v15 = vadd.f32 %v4862_v35, %v4546_v34  ;;  %v4864_v9 = vpop.f32.mrb[5].mxu0 }
 0x595   : > { %5238 = vst [vmem:[%s8401_s23 + $0x138] sm:$0xff] %v5613_v39  ;;  %v4865_v52 = vadd.f32 %v4864_v9, %v4547_v56  ;;  %v4866_v25 = vpop.f32.mrb[6].mxu0 }
 0x596   : > { %v4949_v38 = vmax.f32 %v4863_v15, 0.0  ;;  %v4867_v28 = vpop.f32.mrb[7].mxu0 }
 0x597   : > { %v4950_v37 = vmax.f32 %v4865_v52, 0.0 }
 0x599   : > { %v5614_v17 = vpack.c.bf16 %v4950_v37, %v4949_v38 }
 0x59b   : > { %5239 = vst [vmem:[%s8401_s23 + $0x140] sm:$0xff] %v5614_v17 }
 0x59c PF: > { %s14_s17 = sadd.s32 1, %s6303_s17   ;;  %s8816_s15 = smov %s6299_s16 }
 0x59d   : > { %p11_p5 = scmp.ge.s32.totalorder %s14_s17, 4   ;;  %s8817_s16 = smov %s8819_s18 }
 0x59f   :  { %13 = sbr.rel (!%p11_p5) target bundleno = 2 (0x2), region = 68 }

</bundles_post_ra>
